<compile_context>
chip_gen: v6e
topology: v6e:2x2x1
jax: 0.10.0
libtpu: 0.0.40
codegen_flags: <defaults>
</compile_context>

<pallas_src>
import functools

import jax
import jax.numpy as jnp
from jax import lax
from jax.experimental import pallas as pl
from jax.experimental.pallas import tpu as pltpu

LANE = 128


def _round_up(v, m):
    return (v + m - 1) // m * m


def _pad_axis(a, axis, target):
    if a.shape[axis] == target:
        return a
    widths = [(0, 0)] * a.ndim
    widths[axis] = (0, target - a.shape[axis])
    return jnp.pad(a, widths)


# ----------------------------------------------------------------------------
# Fused kernel: coordinate attention + KxK conv + BN + ReLU, one batch element.
# ----------------------------------------------------------------------------
def _ca_conv_fused_kernel(H, W, K, stride, pad, Ho, Wo,
                          x_ref, w1_ref, b1_ref, s1_ref, t1_ref,
                          wh_ref, bh_ref, ww_ref, bw_ref,
                          wc_ref, sc_ref, bc_ref, o_ref):
    x = x_ref[...]                                     # (H, W, Cp) f32, Cp on lanes
    Cp = x.shape[-1]

    # ---------------- coordinate attention ----------------
    x_h = jnp.mean(x, axis=1)                          # (H, Cp)  pool over W
    x_w = jnp.mean(x, axis=0)                          # (W, Cp)  pool over H

    def excite(v):                                     # conv1 (1x1) + bn1 + h_swish
        y = jnp.dot(v, w1_ref[...], preferred_element_type=jnp.float32) + b1_ref[...]
        y = y * s1_ref[...] + t1_ref[...]
        return y * jnp.clip(y + 3.0, 0.0, 6.0) * (1.0 / 6.0)

    y_h = excite(x_h)                                  # (H, MIPp)
    y_w = excite(x_w)                                  # (W, MIPp)

    a_h = jax.nn.sigmoid(
        jnp.dot(y_h, wh_ref[...], preferred_element_type=jnp.float32) + bh_ref[...])  # (H, Cp)
    a_w = jax.nn.sigmoid(
        jnp.dot(y_w, ww_ref[...], preferred_element_type=jnp.float32) + bw_ref[...])  # (W, Cp)

    out = x * a_h[:, None, :] * a_w[None, :, :]        # (H, W, Cp)

    # -------- zero padding as a VALUE (no scratch store / reload) --------
    if pad > 0:
        zw = jnp.zeros((H, pad, Cp), jnp.float32)
        out = jnp.concatenate([zw, out, zw], axis=1)           # (H, Wp, Cp)
        zh = jnp.zeros((pad, W + 2 * pad, Cp), jnp.float32)
        out = jnp.concatenate([zh, out, zh], axis=0)           # (Hp, Wp, Cp)

    # -------- KxK conv: kh-looped im2col, bf16 MXU dots, f32 accumulator --------
    OUPp = sc_ref.shape[-1]
    acc = jnp.zeros((Ho * Wo, OUPp), jnp.float32)
    for kh in range(K):                                # static, unrolled
        taps = []
        for kw in range(K):
            patch = out[kh:kh + (Ho - 1) * stride + 1:stride,
                        kw:kw + (Wo - 1) * stride + 1:stride, :]     # (Ho, Wo, Cp)
            taps.append(patch.reshape(Ho * Wo, Cp))
        col = jnp.concatenate(taps, axis=1).astype(jnp.bfloat16)     # (Ho*Wo, K*Cp)
        acc = acc + jnp.dot(col, wc_ref[kh],                         # wc_ref is bf16
                            preferred_element_type=jnp.float32)

    y = acc * sc_ref[...] + bc_ref[...]                # folded conv-bias + BN
    o_ref[...] = jnp.maximum(y, 0.0).reshape(Ho, Wo, OUPp)


# ----------------------------------------------------------------------------
# Wrapper: layout / padding prep (tiny, host-side / XLA) + pallas_call.
# ----------------------------------------------------------------------------
def ca_conv_forward(x, p, K, stride):
    N, C, H, W = x.shape
    OUP = p["conv_w"].shape[0]
    mip = p["w1"].shape[0]
    pad = K // 2
    Hp, Wp = H + 2 * pad, W + 2 * pad
    Ho = (H + 2 * pad - K) // stride + 1
    Wo = (W + 2 * pad - K) // stride + 1

    Cp = _round_up(C, LANE)
    MIPp = _round_up(mip, LANE)
    OUPp = _round_up(OUP, LANE)

    # Single layout pass on the input (XLA); zero-pad channels to 128 lanes.
    x_hwc = _pad_axis(jnp.transpose(x, (0, 2, 3, 1)), 3, Cp)     # (N, H, W, Cp)

    # Kernel-ready (right-multiply) parameter layouts, zero-padded lane-dense.
    w1 = _pad_axis(_pad_axis(jnp.transpose(p["w1"]), 0, Cp), 1, MIPp)    # (Cp, MIPp)
    b1 = _pad_axis(p["b1"].reshape(1, -1), 1, MIPp)
    s1 = _pad_axis(p["bn1_scale"].reshape(1, -1), 1, MIPp)
    t1 = _pad_axis(p["bn1_bias"].reshape(1, -1), 1, MIPp)
    wh = _pad_axis(_pad_axis(jnp.transpose(p["wh"]), 0, MIPp), 1, Cp)    # (MIPp, Cp)
    bh = _pad_axis(p["bh"].reshape(1, -1), 1, Cp)
    ww = _pad_axis(_pad_axis(jnp.transpose(p["ww"]), 0, MIPp), 1, Cp)    # (MIPp, Cp)
    bw = _pad_axis(p["bw"].reshape(1, -1), 1, Cp)
    # OIHW -> (kh, kw, c, O), pad c/O, reshape to (K, K*Cp, OUPp) matching the
    # per-kh [kw-major, c-minor] im2col column order; shipped as bf16 for MXU.
    wc = jnp.transpose(p["conv_w"], (2, 3, 1, 0))                        # (K, K, C, OUP)
    wc = _pad_axis(_pad_axis(wc, 2, Cp), 3, OUPp).reshape(K, K * Cp, OUPp)
    wc = wc.astype(jnp.bfloat16)
    sc = _pad_axis(p["conv_scale"].reshape(1, -1), 1, OUPp)
    bc = _pad_axis(p["conv_bias"].reshape(1, -1), 1, OUPp)

    params = (w1, b1, s1, t1, wh, bh, ww, bw, wc, sc, bc)

    def full_spec(a):
        nd = a.ndim
        return pl.BlockSpec(a.shape, lambda n, _nd=nd: (0,) * _nd)

    # Exact-ish live-bytes budget, generation-aware cap.
    f32 = 4
    live = f32 * (2 * H * W * Cp            # double-buffered input block
                  + 2 * Ho * Wo * OUPp      # double-buffered output block
                  + Hp * Wp * Cp            # padded attention output (value)
                  + 2 * H * W * Cp          # x / out intermediates
                  + Ho * Wo * OUPp          # f32 accumulator
                  + Cp * MIPp + 2 * MIPp * Cp + 16 * max(MIPp, Cp, OUPp))
    live += 2 * (K * K * Cp * OUPp + 2 * Ho * Wo * K * Cp)   # bf16 weights + per-kh col
    try:
        vmem_cap = pltpu.get_tpu_info().vmem_capacity_bytes
    except Exception:
        vmem_cap = 64 * 1024 * 1024
    vmem_limit = int(min(max(int(1.25 * live), 32 * 1024 * 1024),
                         int(0.75 * vmem_cap)))

    kernel = functools.partial(_ca_conv_fused_kernel, H, W, K, stride, pad, Ho, Wo)

    y_nhwc = pl.pallas_call(
        kernel,
        out_shape=jax.ShapeDtypeStruct((N, Ho, Wo, OUPp), jnp.float32),
        grid=(N,),
        in_specs=[pl.BlockSpec((None, H, W, Cp), lambda n: (n, 0, 0, 0))]
                 + [full_spec(a) for a in params],
        out_specs=pl.BlockSpec((None, Ho, Wo, OUPp), lambda n: (n, 0, 0, 0)),
        compiler_params=pltpu.CompilerParams(
            dimension_semantics=("parallel",),       # N>=2 feeds both v7x TCs
            vmem_limit_bytes=vmem_limit),
    )(x_hwc, *params)

    # Slice the OUP lane-padding off and relayout to NCHW (small output tensor).
    return jnp.transpose(y_nhwc[..., :OUP], (0, 3, 1, 2))


# ----------------------------------------------------------------------------
# Parameter construction (deterministic; inference-mode BatchNorm folded into
# scale/shift) — matches the PyTorch module's structure.
# ----------------------------------------------------------------------------
def init_params(key, inp, oup, K, reduction=32, eps=1e-5):
    mip = max(8, inp // reduction)
    ks = jax.random.split(key, 16)

    def rnd(k, shape, scale=0.1):
        return scale * jax.random.normal(k, shape, jnp.float32)

    p = {}
    # conv1: 1x1, inp -> mip
    p["w1"] = rnd(ks[0], (mip, inp))
    p["b1"] = rnd(ks[1], (mip, 1))
    # bn1 (inference) folded to scale/bias
    g1 = 1.0 + 0.1 * jax.random.normal(ks[2], (mip,), jnp.float32)
    be1 = rnd(ks[3], (mip,))
    mu1 = rnd(ks[4], (mip,))
    va1 = jnp.abs(rnd(ks[5], (mip,))) + 1.0
    s1 = g1 / jnp.sqrt(va1 + eps)
    p["bn1_scale"] = s1.reshape(mip, 1)
    p["bn1_bias"] = (be1 - mu1 * s1).reshape(mip, 1)
    # conv_h / conv_w: 1x1, mip -> inp
    p["wh"] = rnd(ks[6], (inp, mip))
    p["bh"] = rnd(ks[7], (inp, 1))
    p["ww"] = rnd(ks[8], (inp, mip))
    p["bw"] = rnd(ks[9], (inp, 1))
    # final conv: KxK, inp -> oup, + bn2 (inference) folded
    p["conv_w"] = rnd(ks[10], (oup, inp, K, K))        # torch OIHW
    conv_b = rnd(ks[11], (oup,))
    g2 = 1.0 + 0.1 * jax.random.normal(ks[12], (oup,), jnp.float32)
    be2 = rnd(ks[13], (oup,))
    mu2 = rnd(ks[14], (oup,))
    va2 = jnp.abs(rnd(ks[15], (oup,))) + 1.0
    s2 = g2 / jnp.sqrt(va2 + eps)
    p["conv_scale"] = s2.reshape(1, oup)
    p["conv_bias"] = ((conv_b - mu2) * s2 + be2).reshape(1, oup)
    return p


# ----------------------------------------------------------------------------
# Pure-JAX reference (same math, f32 throughout) for a correctness check.
# ----------------------------------------------------------------------------
def reference_forward(x, p, K, stride):
    N, C, H, W = x.shape
    x_h = jnp.mean(x, axis=3)                              # (N,C,H)
    x_w = jnp.mean(x, axis=2)                              # (N,C,W)
    y = jnp.concatenate([x_h, x_w], axis=2)                # (N,C,H+W)
    y = jnp.einsum("mc,ncl->nml", p["w1"], y) + p["b1"][None]
    y = y * p["bn1_scale"][None] + p["bn1_bias"][None]
    y = y * jnp.clip(y + 3.0, 0.0, 6.0) / 6.0
    yh, yw = y[:, :, :H], y[:, :, H:]
    a_h = jax.nn.sigmoid(jnp.einsum("cm,nml->ncl", p["wh"], yh) + p["bh"][None])
    a_w = jax.nn.sigmoid(jnp.einsum("cm,nml->ncl", p["ww"], yw) + p["bw"][None])
    out = x * a_h[:, :, :, None] * a_w[:, :, None, :]
    conv = lax.conv_general_dilated(out, p["conv_w"], (stride, stride),
                                    [(K // 2, K // 2), (K // 2, K // 2)],
                                    dimension_numbers=("NCHW", "OIHW", "NCHW"))
    OUP = p["conv_w"].shape[0]
    conv = conv * p["conv_scale"].reshape(1, OUP, 1, 1) + p["conv_bias"].reshape(1, OUP, 1, 1)
    return jnp.maximum(conv, 0.0)


if __name__ == "__main__":
    N, C, H, W = 2, 4, 16, 16
    OUP, K, STRIDE = 8, 3, 1

    key = jax.random.PRNGKey(0)
    kx, kp = jax.random.split(key)
    x = jax.random.normal(kx, (N, C, H, W), jnp.float32)
    params = init_params(kp, C, OUP, K)

    fwd = jax.jit(functools.partial(ca_conv_forward, K=K, stride=STRIDE))
    out = jax.block_until_ready(fwd(x, params))

    ref = reference_forward(x, params, K, STRIDE)
    assert out.shape == (N, OUP, H // STRIDE, W // STRIDE), out.shape
    max_err = float(jnp.max(jnp.abs(out - ref)))
    # bf16 MXU operands on the KxK conv dot -> loosened tolerance vs f32 reference.
    if max_err > 5e-2:
        raise SystemExit(f"mismatch vs reference: max abs err {max_err:e}")
    print("KERNEL_OK")
</pallas_src>

<mosaic_0001>
module attributes {stable_mosaic.version = 11 : i64} {
  func.func @_ca_conv_fused_kernel(%arg0: i32, %arg1: memref<1x16x16x128xf32, #tpu.memory_space<vmem>>, %arg2: memref<128x128xf32, #tpu.memory_space<vmem>>, %arg3: memref<1x128xf32, #tpu.memory_space<vmem>>, %arg4: memref<1x128xf32, #tpu.memory_space<vmem>>, %arg5: memref<1x128xf32, #tpu.memory_space<vmem>>, %arg6: memref<128x128xf32, #tpu.memory_space<vmem>>, %arg7: memref<1x128xf32, #tpu.memory_space<vmem>>, %arg8: memref<128x128xf32, #tpu.memory_space<vmem>>, %arg9: memref<1x128xf32, #tpu.memory_space<vmem>>, %arg10: memref<3x384x128xbf16, #tpu.memory_space<vmem>>, %arg11: memref<1x128xf32, #tpu.memory_space<vmem>>, %arg12: memref<1x128xf32, #tpu.memory_space<vmem>>, %arg13: memref<1x16x16x128xf32, #tpu.memory_space<vmem>>) attributes {dimension_semantics = [#tpu.dimension_semantics<parallel>], iteration_bounds = array<i64: 2>, scalar_prefetch = 0 : i64, scratch_operands = 0 : i64, tpu.core_type = #tpu.core_type<tc>, window_params = [{transform_indices = @transform_0, window_bounds = array<i64: 1, 16, 16, 128>}, {pipeline_mode = #tpu.pipeline_mode<synchronous>, transform_indices = @transform_1, window_bounds = array<i64: 128, 128>}, {pipeline_mode = #tpu.pipeline_mode<synchronous>, transform_indices = @transform_2, window_bounds = array<i64: 1, 128>}, {pipeline_mode = #tpu.pipeline_mode<synchronous>, transform_indices = @transform_3, window_bounds = array<i64: 1, 128>}, {pipeline_mode = #tpu.pipeline_mode<synchronous>, transform_indices = @transform_4, window_bounds = array<i64: 1, 128>}, {pipeline_mode = #tpu.pipeline_mode<synchronous>, transform_indices = @transform_5, window_bounds = array<i64: 128, 128>}, {pipeline_mode = #tpu.pipeline_mode<synchronous>, transform_indices = @transform_6, window_bounds = array<i64: 1, 128>}, {pipeline_mode = #tpu.pipeline_mode<synchronous>, transform_indices = @transform_7, window_bounds = array<i64: 128, 128>}, {pipeline_mode = #tpu.pipeline_mode<synchronous>, transform_indices = @transform_8, window_bounds = array<i64: 1, 128>}, {pipeline_mode = #tpu.pipeline_mode<synchronous>, transform_indices = @transform_9, window_bounds = array<i64: 3, 384, 128>}, {pipeline_mode = #tpu.pipeline_mode<synchronous>, transform_indices = @transform_10, window_bounds = array<i64: 1, 128>}, {pipeline_mode = #tpu.pipeline_mode<synchronous>, transform_indices = @transform_11, window_bounds = array<i64: 1, 128>}, {transform_indices = @transform_12, window_bounds = array<i64: 1, 16, 16, 128>}]} {
    %c0 = arith.constant 0 : index
    %c0_0 = arith.constant 0 : index
    %c0_1 = arith.constant 0 : index
    %c0_2 = arith.constant 0 : index
    %0 = vector.load %arg1[%c0, %c0_0, %c0_1, %c0_2] : memref<1x16x16x128xf32, #tpu.memory_space<vmem>>, vector<1x16x16x128xf32>
    %1 = vector.shape_cast %0 : vector<1x16x16x128xf32> to vector<16x16x128xf32>
    %cst = arith.constant dense<0.000000e+00> : vector<16x128xf32>
    %2 = vector.multi_reduction <add>, %1, %cst [1] : vector<16x16x128xf32> to vector<16x128xf32>
    %cst_3 = arith.constant 1.600000e+01 : f32
    %3 = vector.broadcast %cst_3 : f32 to vector<16x128xf32>
    %4 = arith.divf %2, %3 : vector<16x128xf32>
    %cst_4 = arith.constant dense<0.000000e+00> : vector<16x128xf32>
    %5 = vector.multi_reduction <add>, %1, %cst_4 [0] : vector<16x16x128xf32> to vector<16x128xf32>
    %cst_5 = arith.constant 1.600000e+01 : f32
    %6 = vector.broadcast %cst_5 : f32 to vector<16x128xf32>
    %7 = arith.divf %5, %6 : vector<16x128xf32>
    %c0_6 = arith.constant 0 : index
    %c0_7 = arith.constant 0 : index
    %8 = vector.load %arg2[%c0_6, %c0_7] : memref<128x128xf32, #tpu.memory_space<vmem>>, vector<128x128xf32>
    %cst_8 = arith.constant dense<0.000000e+00> : vector<16x128xf32>
    %9 = tpu.matmul %4, %8, %cst_8 {dimension_numbers = #tpu.dot_dimension_numbers<[1], [0], [0], [1], [0, 0, 1, 1], [], []>} : vector<16x128xf32>, vector<128x128xf32>, vector<16x128xf32> -> vector<16x128xf32>
    %c0_9 = arith.constant 0 : index
    %c0_10 = arith.constant 0 : index
    %10 = vector.load %arg3[%c0_9, %c0_10] : memref<1x128xf32, #tpu.memory_space<vmem>>, vector<1x128xf32>
    %11 = vector.broadcast %10 : vector<1x128xf32> to vector<16x128xf32>
    %12 = arith.addf %9, %11 : vector<16x128xf32>
    %c0_11 = arith.constant 0 : index
    %c0_12 = arith.constant 0 : index
    %13 = vector.load %arg4[%c0_11, %c0_12] : memref<1x128xf32, #tpu.memory_space<vmem>>, vector<1x128xf32>
    %14 = vector.broadcast %13 : vector<1x128xf32> to vector<16x128xf32>
    %15 = arith.mulf %12, %14 : vector<16x128xf32>
    %c0_13 = arith.constant 0 : index
    %c0_14 = arith.constant 0 : index
    %16 = vector.load %arg5[%c0_13, %c0_14] : memref<1x128xf32, #tpu.memory_space<vmem>>, vector<1x128xf32>
    %17 = vector.broadcast %16 : vector<1x128xf32> to vector<16x128xf32>
    %18 = arith.addf %15, %17 : vector<16x128xf32>
    %cst_15 = arith.constant 3.000000e+00 : f32
    %19 = vector.broadcast %cst_15 : f32 to vector<16x128xf32>
    %20 = arith.addf %18, %19 : vector<16x128xf32>
    %cst_16 = arith.constant 0.000000e+00 : f32
    %cst_17 = arith.constant 6.000000e+00 : f32
    %21 = vector.broadcast %cst_16 : f32 to vector<16x128xf32>
    %22 = arith.maximumf %21, %20 : vector<16x128xf32>
    %23 = vector.broadcast %cst_17 : f32 to vector<16x128xf32>
    %24 = arith.minimumf %23, %22 : vector<16x128xf32>
    %25 = arith.mulf %18, %24 : vector<16x128xf32>
    %cst_18 = arith.constant 0.166666672 : f32
    %26 = vector.broadcast %cst_18 : f32 to vector<16x128xf32>
    %27 = arith.mulf %25, %26 : vector<16x128xf32>
    %c0_19 = arith.constant 0 : index
    %c0_20 = arith.constant 0 : index
    %28 = vector.load %arg2[%c0_19, %c0_20] : memref<128x128xf32, #tpu.memory_space<vmem>>, vector<128x128xf32>
    %cst_21 = arith.constant dense<0.000000e+00> : vector<16x128xf32>
    %29 = tpu.matmul %7, %28, %cst_21 {dimension_numbers = #tpu.dot_dimension_numbers<[1], [0], [0], [1], [0, 0, 1, 1], [], []>} : vector<16x128xf32>, vector<128x128xf32>, vector<16x128xf32> -> vector<16x128xf32>
    %c0_22 = arith.constant 0 : index
    %c0_23 = arith.constant 0 : index
    %30 = vector.load %arg3[%c0_22, %c0_23] : memref<1x128xf32, #tpu.memory_space<vmem>>, vector<1x128xf32>
    %31 = vector.broadcast %30 : vector<1x128xf32> to vector<16x128xf32>
    %32 = arith.addf %29, %31 : vector<16x128xf32>
    %c0_24 = arith.constant 0 : index
    %c0_25 = arith.constant 0 : index
    %33 = vector.load %arg4[%c0_24, %c0_25] : memref<1x128xf32, #tpu.memory_space<vmem>>, vector<1x128xf32>
    %34 = vector.broadcast %33 : vector<1x128xf32> to vector<16x128xf32>
    %35 = arith.mulf %32, %34 : vector<16x128xf32>
    %c0_26 = arith.constant 0 : index
    %c0_27 = arith.constant 0 : index
    %36 = vector.load %arg5[%c0_26, %c0_27] : memref<1x128xf32, #tpu.memory_space<vmem>>, vector<1x128xf32>
    %37 = vector.broadcast %36 : vector<1x128xf32> to vector<16x128xf32>
    %38 = arith.addf %35, %37 : vector<16x128xf32>
    %cst_28 = arith.constant 3.000000e+00 : f32
    %39 = vector.broadcast %cst_28 : f32 to vector<16x128xf32>
    %40 = arith.addf %38, %39 : vector<16x128xf32>
    %cst_29 = arith.constant 0.000000e+00 : f32
    %cst_30 = arith.constant 6.000000e+00 : f32
    %41 = vector.broadcast %cst_29 : f32 to vector<16x128xf32>
    %42 = arith.maximumf %41, %40 : vector<16x128xf32>
    %43 = vector.broadcast %cst_30 : f32 to vector<16x128xf32>
    %44 = arith.minimumf %43, %42 : vector<16x128xf32>
    %45 = arith.mulf %38, %44 : vector<16x128xf32>
    %cst_31 = arith.constant 0.166666672 : f32
    %46 = vector.broadcast %cst_31 : f32 to vector<16x128xf32>
    %47 = arith.mulf %45, %46 : vector<16x128xf32>
    %c0_32 = arith.constant 0 : index
    %c0_33 = arith.constant 0 : index
    %48 = vector.load %arg6[%c0_32, %c0_33] : memref<128x128xf32, #tpu.memory_space<vmem>>, vector<128x128xf32>
    %cst_34 = arith.constant dense<0.000000e+00> : vector<16x128xf32>
    %49 = tpu.matmul %27, %48, %cst_34 {dimension_numbers = #tpu.dot_dimension_numbers<[1], [0], [0], [1], [0, 0, 1, 1], [], []>} : vector<16x128xf32>, vector<128x128xf32>, vector<16x128xf32> -> vector<16x128xf32>
    %c0_35 = arith.constant 0 : index
    %c0_36 = arith.constant 0 : index
    %50 = vector.load %arg7[%c0_35, %c0_36] : memref<1x128xf32, #tpu.memory_space<vmem>>, vector<1x128xf32>
    %51 = vector.broadcast %50 : vector<1x128xf32> to vector<16x128xf32>
    %52 = arith.addf %49, %51 : vector<16x128xf32>
    %53 = arith.negf %52 : vector<16x128xf32>
    %54 = math.exp %53 : vector<16x128xf32>
    %cst_37 = arith.constant 1.000000e+00 : f32
    %55 = vector.broadcast %cst_37 : f32 to vector<16x128xf32>
    %56 = arith.addf %55, %54 : vector<16x128xf32>
    %57 = arith.divf %55, %56 : vector<16x128xf32>
    %c0_38 = arith.constant 0 : index
    %c0_39 = arith.constant 0 : index
    %58 = vector.load %arg8[%c0_38, %c0_39] : memref<128x128xf32, #tpu.memory_space<vmem>>, vector<128x128xf32>
    %cst_40 = arith.constant dense<0.000000e+00> : vector<16x128xf32>
    %59 = tpu.matmul %47, %58, %cst_40 {dimension_numbers = #tpu.dot_dimension_numbers<[1], [0], [0], [1], [0, 0, 1, 1], [], []>} : vector<16x128xf32>, vector<128x128xf32>, vector<16x128xf32> -> vector<16x128xf32>
    %c0_41 = arith.constant 0 : index
    %c0_42 = arith.constant 0 : index
    %60 = vector.load %arg9[%c0_41, %c0_42] : memref<1x128xf32, #tpu.memory_space<vmem>>, vector<1x128xf32>
    %61 = vector.broadcast %60 : vector<1x128xf32> to vector<16x128xf32>
    %62 = arith.addf %59, %61 : vector<16x128xf32>
    %63 = arith.negf %62 : vector<16x128xf32>
    %64 = math.exp %63 : vector<16x128xf32>
    %cst_43 = arith.constant 1.000000e+00 : f32
    %65 = vector.broadcast %cst_43 : f32 to vector<16x128xf32>
    %66 = arith.addf %65, %64 : vector<16x128xf32>
    %67 = arith.divf %65, %66 : vector<16x128xf32>
    %68 = vector.shape_cast %57 : vector<16x128xf32> to vector<16x1x128xf32>
    %69 = vector.broadcast %68 : vector<16x1x128xf32> to vector<16x16x128xf32>
    %70 = arith.mulf %1, %69 : vector<16x16x128xf32>
    %71 = vector.shape_cast %67 : vector<16x128xf32> to vector<1x16x128xf32>
    %72 = vector.broadcast %71 : vector<1x16x128xf32> to vector<16x16x128xf32>
    %73 = arith.mulf %70, %72 : vector<16x16x128xf32>
    %cst_44 = arith.constant 0.000000e+00 : f32
    %74 = vector.broadcast %cst_44 : f32 to vector<16x1x128xf32>
    %75 = tpu.concatenate %74, %73, %74 in 1 : vector<16x1x128xf32>, vector<16x16x128xf32>, vector<16x1x128xf32> -> vector<16x18x128xf32>
    %cst_45 = arith.constant 0.000000e+00 : f32
    %76 = vector.broadcast %cst_45 : f32 to vector<1x18x128xf32>
    %77 = tpu.concatenate %76, %75, %76 in 0 : vector<1x18x128xf32>, vector<16x18x128xf32>, vector<1x18x128xf32> -> vector<18x18x128xf32>
    %cst_46 = arith.constant 0.000000e+00 : f32
    %78 = vector.broadcast %cst_46 : f32 to vector<256x128xf32>
    %79 = vector.extract_strided_slice %77 {offsets = [0, 0, 0], sizes = [16, 16, 128], strides = [1, 1, 1]} : vector<18x18x128xf32> to vector<16x16x128xf32>
    %80 = vector.shape_cast %79 : vector<16x16x128xf32> to vector<256x128xf32>
    %81 = vector.extract_strided_slice %77 {offsets = [0, 1, 0], sizes = [16, 16, 128], strides = [1, 1, 1]} : vector<18x18x128xf32> to vector<16x16x128xf32>
    %82 = vector.shape_cast %81 : vector<16x16x128xf32> to vector<256x128xf32>
    %83 = vector.extract_strided_slice %77 {offsets = [0, 2, 0], sizes = [16, 16, 128], strides = [1, 1, 1]} : vector<18x18x128xf32> to vector<16x16x128xf32>
    %84 = vector.shape_cast %83 : vector<16x16x128xf32> to vector<256x128xf32>
    %85 = tpu.concatenate %80, %82, %84 in 1 : vector<256x128xf32>, vector<256x128xf32>, vector<256x128xf32> -> vector<256x384xf32>
    %86 = arith.truncf %85 : vector<256x384xf32> to vector<256x384xbf16>
    %c0_47 = arith.constant 0 : index
    %c0_48 = arith.constant 0 : index
    %c0_49 = arith.constant 0 : index
    %87 = vector.load %arg10[%c0_47, %c0_48, %c0_49] : memref<3x384x128xbf16, #tpu.memory_space<vmem>>, vector<1x384x128xbf16>
    %88 = vector.shape_cast %87 : vector<1x384x128xbf16> to vector<384x128xbf16>
    %cst_50 = arith.constant dense<0.000000e+00> : vector<256x128xf32>
    %89 = tpu.matmul %86, %88, %cst_50 {dimension_numbers = #tpu.dot_dimension_numbers<[1], [0], [0], [1], [0, 0, 1, 1], [], []>} : vector<256x384xbf16>, vector<384x128xbf16>, vector<256x128xf32> -> vector<256x128xf32>
    %90 = arith.addf %78, %89 : vector<256x128xf32>
    %91 = vector.extract_strided_slice %77 {offsets = [1, 0, 0], sizes = [16, 16, 128], strides = [1, 1, 1]} : vector<18x18x128xf32> to vector<16x16x128xf32>
    %92 = vector.shape_cast %91 : vector<16x16x128xf32> to vector<256x128xf32>
    %93 = vector.extract_strided_slice %77 {offsets = [1, 1, 0], sizes = [16, 16, 128], strides = [1, 1, 1]} : vector<18x18x128xf32> to vector<16x16x128xf32>
    %94 = vector.shape_cast %93 : vector<16x16x128xf32> to vector<256x128xf32>
    %95 = vector.extract_strided_slice %77 {offsets = [1, 2, 0], sizes = [16, 16, 128], strides = [1, 1, 1]} : vector<18x18x128xf32> to vector<16x16x128xf32>
    %96 = vector.shape_cast %95 : vector<16x16x128xf32> to vector<256x128xf32>
    %97 = tpu.concatenate %92, %94, %96 in 1 : vector<256x128xf32>, vector<256x128xf32>, vector<256x128xf32> -> vector<256x384xf32>
    %98 = arith.truncf %97 : vector<256x384xf32> to vector<256x384xbf16>
    %c1 = arith.constant 1 : index
    %c0_51 = arith.constant 0 : index
    %c0_52 = arith.constant 0 : index
    %99 = vector.load %arg10[%c1, %c0_51, %c0_52] : memref<3x384x128xbf16, #tpu.memory_space<vmem>>, vector<1x384x128xbf16>
    %100 = vector.shape_cast %99 : vector<1x384x128xbf16> to vector<384x128xbf16>
    %cst_53 = arith.constant dense<0.000000e+00> : vector<256x128xf32>
    %101 = tpu.matmul %98, %100, %cst_53 {dimension_numbers = #tpu.dot_dimension_numbers<[1], [0], [0], [1], [0, 0, 1, 1], [], []>} : vector<256x384xbf16>, vector<384x128xbf16>, vector<256x128xf32> -> vector<256x128xf32>
    %102 = arith.addf %90, %101 : vector<256x128xf32>
    %103 = vector.extract_strided_slice %77 {offsets = [2, 0, 0], sizes = [16, 16, 128], strides = [1, 1, 1]} : vector<18x18x128xf32> to vector<16x16x128xf32>
    %104 = vector.shape_cast %103 : vector<16x16x128xf32> to vector<256x128xf32>
    %105 = vector.extract_strided_slice %77 {offsets = [2, 1, 0], sizes = [16, 16, 128], strides = [1, 1, 1]} : vector<18x18x128xf32> to vector<16x16x128xf32>
    %106 = vector.shape_cast %105 : vector<16x16x128xf32> to vector<256x128xf32>
    %107 = vector.extract_strided_slice %77 {offsets = [2, 2, 0], sizes = [16, 16, 128], strides = [1, 1, 1]} : vector<18x18x128xf32> to vector<16x16x128xf32>
    %108 = vector.shape_cast %107 : vector<16x16x128xf32> to vector<256x128xf32>
    %109 = tpu.concatenate %104, %106, %108 in 1 : vector<256x128xf32>, vector<256x128xf32>, vector<256x128xf32> -> vector<256x384xf32>
    %110 = arith.truncf %109 : vector<256x384xf32> to vector<256x384xbf16>
    %c2 = arith.constant 2 : index
    %c0_54 = arith.constant 0 : index
    %c0_55 = arith.constant 0 : index
    %111 = vector.load %arg10[%c2, %c0_54, %c0_55] : memref<3x384x128xbf16, #tpu.memory_space<vmem>>, vector<1x384x128xbf16>
    %112 = vector.shape_cast %111 : vector<1x384x128xbf16> to vector<384x128xbf16>
    %cst_56 = arith.constant dense<0.000000e+00> : vector<256x128xf32>
    %113 = tpu.matmul %110, %112, %cst_56 {dimension_numbers = #tpu.dot_dimension_numbers<[1], [0], [0], [1], [0, 0, 1, 1], [], []>} : vector<256x384xbf16>, vector<384x128xbf16>, vector<256x128xf32> -> vector<256x128xf32>
    %114 = arith.addf %102, %113 : vector<256x128xf32>
    %c0_57 = arith.constant 0 : index
    %c0_58 = arith.constant 0 : index
    %115 = vector.load %arg11[%c0_57, %c0_58] : memref<1x128xf32, #tpu.memory_space<vmem>>, vector<1x128xf32>
    %116 = vector.broadcast %115 : vector<1x128xf32> to vector<256x128xf32>
    %117 = arith.mulf %114, %116 : vector<256x128xf32>
    %c0_59 = arith.constant 0 : index
    %c0_60 = arith.constant 0 : index
    %118 = vector.load %arg12[%c0_59, %c0_60] : memref<1x128xf32, #tpu.memory_space<vmem>>, vector<1x128xf32>
    %119 = vector.broadcast %118 : vector<1x128xf32> to vector<256x128xf32>
    %120 = arith.addf %117, %119 : vector<256x128xf32>
    %cst_61 = arith.constant 0.000000e+00 : f32
    %121 = vector.broadcast %cst_61 : f32 to vector<256x128xf32>
    %122 = arith.maximumf %120, %121 : vector<256x128xf32>
    %123 = vector.shape_cast %122 : vector<256x128xf32> to vector<16x16x128xf32>
    %c0_62 = arith.constant 0 : index
    %c0_63 = arith.constant 0 : index
    %c0_64 = arith.constant 0 : index
    %c0_65 = arith.constant 0 : index
    %124 = vector.load %arg13[%c0_62, %c0_63, %c0_64, %c0_65] : memref<1x16x16x128xf32, #tpu.memory_space<vmem>>, vector<1x16x16x128xf32>
    %125 = vector.shape_cast %124 : vector<1x16x16x128xf32> to vector<16x16x128xf32>
    %126 = vector.shape_cast %123 : vector<16x16x128xf32> to vector<1x16x16x128xf32>
    tpu.vector_store %arg13[%c0_62, %c0_63, %c0_64, %c0_65], %126 {strides = array<i32>} : memref<1x16x16x128xf32, #tpu.memory_space<vmem>>, vector<1x16x16x128xf32>,
    return
  }
  func.func @transform_0(%arg0: i32) -> (i32, i32, i32, i32) {
    %c0_i32 = arith.constant 0 : i32
    %c0_i32_0 = arith.constant 0 : i32
    %c0_i32_1 = arith.constant 0 : i32
    %c0_i32_2 = arith.constant 0 : i32
    return %arg0, %c0_i32, %c0_i32_0, %c0_i32_1 : i32, i32, i32, i32
  }
  func.func @transform_1(%arg0: i32) -> (i32, i32) {
    %c0_i32 = arith.constant 0 : i32
    %c0_i32_0 = arith.constant 0 : i32
    %c0_i32_1 = arith.constant 0 : i32
    return %c0_i32, %c0_i32_0 : i32, i32
  }
  func.func @transform_2(%arg0: i32) -> (i32, i32) {
    %c0_i32 = arith.constant 0 : i32
    %c0_i32_0 = arith.constant 0 : i32
    %c0_i32_1 = arith.constant 0 : i32
    return %c0_i32, %c0_i32_0 : i32, i32
  }
  func.func @transform_3(%arg0: i32) -> (i32, i32) {
    %c0_i32 = arith.constant 0 : i32
    %c0_i32_0 = arith.constant 0 : i32
    %c0_i32_1 = arith.constant 0 : i32
    return %c0_i32, %c0_i32_0 : i32, i32
  }
  func.func @transform_4(%arg0: i32) -> (i32, i32) {
    %c0_i32 = arith.constant 0 : i32
    %c0_i32_0 = arith.constant 0 : i32
    %c0_i32_1 = arith.constant 0 : i32
    return %c0_i32, %c0_i32_0 : i32, i32
  }
  func.func @transform_5(%arg0: i32) -> (i32, i32) {
    %c0_i32 = arith.constant 0 : i32
    %c0_i32_0 = arith.constant 0 : i32
    %c0_i32_1 = arith.constant 0 : i32
    return %c0_i32, %c0_i32_0 : i32, i32
  }
  func.func @transform_6(%arg0: i32) -> (i32, i32) {
    %c0_i32 = arith.constant 0 : i32
    %c0_i32_0 = arith.constant 0 : i32
    %c0_i32_1 = arith.constant 0 : i32
    return %c0_i32, %c0_i32_0 : i32, i32
  }
  func.func @transform_7(%arg0: i32) -> (i32, i32) {
    %c0_i32 = arith.constant 0 : i32
    %c0_i32_0 = arith.constant 0 : i32
    %c0_i32_1 = arith.constant 0 : i32
    return %c0_i32, %c0_i32_0 : i32, i32
  }
  func.func @transform_8(%arg0: i32) -> (i32, i32) {
    %c0_i32 = arith.constant 0 : i32
    %c0_i32_0 = arith.constant 0 : i32
    %c0_i32_1 = arith.constant 0 : i32
    return %c0_i32, %c0_i32_0 : i32, i32
  }
  func.func @transform_9(%arg0: i32) -> (i32, i32, i32) {
    %c0_i32 = arith.constant 0 : i32
    %c0_i32_0 = arith.constant 0 : i32
    %c0_i32_1 = arith.constant 0 : i32
    %c0_i32_2 = arith.constant 0 : i32
    return %c0_i32, %c0_i32_0, %c0_i32_1 : i32, i32, i32
  }
  func.func @transform_10(%arg0: i32) -> (i32, i32) {
    %c0_i32 = arith.constant 0 : i32
    %c0_i32_0 = arith.constant 0 : i32
    %c0_i32_1 = arith.constant 0 : i32
    return %c0_i32, %c0_i32_0 : i32, i32
  }
  func.func @transform_11(%arg0: i32) -> (i32, i32) {
    %c0_i32 = arith.constant 0 : i32
    %c0_i32_0 = arith.constant 0 : i32
    %c0_i32_1 = arith.constant 0 : i32
    return %c0_i32, %c0_i32_0 : i32, i32
  }
  func.func @transform_12(%arg0: i32) -> (i32, i32, i32, i32) {
    %c0_i32 = arith.constant 0 : i32
    %c0_i32_0 = arith.constant 0 : i32
    %c0_i32_1 = arith.constant 0 : i32
    %c0_i32_2 = arith.constant 0 : i32
    return %arg0, %c0_i32, %c0_i32_0, %c0_i32_1 : i32, i32, i32, i32
  }
}

</mosaic_0001>

<bundles_post_ra>
// kernel: ca_conv_forward.1
= control target key start
LH: loop header
LB: loop body
LE: loop exit
PB: predicated region body
PF: predicated region fallthrough
CT: control target
= control target key end

     0   :  { %s4925_s21 = smov 0   ;;  %s6837_s0 = inlined_call_operand.vmem [shape: f32[2,16,16,128], index: 0, kind: input, shape index: {}]   ;;  %s6838_s1 = inlined_call_operand.vmem [shape: f32[128,128], index: 1, kind: input, shape index: {}]   ;;  %s6839_s2 = inlined_call_operand.vmem [shape: f32[1,128], index: 2, kind: input, shape index: {}]   ;;  %s6840_s3 = inlined_call_operand.vmem [shape: f32[1,128], index: 3, kind: input, shape index: {}]   ;;  %s6841_s4 = inlined_call_operand.vmem [shape: f32[1,128], index: 4, kind: input, shape index: {}]   ;;  %s6842_s5 = inlined_call_operand.vmem [shape: f32[128,128], index: 5, kind: input, shape index: {}]   ;;  %s6843_s6 = inlined_call_operand.vmem [shape: f32[1,128], index: 6, kind: input, shape index: {}]   ;;  %s6844_s7 = inlined_call_operand.vmem [shape: f32[128,128], index: 7, kind: input, shape index: {}]   ;;  %s6845_s8 = inlined_call_operand.vmem [shape: f32[1,128], index: 8, kind: input, shape index: {}]   ;;  %s6846_s9 = inlined_call_operand.vmem [shape: bf16[3,384,128], index: 9, kind: input, shape index: {}]   ;;  %s6847_s10 = inlined_call_operand.vmem [shape: f32[1,128], index: 10, kind: input, shape index: {}]   ;;  %s6848_s11 = inlined_call_operand.vmem [shape: f32[1,128], index: 11, kind: input, shape index: {}]   ;;  %s6849_s12 = inlined_call_operand.vmem [shape: f32[2,16,16,128], index: 12, kind: output, shape index: {}]  }
   0x1 LB: > { %s3576_s22 = sadd.s32 4294967295, %s4854_s21   ;;  %p3580_p0 = scmp.ge.s32.totalorder %s4854_s21, 1  ;;  %s4854_s21 = sphi %s4925_s21, %s22_s21  }
   0x2   : > { %p362_p1 = scmp.lt.s32.totalorder %s4854_s21, 3 }
   0x4   : > { %p363_p2 = pnand %p3580_p0, %p362_p1 }
   0x6   : > { %366 = sbr.rel (%p363_p2) target bundleno = 1070 (0x42e), region = 68 }
   0xb   : > { %v4936_v0 = vld [vmem:[%s6838_s1 + $0x78] sm:$0xff]  ;;  %v4941_v1 = vld [vmem:[%s6838_s1 + $0x70] sm:$0xff]  ;;  %p404_p3 = scmp.lt.s32.totalorder %s3576_s22, 1  ;;  %v4948_v2 = vld [vmem:[%s6838_s1 + $0x68] sm:$0xff]  ;;  %vm647_vm0 = vcmask 1041409   ;;  %vm649_vm1 = vcmask 1042434  }
   0xc   : > { %4432 = vmatprep.subr.mxu1 %v4936_v0  ;;  %v4957_v3 = vld [vmem:[%s6838_s1 + $0x60] sm:$0xff]  ;;  %v4964_v4 = vld [vmem:[%s6838_s1 + $0x58] sm:$0xff]  ;;  %v876_v6 = vld [vmem:[%s6842_s5 + $0x70] sm:$0xff]  ;;  %vm651_vm2 = vcmask 1043459   ;;  %vm653_vm3 = vcmask 1044484   ;;  %vm655_vm4 = vcmask 1045509  }
   0xd   : > { %4433 = vmatpush3.msra.mxu1 %v4936_v0  ;;  %s6926_s22 = smov (!%p404_p3, %s3576_s22), 1  ;;  %v877_v5 = vld [vmem:[%s6842_s5 + $0x78] sm:$0xff]  ;;  %v4983_v7 = vld [vmem:[%s6838_s1 + $0x50] sm:$0xff]  ;;  %v4998_v16 = vld [vmem:[%s6838_s1 + $0x48] sm:$0xff]  ;;  %vm657_vm5 = vcmask 1046534   ;;  %vm659_vm6 = vcmask 1047559  }
   0xe   : > { %4434 = vmatprep.subr.mxu1 %v4941_v1  ;;  %s3950_s13 = sshll.u32 %s6926_s22, 8  ;;  %4502 = vmatprep.subr.mxu0 %v877_v5  ;;  %v5047_v41 = vld [vmem:[%s6838_s1 + $0x40] sm:$0xff]  ;;  %v5056_v50 = vld [vmem:[%s6838_s1 + $0x38] sm:$0xff]  ;;  %v5062_v55 = vld [vmem:[%s6838_s1 + $0x30] sm:$0xff]  ;;  %vm1358_vm7 = vcmask 1040384   ;;  %vm1518_vm8 = vcmask 1046528  }
   0xf   : > { %4435 = vmatpush3.msra.mxu1 %v4941_v1  ;;  %s4971_s18 = scalar_lea.vmem %s6837_s0, %s3950_s13  ;;  %4503 = vmatpush3.msra.mxu0 %v877_v5  ;;  %v5068_v60 = vld [vmem:[%s6838_s1 + $0x28] sm:$0xff]  ;;  %vm1627_vm9 = vcmask 1045504   ;;  %vm3666_vm10 = vmneg %vm1358_vm7  ;;  %vm4858_vm11 = vmmov 1   ;;  %s6708_s20 = scalar_lea.vmem %s6849_s12, %s3950_s13 }
  0x10   : > { %4436 = vmatprep.subr.mxu1 %v4948_v2  ;;  %v415_v8 = vld [vmem:[%s4971_s18] sm:$0xff]  ;;  %v416_v9 = vld [vmem:[%s4971_s18 + $0x8] sm:$0xff]  ;;  %v417_v10 = vld [vmem:[%s4971_s18 + $0x10] sm:$0xff]  ;;  %4504 = vmatprep.subr.mxu0 %v876_v6 }
  0x11   : > { %4437 = vmatpush3.msra.mxu1 %v4948_v2  ;;  %v418_v11 = vld [vmem:[%s4971_s18 + $0x18] sm:$0xff]  ;;  %v419_v12 = vld [vmem:[%s4971_s18 + $0x20] sm:$0xff]  ;;  %v4992_v13 = vld [vmem:[%s4971_s18 + $0x28] sm:$0xff]  ;;  %v447_v14 = vadd.f32 %v416_v9, %v415_v8  ;;  %v576_v15 = vadd.f32 %v417_v10, %v415_v8  ;;  %4505 = vmatpush3.msra.mxu0 %v876_v6 }
  0x12   : > { %4438 = vmatprep.subr.mxu1 %v4957_v3  ;;  %v421_v17 = vld [vmem:[%s4971_s18 + $0x30] sm:$0xff]  ;;  %v5002_v18 = vld [vmem:[%s4971_s18 + $0x38] sm:$0xff]  ;;  %v5005_v19 = vld [vmem:[%s4971_s18 + $0x40] sm:$0xff]  ;;  %v454_v20 = vadd.f32 %v418_v11, %v417_v10  ;;  %v461_v21 = vadd.f32 %v4992_v13, %v419_v12  ;;  %v5019_v28 = vadd.f32 %v418_v11, %v416_v9 }
  0x13   : > { %4439 = vmatpush3.msra.mxu1 %v4957_v3  ;;  %v5010_v22 = vld [vmem:[%s4971_s18 + $0x48] sm:$0xff]  ;;  %v5013_v23 = vld [vmem:[%s4971_s18 + $0x50] sm:$0xff]  ;;  %v5016_v24 = vld [vmem:[%s4971_s18 + $0x58] sm:$0xff]  ;;  %v448_v25 = vrot.slane %v447_v14, 4  ;;  %v468_v26 = vadd.f32 %v5002_v18, %v421_v17  ;;  %v577_v27 = vadd.f32 %v576_v15, %v419_v12 }
  0x14   : > { %4440 = vmatprep.subr.mxu1 %v4964_v4  ;;  %v5023_v29 = vld [vmem:[%s4971_s18 + $0x60] sm:$0xff]  ;;  %v5026_v30 = vld [vmem:[%s4971_s18 + $0x68] sm:$0xff]  ;;  %v5029_v31 = vld [vmem:[%s4971_s18 + $0x70] sm:$0xff]  ;;  %v455_v32 = vrot.slane %v454_v20, 4  ;;  %v462_v33 = vrot.slane %v461_v21, 4  ;;  %v475_v34 = vadd.f32 %v5010_v22, %v5005_v19  ;;  %v482_v35 = vadd.f32 %v5016_v24, %v5013_v23 }
  0x15   : > { %4441 = vmatpush3.msra.mxu1 %v4964_v4  ;;  %v5037_v36 = vld [vmem:[%s4971_s18 + $0x78] sm:$0xff]  ;;  %v449_v37 = vadd.f32 %v448_v25, %v447_v14  ;;  %v469_v38 = vrot.slane %v468_v26, 4  ;;  %v489_v39 = vadd.f32 %v5026_v30, %v5023_v29  ;;  %v5041_v40 = vadd.f32 %v577_v27, %v421_v17  ;;  %v5071_v61 = vld [vmem:[%s4971_s18 + $0x80] sm:$0xff]  ;;  %v5074_v62 = vld [vmem:[%s4971_s18 + $0x88] sm:$0xff] }
  0x16   : > { %4442 = vmatprep.subr.mxu1 %v4983_v7  ;;  %v456_v42 = vadd.f32 %v455_v32, %v454_v20  ;;  %v463_v43 = vadd.f32 %v462_v33, %v461_v21  ;;  %v476_v44 = vrot.slane %v475_v34, 4  ;;  %v483_v45 = vrot.slane %v482_v35, 4  ;;  %v875_v9 = vld [vmem:[%s6842_s5 + $0x68] sm:$0xff]  ;;  %v5081_v10 = vld [vmem:[%s4971_s18 + $0x90] sm:$0xff]  ;;  %v5084_v11 = vld [vmem:[%s4971_s18 + $0x98] sm:$0xff] }
  0x17   : > { %4443 = vmatpush3.msra.mxu1 %v4983_v7  ;;  %v450_v46 = vrot.slane %v449_v37, 2  ;;  %v470_v47 = vadd.f32 %v469_v38, %v468_v26  ;;  %v490_v48 = vrot.slane %v489_v39, 4  ;;  %v496_v49 = vadd.f32 %v5037_v36, %v5029_v31  ;;  %4506 = vmatprep.subr.mxu0 %v875_v9  ;;  %v874_v20 = vld [vmem:[%s6842_s5 + $0x60] sm:$0xff]  ;;  %v873_v21 = vld [vmem:[%s6842_s5 + $0x58] sm:$0xff]  ;;  %vm5596_vm12 = vmpackc.low %vm4858_vm11, %vm3666_vm10 }
  0x18   : > { %4444 = vmatprep.subr.mxu1 %v4998_v16  ;;  %v457_v51 = vrot.slane %v456_v42, 2  ;;  %v464_v52 = vrot.slane %v463_v43, 2  ;;  %v477_v53 = vadd.f32 %v476_v44, %v475_v34  ;;  %v484_v54 = vadd.f32 %v483_v45, %v482_v35  ;;  %v5096_v25 = vld [vmem:[%s6838_s1 + $0x20] sm:$0xff]  ;;  %4507 = vmatpush3.msra.mxu0 %v875_v9  ;;  %v872_v34 = vld [vmem:[%s6842_s5 + $0x50] sm:$0xff]  ;;  %v5130_v9 = vld [vmem:[%s6838_s1 + $0x8] sm:$0xff] }
  0x19   : > { %4445 = vmatpush3.msra.mxu1 %v4998_v16  ;;  %v451_v56 = vadd.f32 %v450_v46, %v449_v37  ;;  %v471_v57 = vrot.slane %v470_v47, 2  ;;  %v491_v58 = vadd.f32 %v490_v48, %v489_v39  ;;  %v497_v59 = vrot.slane %v496_v49, 4  ;;  %4508 = vmatprep.subr.mxu0 %v874_v20  ;;  %v5107_v46 = vld [vmem:[%s6838_s1 + $0x18] sm:$0xff] }
  0x1a   : > { %4446 = vmatprep.subr.mxu1 %v5047_v41  ;;  %v458_v63 = vadd.f32 %v457_v51, %v456_v42  ;;  %v465_v5 = vadd.f32 %v464_v52, %v463_v43  ;;  %v478_v6 = vrot.slane %v477_v53, 2  ;;  %v485_v8 = vrot.slane %v484_v54, 2  ;;  %4509 = vmatpush3.msra.mxu0 %v874_v20  ;;  %v5115_v52 = vld [vmem:[%s6838_s1 + $0x10] sm:$0xff] }
  0x1b   : > { %4447 = vmatpush3.msra.mxu1 %v5047_v41  ;;  %v452_v12 = vrot.slane %v451_v56, 1  ;;  %v472_v14 = vadd.f32 %v471_v57, %v470_v47  ;;  %v492_v15 = vrot.slane %v491_v58, 2  ;;  %v498_v17 = vadd.f32 %v497_v59, %v496_v49  ;;  %4510 = vmatprep.subr.mxu0 %v873_v21  ;;  %v5133_v20 = vld [vmem:[%s4971_s18 + $0xb0] sm:$0xff] }
  0x1c   : > { %4448 = vmatprep.subr.mxu1 %v5056_v50  ;;  %v459_v26 = vrot.slane %v458_v63, 1  ;;  %v466_v27 = vrot.slane %v465_v5, 1  ;;  %v479_v32 = vadd.f32 %v478_v6, %v477_v53  ;;  %v486_v33 = vadd.f32 %v485_v8, %v484_v54  ;;  %4511 = vmatpush3.msra.mxu0 %v873_v21  ;;  %v5124_v8 = vld [vmem:[%s4971_s18 + $0xa8] sm:$0xff]  ;;  %v5136_v21 = vld [vmem:[%s4971_s18 + $0xb8] sm:$0xff] }
  0x1d   : > { %4449 = vmatpush3.msra.mxu1 %v5056_v50  ;;  %v453_v35 = vadd.f32 %v452_v12, %v451_v56  ;;  %v473_v37 = vrot.slane %v472_v14, 1  ;;  %v493_v38 = vadd.f32 %v492_v15, %v491_v58  ;;  %v499_v39 = vrot.slane %v498_v17, 2  ;;  %v5120_v58 = vld [vmem:[%s4971_s18 + $0xa0] sm:$0xff]  ;;  %4512 = vmatprep.subr.mxu0 %v872_v34 }
  0x1e   : > { %4450 = vmatprep.subr.mxu1 %v5062_v55  ;;  %v460_v42 = vadd.f32 %v459_v26, %v458_v63  ;;  %v467_v43 = vadd.f32 %v466_v27, %v465_v5  ;;  %v480_v44 = vrot.slane %v479_v32, 1  ;;  %v487_v45 = vrot.slane %v486_v33, 1  ;;  %4513 = vmatpush3.msra.mxu0 %v872_v34 }
  0x1f   : > { %4451 = vmatpush3.msra.mxu1 %v5062_v55  ;;  %v474_v47 = vadd.f32 %v473_v37, %v472_v14  ;;  %v494_v48 = vrot.slane %v493_v38, 1  ;;  %v500_v49 = vadd.f32 %v499_v39, %v498_v17  ;;  %v503_v51 = vadd.f32 %v5074_v62, %v5071_v61 }
  0x20   : > { %4452 = vmatprep.subr.mxu1 %v5068_v60  ;;  %v481_v53 = vadd.f32 %v480_v44, %v479_v32  ;;  %v488_v54 = vadd.f32 %v487_v45, %v486_v33  ;;  %v510_v56 = vadd.f32 %v5084_v11, %v5081_v10  ;;  %v560_v57 = vmul.f32 0.0625, %v453_v35  ;;  %v5143_v35 = vld [vmem:[%s6838_s1] sm:$0xff] }
  0x21   : > { %4453 = vmatpush3.msra.mxu1 %v5068_v60  ;;  %v495_v59 = vadd.f32 %v494_v48, %v493_v38  ;;  %v501_v63 = vrot.slane %v500_v49, 1  ;;  %v504_v5 = vrot.slane %v503_v51, 4  ;;  %v561_v6 = vmul.f32 0.0625, %v460_v42  ;;  %6886 = vst [vmem:[#allocation2_spill] sm:$0xff] %v5143_v35 }
  0x22   : > { %4454 = vmatprep.subr.mxu1 %v5096_v25  ;;  %v511_v12 = vrot.slane %v510_v56, 4  ;;  %v562_v14 = vmul.f32 0.0625, %v467_v43  ;;  %v563_v15 = vmul.f32 0.0625, %v474_v47  ;;  %v564_v17 = vmul.f32 0.0625, %v481_v53  ;;  %v5162_v47 = vld [vmem:[%s4971_s18 + $0xc8] sm:$0xff]  ;;  %v5170_v53 = vld [vmem:[%s4971_s18 + $0xd8] sm:$0xff] }
  0x23   : > { %4455 = vmatpush3.msra.mxu1 %v5096_v25  ;;  %v502_v26 = vadd.f32 %v501_v63, %v500_v49  ;;  %v505_v27 = vadd.f32 %v504_v5, %v503_v51  ;;  %v565_v32 = vmul.f32 0.0625, %v488_v54  ;;  %v566_v33 = vmul.f32 0.0625, %v495_v59  ;;  %v5167_v51 = vld [vmem:[%s4971_s18 + $0xd0] sm:$0xff]  ;;  %v5178_v59 = vld [vmem:[%s4971_s18 + $0xe0] sm:$0xff]  ;;  %v5181_v63 = vld [vmem:[%s4971_s18 + $0xe8] sm:$0xff] }
  0x24   : > { %4456 = vmatprep.subr.mxu1 %v5107_v46  ;;  %v579_v37 = vadd.f32 %v5041_v40, %v5005_v19  ;;  %v592_v34 = vadd.f32 %v5019_v28, %v4992_v13  ;;  %v648_v38 = vsel %vm647_vm0, %v561_v6, %v560_v57  ;;  %v512_v39 = vadd.f32 %v511_v12, %v510_v56  ;;  %v5159_v40 = vld [vmem:[%s4971_s18 + $0xc0] sm:$0xff] }
  0x25   : > { %4457 = vmatpush3.msra.mxu1 %v5107_v46  ;;  %v567_v42 = vmul.f32 0.0625, %v502_v26  ;;  %v650_v43 = vsel %vm649_vm1, %v562_v14, %v648_v38  ;;  %v506_v44 = vrot.slane %v505_v27, 2  ;;  %v517_v45 = vadd.f32 %v5124_v8, %v5120_v58  ;;  %v5189_v26 = vld [vmem:[%s4971_s18 + $0xf0] sm:$0xff] }
  0x26   : > { %4458 = vmatprep.subr.mxu1 %v5115_v52  ;;  %v580_v19 = vadd.f32 %v579_v37, %v5013_v23  ;;  %v593_v13 = vadd.f32 %v592_v34, %v5002_v18  ;;  %v652_v28 = vsel %vm651_vm2, %v563_v15, %v650_v43  ;;  %v513_v48 = vrot.slane %v512_v39, 2 }
  0x27   : > { %4459 = vmatpush3.msra.mxu1 %v5115_v52  ;;  %v654_v49 = vsel %vm653_vm3, %v564_v17, %v652_v28  ;;  %v507_v23 = vadd.f32 %v506_v44, %v505_v27  ;;  %v518_v54 = vrot.slane %v517_v45, 4  ;;  %v524_v18 = vadd.f32 %v5136_v21, %v5133_v20 }
  0x28   : > { %4460 = vmatprep.subr.mxu1 %v5130_v9  ;;  %v581_v56 = vadd.f32 %v580_v19, %v5023_v29  ;;  %v656_v57 = vsel %vm655_vm4, %v565_v32, %v654_v49  ;;  %v514_v5 = vadd.f32 %v513_v48, %v512_v39  ;;  %v594_v17 = vadd.f32 %v593_v13, %v5010_v22  ;;  %v5192_v32 = vld [vmem:[%s4971_s18 + $0xf8] sm:$0xff] }
  0x29   : > { %4461 = vmatpush3.msra.mxu1 %v5130_v9  ;;  %v658_v6 = vsel %vm657_vm5, %v566_v33, %v656_v57  ;;  %v508_v12 = vrot.slane %v507_v23, 1  ;;  %v519_v14 = vadd.f32 %v518_v54, %v517_v45  ;;  %v525_v15 = vrot.slane %v524_v18, 4 }
  0x2a   : > { %4462 = vmatprep.subr.mxu1 %v5143_v35  ;;  %v660_v29 = vsel %vm659_vm6, %v567_v42, %v658_v6  ;;  %v515_v27 = vrot.slane %v514_v5, 1  ;;  %v531_v33 = vadd.f32 %v5162_v47, %v5159_v40  ;;  %v582_v39 = vadd.f32 %v581_v56, %v5029_v31 }
  0x2b   : > { %4463 = vmatpush3.msra.mxu1 %v5143_v35  ;;  %4464 = vmatprep.mubr.f32.mxu1 %v660_v29  ;;  %v509_v37 = vadd.f32 %v508_v12, %v507_v23  ;;  %v520_v34 = vrot.slane %v519_v14, 2  ;;  %v526_v38 = vadd.f32 %v525_v15, %v524_v18  ;;  %v538_v22 = vadd.f32 %v5170_v53, %v5167_v51 }
  0x2c   : > { %4467 = vmatprep.subr.mxu1 %v4936_v0  ;;  %v516_v43 = vadd.f32 %v515_v27, %v514_v5  ;;  %v532_v45 = vrot.slane %v531_v33, 4  ;;  %v545_v19 = vadd.f32 %v5181_v63, %v5178_v59  ;;  %v595_v13 = vadd.f32 %v594_v17, %v5016_v24 }
  0x2d   : > { %v521_v42 = vadd.f32 %v520_v34, %v519_v14  ;;  %v527_v44 = vrot.slane %v526_v38, 2  ;;  %v539_v28 = vrot.slane %v538_v22, 4  ;;  %v552_v48 = vadd.f32 %v5192_v32, %v5189_v26 }
  0x2e   : > { %v568_v49 = vmul.f32 0.0625, %v509_v37  ;;  %v533_v31 = vadd.f32 %v532_v45, %v531_v33  ;;  %v546_v18 = vrot.slane %v545_v19, 4  ;;  %v583_v56 = vadd.f32 %v582_v39, %v5071_v61 }
  0x2f   : > { %v522_v23 = vrot.slane %v521_v42, 1  ;;  %v528_v54 = vadd.f32 %v527_v44, %v526_v38  ;;  %v540_v57 = vadd.f32 %v539_v28, %v538_v22  ;;  %v553_v5 = vrot.slane %v552_v48, 4 }
  0x30   : > { %v569_v6 = vmul.f32 0.0625, %v516_v43  ;;  %v534_v15 = vrot.slane %v533_v31, 2  ;;  %v547_v29 = vadd.f32 %v546_v18, %v545_v19  ;;  %v596_v24 = vadd.f32 %v595_v13, %v5026_v30 }
  0x31   : > { %v523_v12 = vadd.f32 %v522_v23, %v521_v42  ;;  %v529_v14 = vrot.slane %v528_v54, 1  ;;  %v541_v17 = vrot.slane %v540_v57, 2  ;;  %v554_v27 = vadd.f32 %v553_v5, %v552_v48 }
  0x32   : > { %v661_v34 = vsel %vm647_vm0, %v569_v6, %v568_v49  ;;  %v535_v35 = vadd.f32 %v534_v15, %v533_v31  ;;  %v548_v38 = vrot.slane %v547_v29, 2  ;;  %v584_v61 = vadd.f32 %v583_v56, %v5081_v10 }
  0x33   : > { %v530_v37 = vadd.f32 %v529_v14, %v528_v54  ;;  %v570_v33 = vmul.f32 0.0625, %v523_v12  ;;  %v542_v44 = vadd.f32 %v541_v17, %v540_v57  ;;  %v555_v45 = vrot.slane %v554_v27, 2 }
  0x34   : > { %v536_v39 = vrot.slane %v535_v35, 1  ;;  %v549_v43 = vadd.f32 %v548_v38, %v547_v29  ;;  %v585_v30 = vadd.f32 %v584_v61, %v5120_v58  ;;  %v597_v13 = vadd.f32 %v596_v24, %v5037_v36  ;;  %v977_v38 = vld [vmem:[%s6844_s7 + $0x28] sm:$0xff] }
  0x35   : > { %v571_v22 = vmul.f32 0.0625, %v530_v37  ;;  %v662_v42 = vsel %vm649_vm1, %v570_v33, %v661_v34  ;;  %v543_v19 = vrot.slane %v542_v44, 1  ;;  %v556_v28 = vadd.f32 %v555_v45, %v554_v27  ;;  %v980_v27 = vld [vmem:[%s6844_s7 + $0x40] sm:$0xff]  ;;  %v979_v34 = vld [vmem:[%s6844_s7 + $0x38] sm:$0xff]  ;;  %v978_v37 = vld [vmem:[%s6844_s7 + $0x30] sm:$0xff] }
  0x36   : > { %v537_v48 = vadd.f32 %v536_v39, %v535_v35  ;;  %v550_v49 = vrot.slane %v549_v43, 1  ;;  %v586_v18 = vadd.f32 %v585_v30, %v5133_v20  ;;  %v598_v12 = vadd.f32 %v597_v13, %v5074_v62  ;;  %v976_v33 = vld [vmem:[%s6844_s7 + $0x20] sm:$0xff]  ;;  %v974_v45 = vld [vmem:[%s6844_s7 + $0x10] sm:$0xff]  ;;  %v973_v61 = vld [vmem:[%s6844_s7 + $0x8] sm:$0xff] }
  0x37   : > { %v544_v23 = vadd.f32 %v543_v19, %v542_v44  ;;  %v557_v54 = vrot.slane %v556_v28, 1  ;;  %v663_v31 = vsel %vm651_vm2, %v571_v22, %v662_v42  ;;  %v975_v44 = vld [vmem:[%s6844_s7 + $0x18] sm:$0xff]  ;;  %v972_v39 = vld [vmem:[%s6844_s7] sm:$0xff] }
  0x38   : > { %v551_v10 = vadd.f32 %v550_v49, %v549_v43  ;;  %v572_v56 = vmul.f32 0.0625, %v537_v48  ;;  %v587_v6 = vadd.f32 %v586_v18, %v5159_v40  ;;  %v599_v17 = vadd.f32 %v598_v12, %v5084_v11  ;;  %v867_v11 = vld [vmem:[%s6842_s5 + $0x28] sm:$0xff]  ;;  %v3585_v43 = vld [vmem:[%s6839_s2] ss:$0 sm:$0xff] }
  0x39   : > { %v558_v57 = vadd.f32 %v557_v54, %v556_v28  ;;  %v573_v5 = vmul.f32 0.0625, %v544_v23  ;;  %v3586_v42 = vld [vmem:[%s6840_s3] ss:$0 sm:$0xff] }
  0x3a   : > { %v574_v14 = vmul.f32 0.0625, %v551_v10  ;;  %v664_v58 = vsel %vm653_vm3, %v572_v56, %v663_v31  ;;  %v588_v15 = vadd.f32 %v587_v6, %v5167_v51  ;;  %v600_v51 = vadd.f32 %v599_v17, %v5124_v8  ;;  %v863_v8 = vld [vmem:[%s6842_s5 + $0x8] sm:$0xff]  ;;  %v3587_v28 = vld [vmem:[%s6841_s4] ss:$0 sm:$0xff] }
  0x3b   : > { %v575_v36 = vmul.f32 0.0625, %v558_v57  ;;  %v665_v35 = vsel %vm655_vm4, %v573_v5, %v664_v58 }
  0x3c   : > { %v666_v29 = vsel %vm657_vm5, %v574_v14, %v665_v35  ;;  %v589_v24 = vadd.f32 %v588_v15, %v5178_v59  ;;  %v984_v59 = vld [vmem:[%s6844_s7 + $0x60] sm:$0xff] }
  0x3d   : > { %v667_v20 = vsel %vm659_vm6, %v575_v36, %v666_v29 }
  0x3e   : > { %4465 = vmatmul.mubr.f32.vlgmr.msra.gmra.mxu1 %v667_v20  ;;  %v590_v62 = vadd.f32 %v589_v24, %v5189_v26  ;;  %v982_v26 = vld [vmem:[%s6844_s7 + $0x50] sm:$0xff] }
  0x3f   : > { %4468 = vmatpush3.msra.mxu1 %v4936_v0  ;;  %v601_v0 = vadd.f32 %v600_v51, %v5136_v21  ;;  %v987_v21 = vld [vmem:[%s6844_s7 + $0x78] sm:$0xff] }
  0x40   : > { %4469 = vmatprep.subr.mxu1 %v4941_v1  ;;  %v606_v40 = vmul.f32 0.0625, %v590_v62 }
  0x41   : > { %4470 = vmatpush3.msra.mxu1 %v4941_v1  ;;  %v602_v1 = vadd.f32 %v601_v0, %v5162_v47  ;;  %v986_v47 = vld [vmem:[%s6844_s7 + $0x70] sm:$0xff] }
  0x42   : > { %4471 = vmatprep.subr.mxu1 %v4948_v2  ;;  %4499 = vmatprep.mubr.f32.mxu1 %v606_v40 }
  0x43   : > { %4472 = vmatpush3.msra.mxu1 %v4948_v2  ;;  %v603_v2 = vadd.f32 %v602_v1, %v5170_v53  ;;  %v985_v53 = vld [vmem:[%s6844_s7 + $0x68] sm:$0xff] }
  0x44   : > { %4473 = vmatprep.subr.mxu1 %v4957_v3 }
  0x45   : > { %4474 = vmatpush3.msra.mxu1 %v4957_v3  ;;  %v604_v3 = vadd.f32 %v603_v2, %v5181_v63  ;;  %v983_v63 = vld [vmem:[%s6844_s7 + $0x58] sm:$0xff] }
  0x46   : > { %4475 = vmatprep.subr.mxu1 %v4964_v4 }
  0x47   : > { %4476 = vmatpush3.msra.mxu1 %v4964_v4  ;;  %v605_v4 = vadd.f32 %v604_v3, %v5192_v32  ;;  %v981_v32 = vld [vmem:[%s6844_s7 + $0x48] sm:$0xff] }
  0x48   : > { %4477 = vmatprep.subr.mxu1 %v4983_v7 }
  0x49   : > { %4478 = vmatpush3.msra.mxu1 %v4983_v7  ;;  %v607_v7 = vmul.f32 0.0625, %v605_v4 }
  0x4a   : > { %4479 = vmatprep.subr.mxu1 %v4998_v16 }
  0x4b   : > { %4480 = vmatpush3.msra.mxu1 %v4998_v16  ;;  %v6887_v16 = vld [vmem:[#allocation2_spill] sm:$0xff] }
  0x4c   : > { %4481 = vmatprep.subr.mxu1 %v5047_v41 }
  0x4d   : > { %4482 = vmatpush3.msra.mxu1 %v5047_v41  ;;  %v871_v41 = vld [vmem:[%s6842_s5 + $0x48] sm:$0xff] }
  0x4e   : > { %4483 = vmatprep.subr.mxu1 %v5056_v50  ;;  %4514 = vmatprep.subr.mxu0 %v871_v41 }
  0x4f   : > { %4484 = vmatpush3.msra.mxu1 %v5056_v50  ;;  %4515 = vmatpush3.msra.mxu0 %v871_v41  ;;  %v870_v50 = vld [vmem:[%s6842_s5 + $0x40] sm:$0xff] }
  0x50   : > { %4485 = vmatprep.subr.mxu1 %v5062_v55  ;;  %4516 = vmatprep.subr.mxu0 %v870_v50 }
  0x51   : > { %4486 = vmatpush3.msra.mxu1 %v5062_v55  ;;  %4517 = vmatpush3.msra.mxu0 %v870_v50  ;;  %v869_v55 = vld [vmem:[%s6842_s5 + $0x38] sm:$0xff] }
  0x52   : > { %4487 = vmatprep.subr.mxu1 %v5068_v60  ;;  %4518 = vmatprep.subr.mxu0 %v869_v55  ;;  %v4728_v50 = vld [vmem:[%s6846_s9 + $0x138] sm:$0xff]  }
  0x53   : > { %4488 = vmatpush3.msra.mxu1 %v5068_v60  ;;  %4519 = vmatpush3.msra.mxu0 %v869_v55  ;;  %v868_v60 = vld [vmem:[%s6842_s5 + $0x30] sm:$0xff]  ;;  %v4730_v55 = vld [vmem:[%s6846_s9 + $0x178] sm:$0xff]  }
  0x54   : > { %4489 = vmatprep.subr.mxu1 %v5096_v25  ;;  %4520 = vmatprep.subr.mxu0 %v868_v60 }
  0x55   : > { %4490 = vmatpush3.msra.mxu1 %v5096_v25  ;;  %4521 = vmatpush3.msra.mxu0 %v868_v60  ;;  %v866_v25 = vld [vmem:[%s6842_s5 + $0x20] sm:$0xff]  ;;  %v4729_v60 = vld [vmem:[%s6846_s9 + $0xf8] sm:$0xff]  }
  0x56   : > { %4491 = vmatprep.subr.mxu1 %v5107_v46  ;;  %4522 = vmatprep.subr.mxu0 %v867_v11 }
  0x57   : > { %4492 = vmatpush3.msra.mxu1 %v5107_v46  ;;  %4523 = vmatpush3.msra.mxu0 %v867_v11  ;;  %v865_v46 = vld [vmem:[%s6842_s5 + $0x18] sm:$0xff]  ;;  %v4731_v11 = vld [vmem:[%s6846_s9 + $0x130] sm:$0xff]  }
  0x58   : > { %4493 = vmatprep.subr.mxu1 %v5115_v52  ;;  %4524 = vmatprep.subr.mxu0 %v866_v25 }
  0x59   : > { %4494 = vmatpush3.msra.mxu1 %v5115_v52  ;;  %4525 = vmatpush3.msra.mxu0 %v866_v25  ;;  %v864_v52 = vld [vmem:[%s6842_s5 + $0x10] sm:$0xff] }
  0x5a   : > { %4495 = vmatprep.subr.mxu1 %v5130_v9  ;;  %4526 = vmatprep.subr.mxu0 %v865_v46  ;;  %v4733_v25 = vld [vmem:[%s6846_s9 + $0x170] sm:$0xff]  }
  0x5b   : > { %4496 = vmatpush3.msra.mxu1 %v5130_v9  ;;  %4527 = vmatpush3.msra.mxu0 %v865_v46  ;;  %v862_v9 = vld [vmem:[%s6842_s5] sm:$0xff]  ;;  %v4732_v46 = vld [vmem:[%s6846_s9 + $0xf0] sm:$0xff]  }
  0x5c   : > { %4497 = vmatprep.subr.mxu1 %v6887_v16  ;;  %4528 = vmatprep.subr.mxu0 %v864_v52 }
  0x5d   : > { %4498 = vmatpush3.msra.mxu1 %v6887_v16  ;;  %4529 = vmatpush3.msra.mxu0 %v864_v52  ;;  %v4734_v52 = vld [vmem:[%s6846_s9 + $0x128] sm:$0xff]  }
  0x5e   : > { %4500 = vmatmul.mubr.f32.vlgmr.msra.gmra.mxu1 %v607_v7  ;;  %4530 = vmatprep.subr.mxu0 %v863_v8 }
  0x5f   : > { %4531 = vmatpush3.msra.mxu0 %v863_v8  ;;  %4537 = vmatprep.subr.mxu1 %v987_v21  ;;  %v4736_v8 = vld [vmem:[%s6846_s9 + $0x168] sm:$0xff]  }
  0x60   : > { %4532 = vmatprep.subr.mxu0 %v862_v9  ;;  %4538 = vmatpush3.msra.mxu1 %v987_v21  ;;  %v4737_v21 = vld [vmem:[%s6846_s9 + $0x120] sm:$0xff]  }
  0x61   : > { %4533 = vmatpush3.msra.mxu0 %v862_v9  ;;  %4539 = vmatprep.subr.mxu1 %v986_v47  ;;  %v4735_v9 = vld [vmem:[%s6846_s9 + $0xe8] sm:$0xff]  }
  0x62   : > { %4540 = vmatpush3.msra.mxu1 %v986_v47  ;;  %4024 = vmatprep.subr.bf16.mxu0 %v4728_v50  ;;  %v4739_v47 = vld [vmem:[%s6846_s9 + $0x160] sm:$0xff]  }
  0x63   : > { %4541 = vmatprep.subr.mxu1 %v985_v53 }
  0x64   : > { %4542 = vmatpush3.msra.mxu1 %v985_v53  ;;  %v4738_v53 = vld [vmem:[%s6846_s9 + $0xe0] sm:$0xff]  }
  0x65   : > { %4543 = vmatprep.subr.mxu1 %v984_v59 }
  0x66   : > { %4544 = vmatpush3.msra.mxu1 %v984_v59  ;;  %v4740_v59 = vld [vmem:[%s6846_s9 + $0x118] sm:$0xff]  }
  0x67   : > { %4545 = vmatprep.subr.mxu1 %v983_v63 }
  0x68   : > { %4546 = vmatpush3.msra.mxu1 %v983_v63  ;;  %v4742_v63 = vld [vmem:[%s6846_s9 + $0x158] sm:$0xff]  }
  0x69   : > { %4547 = vmatprep.subr.mxu1 %v982_v26 }
  0x6a   : > { %4548 = vmatpush3.msra.mxu1 %v982_v26  ;;  %v4741_v26 = vld [vmem:[%s6846_s9 + $0xd8] sm:$0xff]  }
  0x6b   : > { %4549 = vmatprep.subr.mxu1 %v981_v32 }
  0x6c   : > { %4550 = vmatpush3.msra.mxu1 %v981_v32  ;;  %v4743_v32 = vld [vmem:[%s6846_s9 + $0x110] sm:$0xff]  }
  0x6d   : > { %4551 = vmatprep.subr.mxu1 %v980_v27 }
  0x6e   : > { %4552 = vmatpush3.msra.mxu1 %v980_v27  ;;  %v4745_v27 = vld [vmem:[%s6846_s9 + $0x150] sm:$0xff]  }
  0x6f   : > { %4553 = vmatprep.subr.mxu1 %v979_v34 }
  0x70   : > { %4554 = vmatpush3.msra.mxu1 %v979_v34  ;;  %v4744_v34 = vld [vmem:[%s6846_s9 + $0xd0] sm:$0xff]  }
  0x71   : > { %4555 = vmatprep.subr.mxu1 %v978_v37 }
  0x72   : > { %4556 = vmatpush3.msra.mxu1 %v978_v37  ;;  %v4746_v37 = vld [vmem:[%s6846_s9 + $0x108] sm:$0xff]  }
  0x73   : > { %4557 = vmatprep.subr.mxu1 %v977_v38 }
  0x74   : > { %4558 = vmatpush3.msra.mxu1 %v977_v38  ;;  %v4748_v38 = vld [vmem:[%s6846_s9 + $0x148] sm:$0xff]  }
  0x75   : > { %4559 = vmatprep.subr.mxu1 %v976_v33 }
  0x76   : > { %4560 = vmatpush3.msra.mxu1 %v976_v33  ;;  %v4747_v33 = vld [vmem:[%s6846_s9 + $0xc8] sm:$0xff]  }
  0x77   : > { %4561 = vmatprep.subr.mxu1 %v975_v44 }
  0x78   : > { %4562 = vmatpush3.msra.mxu1 %v975_v44  ;;  %v4749_v44 = vld [vmem:[%s6846_s9 + $0x100] sm:$0xff]  }
  0x79   : > { %4563 = vmatprep.subr.mxu1 %v974_v45 }
  0x7a   : > { %4564 = vmatpush3.msra.mxu1 %v974_v45  ;;  %v4751_v45 = vld [vmem:[%s6846_s9 + $0x140] sm:$0xff]  }
  0x7b   : > { %4565 = vmatprep.subr.mxu1 %v973_v61 }
  0x7c   : > { %4566 = vmatpush3.msra.mxu1 %v973_v61  ;;  %v4750_v61 = vld [vmem:[%s6846_s9 + $0xc0] sm:$0xff]  }
  0x7d   : > { %4567 = vmatprep.subr.mxu1 %v972_v39 }
  0x7e   : > { %4568 = vmatpush3.msra.mxu1 %v972_v39  ;;  %v5423_v39 = vld [vmem:[%s6846_s9 + $0xb8] sm:$0xff]  }
  0x7f   : > { %4572 = vmatprep.subr.bf16.mxu1 %v4730_v55 }
  0xfe   : > { %v4466_v22 = vpop.f32.mrf.mxu1 }
  0xff   : > { %v742_v19 = vadd.f32 %v4466_v22, %v3585_v43  ;;  %v3588_v22 = vld [vmem:[%s6843_s6] ss:$0 sm:$0xff] }
 0x100   : > { %v736_v30 = vpop.f32.mrf.mxu1 }
 0x101   : > { %v753_v13 = vmul.f32 %v3586_v42, %v742_v19  ;;  %v737_v48 = vadd.f32 %v3585_v43, %v736_v30 }
 0x103   : > { %v762_v49 = vadd.f32 %v3587_v28, %v753_v13  ;;  %v752_v23 = vmul.f32 %v3586_v42, %v737_v48 }
 0x105   : > { %v764_v54 = vadd.f32 3.0, %v762_v49  ;;  %v761_v31 = vadd.f32 %v3587_v28, %v752_v23 }
 0x107   : > { %v763_v18 = vadd.f32 3.0, %v761_v31  ;;  %v766_v10 = vmax.f32 %v764_v54, 0.0 }
 0x109   : > { %v765_v56 = vmax.f32 %v763_v18, 0.0  ;;  %v768_v57 = vmin.f32 %v766_v10, 6.0  ;;  %v4856_v18 = vmov 1966171168  }
 0x10a   : > { %v1086_v10 = vunpack.c.l.s4 %v4856_v18 }
 0x10b   : > { %v767_v5 = vmin.f32 %v765_v56, 6.0  ;;  %v770_v6 = vmul.f32 %v768_v57, %v762_v49  ;;  %v1088_v56 = vlaneseq  ;;  %v3591_v57 = vld [vmem:[%s6845_s8] ss:$0 sm:$0xff] }
 0x10d   : > { %v769_v12 = vmul.f32 %v767_v5, %v761_v31  ;;  %v772_v58 = vmul.f32 0.16666667, %v770_v6 }
 0x10f   : > { %v771_v14 = vmul.f32 0.16666667, %v769_v12  ;;  %v1087_v12 = vunpack.c.0.s8 %v1086_v10  ;;  %v4821_v10 = vld [vmem:[%s4971_s18 + $0x18] sm:$0xff] }
 0x111   : > { %4534 = vmatprep.mubr.f32.mxu0 %v771_v14  ;;  %v1089_v14 = vshrl.u32 %v1088_v56, 7 }
 0x112   : > { %4535 = vmatmul.mubr.f32.vlgmr.msra.gmra.mxu0 %v772_v58 }
 0x113   : > { %4025 = vmatpush3.bf16.msra.mxu0 %v4729_v60 }
 0x114   : > { %4026 = vmatprep.subr.bf16.mxu0 %v4731_v11 }
 0x117   : > { %4027 = vmatpush3.bf16.msra.mxu0 %v4732_v46 }
 0x118   : > { %4028 = vmatprep.subr.bf16.mxu0 %v4734_v52 }
 0x11b   : > { %4029 = vmatpush3.bf16.msra.mxu0 %v4735_v9 }
 0x11c   : > { %4030 = vmatprep.subr.bf16.mxu0 %v4737_v21 }
 0x11e   : > { %v4501_v36 = vpop.f32.mrf.mxu1 }
 0x11f   : > { %v845_v35 = vadd.f32 %v4501_v36, %v3585_v43  ;;  %4031 = vmatpush3.bf16.msra.mxu0 %v4738_v53 }
 0x120   : > { %v839_v15 = vpop.f32.mrf.mxu1  ;;  %4032 = vmatprep.subr.bf16.mxu0 %v4740_v59  ;;  %v6852_v59 = vmov 0.0  }
 0x121   : > { %v849_v29 = vmul.f32 %v3586_v42, %v845_v35  ;;  %v840_v20 = vadd.f32 %v3585_v43, %v839_v15  ;;  %v4755_v43 = vld [vmem:[%s6846_s9 + $0x78] sm:$0xff]  }
 0x123   : > { %v851_v24 = vadd.f32 %v3587_v28, %v849_v29  ;;  %v848_v17 = vmul.f32 %v3586_v42, %v840_v20  ;;  %4033 = vmatpush3.bf16.msra.mxu0 %v4741_v26  ;;  %v1090_v20 = vsub.s32 %v1087_v12, %v1089_v14 }
 0x124   : > { %4034 = vmatprep.subr.bf16.mxu0 %v4743_v32 }
 0x125   : > { %v853_v62 = vadd.f32 3.0, %v851_v24  ;;  %v850_v40 = vadd.f32 %v3587_v28, %v848_v17 }
 0x127   : > { %v855_v51 = vmax.f32 %v853_v62, 0.0  ;;  %v852_v0 = vadd.f32 3.0, %v850_v40  ;;  %4035 = vmatpush3.bf16.msra.mxu0 %v4744_v34 }
 0x128   : > { %4036 = vmatprep.subr.bf16.mxu0 %v4746_v37  ;;  %v4816_v37 = vld [vmem:[%s4971_s18 + $0x80] sm:$0xff] }
 0x129   : > { %v857_v1 = vmin.f32 %v855_v51, 6.0  ;;  %v854_v2 = vmax.f32 %v852_v0, 0.0 }
 0x12b   : > { %v856_v3 = vmin.f32 %v854_v2, 6.0  ;;  %v859_v4 = vmul.f32 %v857_v1, %v851_v24  ;;  %4037 = vmatpush3.bf16.msra.mxu0 %v4747_v33  ;;  %v5435_v2 = vsub.s32 0, %v1089_v14  ;;  %v4823_v14 = vld [vmem:[%s4971_s18 + $0x28] sm:$0xff] }
 0x12c   : > { %4038 = vmatprep.subr.bf16.mxu0 %v4749_v44 }
 0x12d   : > { %v858_v7 = vmul.f32 %v856_v3, %v850_v40  ;;  %v861_v41 = vmul.f32 0.16666667, %v859_v4 }
 0x12f   : > { %v860_v16 = vmul.f32 0.16666667, %v858_v7  ;;  %4039 = vmatpush3.bf16.msra.mxu0 %v4750_v61 }
 0x130   : > { %4620 = vmatprep.subr.bf16.mxu0 %v5423_v39 }
 0x131   : > { %4569 = vmatprep.mubr.f32.mxu1 %v860_v16 }
 0x132   : > { %4570 = vmatmul.mubr.f32.vlgmr.msra.gmra.mxu1 %v861_v41 }
 0x133   : > { %4573 = vmatpush3.bf16.msra.mxu1 %v4730_v55 }
 0x134   : > { %4574 = vmatprep.subr.bf16.mxu1 %v4733_v25 }
 0x137   : > { %4575 = vmatpush3.bf16.msra.mxu1 %v4733_v25 }
 0x138   : > { %4576 = vmatprep.subr.bf16.mxu1 %v4736_v8 }
 0x13b   : > { %4577 = vmatpush3.bf16.msra.mxu1 %v4736_v8 }
 0x13c   : > { %4578 = vmatprep.subr.bf16.mxu1 %v4739_v47 }
 0x13f   : > { %4579 = vmatpush3.bf16.msra.mxu1 %v4739_v47 }
 0x140   : > { %4580 = vmatprep.subr.bf16.mxu1 %v4742_v63 }
 0x143   : > { %4581 = vmatpush3.bf16.msra.mxu1 %v4742_v63  ;;  %v5440_v63 = vrot.slane %v6852_v59, 1 }
 0x144   : > { %4582 = vmatprep.subr.bf16.mxu1 %v4745_v27 }
 0x147   : > { %4583 = vmatpush3.bf16.msra.mxu1 %v4745_v27 }
 0x148   : > { %4584 = vmatprep.subr.bf16.mxu1 %v4748_v38 }
 0x14b   : > { %4585 = vmatpush3.bf16.msra.mxu1 %v4748_v38 }
 0x14c   : > { %4586 = vmatprep.subr.bf16.mxu1 %v4751_v45 }
 0x14f   : > { %4587 = vmatpush3.bf16.msra.mxu1 %v4751_v45 }
 0x150   : > { %4160 = vmatprep.subr.bf16.mxu1 %v4755_v43 }
 0x1d2   : > { %v4536_v42 = vpop.f32.mrf.mxu0 }
 0x1d3   : > { %v957_v19 = vadd.f32 %v4536_v42, %v3588_v22 }
 0x1d4   : > { %v951_v28 = vpop.f32.mrf.mxu0 }
 0x1d5   : > { %v3590_v30 = vmul.f32 -1.442695, %v957_v19  ;;  %v952_v13 = vadd.f32 %v3588_v22, %v951_v28  ;;  %v4817_v22 = vld [vmem:[%s4971_s18] sm:$0xff]  ;;  %v4818_v19 = vld [vmem:[%s4971_s18 + $0x8] sm:$0xff] }
 0x1d7   : > { %v3589_v48 = vmul.f32 -1.442695, %v952_v13  ;;  %4800 = vpow2.f32 %v3590_v30  ;;  %v4819_v30 = vld [vmem:[%s4971_s18 + $0x88] sm:$0xff] }
 0x1d9   : > { %4802 = vpow2.f32 %v3589_v48 }
 0x1e4   : > { %v4801_v49 = vpop.eup %4800 }
 0x1e5   : > { %v967_v31 = vadd.f32 1.0, %v4801_v49  ;;  %v4820_v49 = vld [vmem:[%s4971_s18 + $0x10] sm:$0xff] }
 0x1e6   : > { %v4803_v23 = vpop.eup %4802 }
 0x1e7   : > { %v966_v54 = vadd.f32 1.0, %v4803_v23 }
 0x1e9   : > { %4804 = vrcp.f32 %v966_v54 }
 0x1ea   : > { %4806 = vrcp.f32 %v967_v31 }
 0x1f2   : > { %v4571_v5 = vpop.f32.mrf.mxu1 }
 0x1f3   : > { %v1067_v6 = vadd.f32 %v4571_v5, %v3591_v57 }
 0x1f4   : > { %v1061_v58 = vpop.f32.mrf.mxu1 }
 0x1f5   : > { %v3593_v36 = vmul.f32 -1.442695, %v1067_v6  ;;  %v1062_v35 = vadd.f32 %v3591_v57, %v1061_v58  ;;  %v4822_v57 = vld [vmem:[%s4971_s18 + $0x20] sm:$0xff] }
 0x1f6   : > { %v4805_v15 = vpop.eup %4804 }
 0x1f7   : > { %4808 = vpow2.f32 %v3593_v36  ;;  %v3592_v29 = vmul.f32 -1.442695, %v1062_v35  ;;  %v4807_v24 = vpop.eup %4806  ;;  %v1084_v17 = vcombine.high %v4805_v15, %v4805_v15  ;;  %v1091_v62 = vrot.slane %v4805_v15, %v1090_v20  ;;  %v4824_v36 = vld [vmem:[%s4971_s18 + $0x40] sm:$0xff] }
 0x1f8   : > { %v1133_v40 = vcombine.high %v4807_v24, %v4807_v24  ;;  %v1140_v51 = vrot.slane %v4807_v24, %v1090_v20 }
 0x1f9   : > { %4810 = vpow2.f32 %v3592_v29  ;;  %v1098_v0 = vrot.slane %v1084_v17, %v1090_v20  ;;  %v1099_v1 = vcombine.high %v1091_v62, %v1091_v62  ;;  %v1107_v3 = vrot.slane %v1091_v62, %v1090_v20  ;;  %v4826_v17 = vld [vmem:[%s4971_s18 + $0x90] sm:$0xff] }
 0x1fa   : > { %v1156_v4 = vrot.slane %v1140_v51, %v1090_v20  ;;  %v1147_v7 = vrot.slane %v1133_v40, %v1090_v20  ;;  %v1148_v41 = vcombine.high %v1140_v51, %v1140_v51 }
 0x1fb   : > { %v1100_v16 = vcombine.high %v1098_v0, %v1098_v0  ;;  %v1121_v50 = vrot.slane %v1099_v1, %v1090_v20  ;;  %v1129_v60 = vcombine.high %v1107_v3, %v1107_v3  ;;  %v1114_v52 = vrot.slane %v1098_v0, %v1090_v20  ;;  %v4827_v0 = vld [vmem:[%s4971_s18 + $0x30] sm:$0xff] }
 0x1fc   : > { %v1217_v11 = vrot.slane %v1156_v4, %v5435_v2  ;;  %v1149_v25 = vcombine.high %v1147_v7, %v1147_v7  ;;  %v1185_v21 = vrot.slane %v1107_v3, %v5435_v2  ;;  %v1170_v47 = vrot.slane %v1148_v41, %v1090_v20  ;;  %v4828_v3 = vld [vmem:[%s4971_s18 + $0x98] sm:$0xff] }
 0x1fd   : > { %v1128_v8 = vrot.slane %v1100_v16, %v1090_v20  ;;  %v1163_v53 = vrot.slane %v1147_v7, %v1090_v20  ;;  %v1189_v32 = vrot.slane %v1121_v50, %v5435_v2  ;;  %v1131_v27 = vcombine.high %v1121_v50, %v1121_v50  ;;  %v4829_v41 = vld [vmem:[%s4971_s18 + $0x38] sm:$0xff] }
 0x1fe   : > { %v1193_v34 = vrot.slane %v1129_v60, %v5435_v2  ;;  %v5445_v38 = vmul.f32 %v4816_v37, %v1217_v11  ;;  %v1178_v33 = vcombine.high %v1156_v4, %v1156_v4  ;;  %v1177_v44 = vrot.slane %v1149_v25, %v1090_v20  ;;  %v4825_v20 = vld [vmem:[%s4971_s18 + $0x48] sm:$0xff] }
 0x1ff   : > { %v1201_v45 = vrot.slane %v1114_v52, %v5435_v2  ;;  %v1130_v61 = vcombine.high %v1114_v52, %v1114_v52  ;;  %v1132_v43 = vcombine.high %v1128_v8, %v1128_v8  ;;  %v5449_v42 = vmul.f32 %v4817_v22, %v1185_v21  ;;  %v4840_v22 = vld [vmem:[%s4971_s18 + $0xb8] sm:$0xff] }
 0x200   : > { %v5452_v28 = vmul.f32 %v4818_v19, %v1185_v21  ;;  %v5455_v13 = vmul.f32 %v4819_v30, %v1217_v11  ;;  %v1221_v48 = vrot.slane %v1170_v47, %v5435_v2  ;;  %v5459_v23 = vmul.f32 %v4820_v49, %v1189_v32  ;;  %v4833_v21 = vld [vmem:[%s4971_s18 + $0x68] sm:$0xff]  ;;  %v4842_v49 = vld [vmem:[%s4971_s18 + $0xe0] sm:$0xff] }
 0x201   : > { %v1197_v54 = vrot.slane %v1131_v27, %v5435_v2  ;;  %v1180_v31 = vcombine.high %v1170_v47, %v1170_v47  ;;  %v1179_v18 = vcombine.high %v1163_v53, %v1163_v53  ;;  %v5463_v56 = vmul.f32 %v4821_v10, %v1189_v32  ;;  %v4835_v32 = vld [vmem:[%s4971_s18 + $0x78] sm:$0xff]  ;;  %v4841_v30 = vld [vmem:[%s4971_s18 + $0xc8] sm:$0xff] }
 0x202   : > { %v5466_v5 = vmul.f32 %v4822_v57, %v1193_v34  ;;  %v1205_v6 = vrot.slane %v1128_v8, %v5435_v2  ;;  %v1181_v12 = vcombine.high %v1177_v44, %v1177_v44  ;;  %v1267_v58 = vmul.f32 %v4823_v14, %v1193_v34  ;;  %v4832_v8 = vld [vmem:[%s4971_s18 + $0x60] sm:$0xff]  ;;  %v4844_v57 = vld [vmem:[%s4971_s18 + $0xd8] sm:$0xff] }
 0x203   : > { %v5471_v35 = vmul.f32 %v4824_v36, %v1201_v45  ;;  %v1209_v15 = vrot.slane %v1130_v61, %v5435_v2  ;;  %v1213_v29 = vrot.slane %v1132_v43, %v5435_v2  ;;  %v1271_v24 = vmul.f32 %v4825_v20, %v1201_v45  ;;  %v4836_v34 = vld [vmem:[%s4971_s18 + $0xa0] sm:$0xff]  ;;  %v4839_v61 = vld [vmem:[%s4971_s18 + $0xb0] sm:$0xff] }
 0x204   : > { %v4809_v55 = vpop.eup %4808  ;;  %v5477_v62 = vmul.f32 %v4826_v17, %v1221_v48  ;;  %v1225_v40 = vrot.slane %v1178_v33, %v5435_v2  ;;  %v1233_v51 = vrot.slane %v1163_v53, %v5435_v2  ;;  %v1268_v1 = vmul.f32 %v4827_v0, %v1197_v54  ;;  %v4834_v53 = vld [vmem:[%s4971_s18 + $0x70] sm:$0xff] }
 0x205   : > { %v1077_v46 = vadd.f32 1.0, %v4809_v55  ;;  %v5483_v4 = vmul.f32 %v4828_v3, %v1221_v48  ;;  %v1229_v7 = vrot.slane %v1180_v31, %v5435_v2  ;;  %v1241_v16 = vrot.slane %v1179_v18, %v5435_v2  ;;  %v4830_v55 = vld [vmem:[%s4971_s18 + $0x50] sm:$0xff] }
 0x206   : > { %v4811_v9 = vpop.eup %4810  ;;  %v1269_v50 = vmul.f32 %v4829_v41, %v1197_v54  ;;  %v5489_v60 = vmul.f32 %v4830_v55, %v1205_v6  ;;  %v1237_v11 = vrot.slane %v1177_v44, %v5435_v2  ;;  %v1245_v25 = vrot.slane %v1181_v12, %v5435_v2  ;;  %v4837_v2 = vld [vmem:[%s4971_s18 + $0xa8] sm:$0xff]  ;;  %v4838_v44 = vld [vmem:[%s4971_s18 + $0xc0] sm:$0xff]  ;;  %v4843_v18 = vld [vmem:[%s4971_s18 + $0xd0] sm:$0xff] }
 0x207   : > { %4812 = vrcp.f32 %v1077_v46  ;;  %v1076_v26 = vadd.f32 1.0, %v4811_v9  ;;  %v4831_v46 = vld [vmem:[%s4971_s18 + $0x58] sm:$0xff]  ;;  %v5495_v9 = vmul.f32 %v4832_v8, %v1209_v15  ;;  %v1275_v47 = vmul.f32 %v4833_v21, %v1209_v15  ;;  %v4845_v12 = vld [vmem:[%s4971_s18 + $0xe8] sm:$0xff]  ;;  %v4846_v36 = vld [vmem:[%s4971_s18 + $0xf0] sm:$0xff] }
 0x208   : > { %v1273_v52 = vmul.f32 %v4831_v46, %v1205_v6  ;;  %v5502_v27 = vmul.f32 %v4835_v32, %v1213_v29  ;;  %v5505_v37 = vmul.f32 %v4836_v34, %v1225_v40  ;;  %v5508_v33 = vmul.f32 %v4837_v2, %v1225_v40 }
 0x209   : > { %4814 = vrcp.f32 %v1076_v26  ;;  %v5499_v26 = vmul.f32 %v4834_v53, %v1213_v29  ;;  %v5511_v45 = vmul.f32 %v4838_v44, %v1233_v51  ;;  %v5514_v43 = vmul.f32 %v4839_v61, %v1229_v7 }
 0x20a   : > { %v5517_v19 = vmul.f32 %v4840_v22, %v1229_v7  ;;  %v5520_v48 = vmul.f32 %v4841_v30, %v1233_v51  ;;  %v5523_v54 = vmul.f32 %v4842_v49, %v1241_v16  ;;  %v5528_v10 = vmul.f32 %v4843_v18, %v1237_v11 }
 0x20b   : > { %v5531_v6 = vmul.f32 %v4844_v57, %v1237_v11  ;;  %v5534_v14 = vmul.f32 %v4845_v12, %v1241_v16  ;;  %v5537_v15 = vmul.f32 %v4846_v36, %v1245_v25 }
 0x214   : > { %v5525_v31 = vpop.eup %4812 }
 0x215   : > { %v1295_v29 = vmul.f32 %v5525_v31, %v5452_v28  ;;  %v1297_v20 = vmul.f32 %v5525_v31, %v5463_v56  ;;  %v5544_v17 = vmul.f32 %v5525_v31, %v1267_v58  ;;  %v5547_v40 = vmul.f32 %v5525_v31, %v1269_v50  ;;  %v4847_v28 = vld [vmem:[%s4971_s18 + $0xf8] sm:$0xff] }
 0x216   : > { %v5549_v51 = vpop.eup %4814  ;;  %v5552_v0 = vmul.f32 %v5525_v31, %v1271_v24  ;;  %v5555_v3 = vmul.f32 %v5525_v31, %v1273_v52  ;;  %v5558_v7 = vmul.f32 %v5525_v31, %v1275_v47  ;;  %v5561_v16 = vmul.f32 %v4847_v28, %v1245_v25 }
 0x217   : > { %v1294_v56 = vmul.f32 %v5549_v51, %v5449_v42  ;;  %v1360_v58 = vrot.slane %v1295_v29, 7  ;;  %v1296_v41 = vmul.f32 %v5549_v51, %v5459_v23  ;;  %v1363_v50 = vrot.slane %v1297_v20, 7 }
 0x218   : > { %v1298_v24 = vmul.f32 %v5549_v51, %v5466_v5  ;;  %v1366_v55 = vrot.slane %v5544_v17, 7  ;;  %v1300_v11 = vmul.f32 %v5549_v51, %v1268_v1  ;;  %v1369_v46 = vrot.slane %v5547_v40, 7 }
 0x219   : > { %v1359_v52 = vrot.slane %v1294_v56, 7  ;;  %v1471_v25 = vsel %vm1358_vm7, %v1360_v58, 0.0  ;;  %v5573_v8 = vrot.slane %v1296_v41, 7  ;;  %v1472_v42 = vsel %vm1358_vm7, %v1363_v50, 0.0  ;;  %v4756_v41 = vld [vmem:[%s6846_s9 + $0x38] sm:$0xff]  }
 0x21a   : > { %v1524_v21 = vrot.slane %v1471_v25, 1  ;;  %v1633_v47 = vrot.slane %v1471_v25, 2  ;;  %v1638_v23 = vrot.slane %v1472_v42, 2  ;;  %v1529_v53 = vrot.slane %v1472_v42, 1 }
 0x21b   : > { %v1361_v32 = vsel %vm1358_vm7, %v1359_v52, %v1360_v58  ;;  %v1455_v5 = vsel %vm1358_vm7, 0.0, %v1359_v52  ;;  %v5580_v1 = vsel %vm1358_vm7, %v5573_v8, %v1363_v50  ;;  %v1456_v34 = vsel %vm1358_vm7, 0.0, %v5573_v8 }
 0x21c   : > { %v1521_v2 = vrot.slane %v1455_v5, 1  ;;  %v1522_v44 = vrot.slane %v1361_v32, 1  ;;  %v1630_v61 = vrot.slane %v1455_v5, 2  ;;  %v1631_v22 = vrot.slane %v1361_v32, 2 }
 0x21d   : > { %v5585_v30 = vpack.c.bf16 %v1361_v32, %v1359_v52  ;;  %v1635_v49 = vrot.slane %v1456_v34, 2  ;;  %v1636_v18 = vrot.slane %v5580_v1, 2  ;;  %v1526_v57 = vrot.slane %v1456_v34, 1 }
 0x21e   : > { %v1523_v12 = vsel %vm1518_vm8, %v1521_v2, %v1522_v44  ;;  %v1525_v36 = vsel %vm1518_vm8, %v1522_v44, %v1524_v21  ;;  %v1632_v29 = vsel %vm1627_vm9, %v1630_v61, %v1631_v22  ;;  %v1634_v20 = vsel %vm1627_vm9, %v1631_v22, %v1633_v47  ;;  %v4753_v21 = vld [vmem:[%s6846_s9 + $0xb0] sm:$0xff]  }
 0x21f   : > { %v5592_v17 = vpack.c.bf16 %v1525_v36, %v1523_v12  ;;  %v5594_v40 = vpack.c.bf16 %v1634_v20, %v1632_v29  ;;  %v1637_v56 = vsel %vm1627_vm9, %v1635_v49, %v1636_v18  ;;  %v1639_v58 = vsel %vm1627_vm9, %v1636_v18, %v1638_v23  ;;  %v4757_v47 = vld [vmem:[%s6846_s9 + $0x70] sm:$0xff]  }
 0x220   : > { %v5605_v50 = vpack.c.bf16 %v1639_v58, %v1637_v56  ;;  %v1527_v52 = vrot.slane %v5580_v1, 1  ;;  %v5608_v25 = vrot.slane %v1298_v24, 7  ;;  %v1473_v42 = vsel %vm1358_vm7, %v1366_v55, 0.0  ;;  %v4759_v56 = vld [vmem:[%s6846_s9 + $0x68] sm:$0xff]  }
 0x221   : > { %6888 = vst [vmem:[#allocation2_spill] sm:$0xff] %v5594_v40  ;;  %2076 = vmatprep.mubr.bf16.mxu0 %v5592_v17  ;;  %4588 = vmatprep.mubr.bf16.mxu1 %v5594_v40  ;;  %v1643_v23 = vrot.slane %v1473_v42, 2  ;;  %v5619_v32 = vrot.slane %v1300_v11, 7  ;;  %v5622_v24 = vsel %vm1358_vm7, %v1369_v46, 0.0  ;;  %v5626_v5 = vmul.f32 %v5525_v31, %v5502_v27 }
 0x222   : > { %6891 = vst [vmem:[#allocation3_spill] sm:$0xff] %v5605_v50  ;;  %3669 = vmatmul.mubr.msk.bf16.vlgmr.msra.gmra.mxu0 %vm5596_vm12, %v5585_v30  ;;  %4589 = vmatmul.mubr.bf16.vlgmr.msra.gmra.mxu1 %v5605_v50  ;;  %v1528_v34 = vsel %vm1518_vm8, %v1526_v57, %v1527_v52  ;;  %v1530_v2 = vsel %vm1518_vm8, %v1527_v52, %v1529_v53  ;;  %v1457_v44 = vsel %vm1358_vm7, 0.0, %v5608_v25  ;;  %v1648_v18 = vrot.slane %v5622_v24, 2 }
 0x223   : > { %v5636_v11 = vsel %vm1358_vm7, %v5608_v25, %v1366_v55  ;;  %4621 = vmatpush3.bf16.msra.mxu0 %v5423_v39  ;;  %v5641_v27 = vpack.c.bf16 %v1530_v2, %v1528_v34  ;;  %v1640_v61 = vrot.slane %v1457_v44, 2  ;;  %v5646_v49 = vsel %vm1358_vm7, %v5619_v32, %v1369_v46  ;;  %4161 = vmatpush3.bf16.msra.mxu1 %v4756_v41  ;;  %v4758_v55 = vld [vmem:[%s6846_s9 + $0x30] sm:$0xff]   ;;  %v4754_v46 = vld [vmem:[%s6846_s9 + $0xa8] sm:$0xff]  }
 0x224   : > { %v1641_v22 = vrot.slane %v5636_v11, 2  ;;  %v5653_v53 = vsel %vm1358_vm7, 0.0, %v5619_v32  ;;  %v1646_v39 = vrot.slane %v5646_v49, 2  ;;  %v1531_v57 = vrot.slane %v1457_v44, 1  ;;  %4622 = vmatprep.subr.bf16.mxu0 %v4753_v21  ;;  %4162 = vmatprep.subr.bf16.mxu1 %v4757_v47 }
 0x225   : > { %2084 = vmatprep.mubr.bf16.mxu0 %v5641_v27  ;;  %v1645_v29 = vrot.slane %v5653_v53, 2  ;;  %v1532_v20 = vrot.slane %v5636_v11, 1  ;;  %v1534_v52 = vrot.slane %v1473_v42, 1  ;;  %v1302_v47 = vmul.f32 %v5549_v51, %v5471_v35 }
 0x226   : > { %v1642_v12 = vsel %vm1627_vm9, %v1640_v61, %v1641_v22  ;;  %v1644_v36 = vsel %vm1627_vm9, %v1641_v22, %v1643_v23  ;;  %v1649_v41 = vsel %vm1627_vm9, %v1646_v39, %v1648_v18  ;;  %v5675_v34 = vpack.c.bf16 %v5580_v1, %v5573_v8  ;;  %v4760_v8 = vld [vmem:[%s6846_s9 + $0x28] sm:$0xff]  }
 0x227   : > { %v5668_v58 = vpack.c.bf16 %v1644_v36, %v1642_v12  ;;  %v1647_v23 = vsel %vm1627_vm9, %v1645_v29, %v1646_v39  ;;  %v1533_v2 = vsel %vm1518_vm8, %v1531_v57, %v1532_v20  ;;  %v1372_v44 = vrot.slane %v5552_v0, 7  ;;  %4623 = vmatpush3.bf16.msra.mxu0 %v4753_v21  ;;  %4163 = vmatpush3.bf16.msra.mxu1 %v4758_v55  ;;  %v4763_v0 = vld [vmem:[%s6846_s9 + $0xa0] sm:$0xff]  }
 0x228   : > { %v5681_v61 = vpack.c.bf16 %v1649_v41, %v1647_v23  ;;  %v1535_v42 = vsel %vm1518_vm8, %v1532_v20, %v1534_v52  ;;  %v5684_v22 = vrot.slane %v1302_v47, 7  ;;  %v1304_v35 = vmul.f32 %v5549_v51, %v5489_v60  ;;  %4624 = vmatprep.subr.bf16.mxu0 %v4754_v46  ;;  %4164 = vmatprep.subr.bf16.mxu1 %v4759_v56  ;;  %v4761_v60 = vld [vmem:[%s6846_s9 + $0x60] sm:$0xff]  }
 0x229   : > { %6892 = vst [vmem:[#allocation4_spill] sm:$0xff] %v5668_v58  ;;  %4592 = vmatprep.mubr.bf16.mxu1 %v5668_v58  ;;  %v5694_v1 = vpack.c.bf16 %v1535_v42, %v1533_v2  ;;  %v5697_v21 = vsel %vm1358_vm7, %v1372_v44, 0.0  ;;  %v1375_v55 = vrot.slane %v5555_v3, 7  ;;  %v1536_v39 = vrot.slane %v5653_v53, 1  ;;  %v4762_v23 = vld [vmem:[%s6846_s9 + $0x20] sm:$0xff]  }
 0x22a   : > { %6893 = vst [vmem:[#allocation5_spill] sm:$0xff] %v5681_v61  ;;  %3673 = vmatmul.mubr.msk.bf16.gmra.mxu0 %vm5596_vm12, %v5675_v34  ;;  %4593 = vmatmul.mubr.bf16.gmra.mxu1 %v5681_v61  ;;  %v5710_v18 = vsel %vm1358_vm7, %v5684_v22, %v1372_v44  ;;  %v1459_v3 = vsel %vm1358_vm7, 0.0, %v5684_v22  ;;  %v1653_v53 = vrot.slane %v5697_v21, 2  ;;  %v5715_v57 = vrot.slane %v1304_v35, 7  ;;  %v4764_v35 = vld [vmem:[%s6846_s9 + $0x58] sm:$0xff]  }
 0x22b   : > { %2092 = vmatprep.mubr.bf16.mxu0 %v5694_v1  ;;  %v1650_v12 = vrot.slane %v1459_v3, 2  ;;  %v1651_v36 = vrot.slane %v5710_v18, 2  ;;  %v5720_v29 = vsel %vm1358_vm7, %v1375_v55, 0.0  ;;  %v1537_v20 = vrot.slane %v5646_v49, 1  ;;  %4625 = vmatpush3.bf16.msra.mxu0 %v4754_v46 }
 0x22c   : > { %v5725_v56 = vsel %vm1358_vm7, %v5715_v57, %v1375_v55  ;;  %v5729_v41 = vsel %vm1358_vm7, 0.0, %v5715_v57  ;;  %v1658_v52 = vrot.slane %v5720_v29, 2  ;;  %v1539_v47 = vrot.slane %v5622_v24, 1  ;;  %4165 = vmatpush3.bf16.msra.mxu1 %v4760_v8  ;;  %4626 = vmatprep.subr.bf16.mxu0 %v4763_v0  ;;  %v4772_v24 = vld [vmem:[%s6846_s9 + $0x98] sm:$0xff]  }
 0x22d   : > { %v1652_v46 = vsel %vm1627_vm9, %v1650_v12, %v1651_v36  ;;  %v1654_v2 = vsel %vm1627_vm9, %v1651_v36, %v1653_v53  ;;  %v1655_v44 = vrot.slane %v5729_v41, 2  ;;  %v1656_v42 = vrot.slane %v5725_v56, 2  ;;  %4166 = vmatprep.subr.bf16.mxu1 %v4761_v60 }
 0x22e   : > { %v5746_v8 = vpack.c.bf16 %v1654_v2, %v1652_v46  ;;  %v1538_v55 = vsel %vm1518_vm8, %v1536_v39, %v1537_v20  ;;  %v1540_v12 = vsel %vm1518_vm8, %v1537_v20, %v1539_v47  ;;  %v1306_v53 = vmul.f32 %v5549_v51, %v5495_v9 }
 0x22f   : > { %v5754_v60 = vpack.c.bf16 %v5636_v11, %v5608_v25  ;;  %v1657_v36 = vsel %vm1627_vm9, %v1655_v44, %v1656_v42  ;;  %v1659_v59 = vsel %vm1627_vm9, %v1656_v42, %v1658_v52  ;;  %v1378_v61 = vrot.slane %v5558_v7, 7  ;;  %4627 = vmatpush3.bf16.msra.mxu0 %v4763_v0  ;;  %v4765_v25 = vld [vmem:[%s6846_s9 + $0x18] sm:$0xff]   ;;  %v4773_v7 = vld [vmem:[%s6846_s9 + $0x90] sm:$0xff]  }
 0x230   : > { %6894 = vst [vmem:[#allocation6_spill] sm:$0xff] %v5746_v8  ;;  %4596 = vmatprep.mubr.bf16.mxu1 %v5746_v8  ;;  %v5760_v46 = vpack.c.bf16 %v1659_v59, %v1657_v36  ;;  %v5762_v39 = vpack.c.bf16 %v1540_v12, %v1538_v55  ;;  %v5764_v20 = vrot.slane %v1306_v53, 7  ;;  %v1308_v9 = vmul.f32 %v5549_v51, %v5499_v26  ;;  %v4766_v26 = vld [vmem:[%s6846_s9 + $0x50] sm:$0xff]  }
 0x231   : > { %4167 = vmatpush3.bf16.msra.mxu1 %v4762_v23  ;;  %v5775_v11 = vsel %vm1358_vm7, %v1378_v61, 0.0  ;;  %v1381_v59 = vrot.slane %v5626_v5, 7  ;;  %v1541_v0 = vrot.slane %v1459_v3, 1  ;;  %v1542_v52 = vrot.slane %v5710_v18, 1  ;;  %4628 = vmatprep.subr.bf16.mxu0 %v4772_v24  ;;  %v4767_v36 = vld [vmem:[%s6846_s9 + $0x10] sm:$0xff]  }
 0x232   : > { %6895 = vst [vmem:[#allocation7_spill] sm:$0xff] %v5760_v46  ;;  %4168 = vmatprep.subr.bf16.mxu1 %v4764_v35  ;;  %3677 = vmatmul.mubr.msk.bf16.gmra.mxu0 %vm5596_vm12, %v5754_v60  ;;  %v5788_v47 = vsel %vm1358_vm7, %v5764_v20, %v1378_v61  ;;  %v5792_v5 = vsel %vm1358_vm7, 0.0, %v5764_v20  ;;  %v1663_v3 = vrot.slane %v5775_v11, 2  ;;  %v5795_v23 = vrot.slane %v1308_v9, 7 }
 0x233   : > { %4597 = vmatmul.mubr.bf16.gmra.mxu1 %v5760_v46  ;;  %2100 = vmatprep.mubr.bf16.mxu0 %v5762_v39  ;;  %v1660_v2 = vrot.slane %v5792_v5, 2  ;;  %v1661_v44 = vrot.slane %v5788_v47, 2  ;;  %v5801_v42 = vsel %vm1358_vm7, %v1381_v59, 0.0  ;;  %v1543_v61 = vsel %vm1518_vm8, %v1541_v0, %v1542_v52  ;;  %v4768_v46 = vld [vmem:[%s6846_s9 + $0x48] sm:$0xff]  }
 0x234   : > { %4629 = vmatpush3.bf16.msra.mxu0 %v4772_v24  ;;  %v5806_v35 = vsel %vm1358_vm7, %v5795_v23, %v1381_v59  ;;  %v5810_v55 = vsel %vm1358_vm7, 0.0, %v5795_v23  ;;  %v1668_v12 = vrot.slane %v5801_v42, 2  ;;  %v1544_v53 = vrot.slane %v5697_v21, 1  ;;  %v4774_v21 = vld [vmem:[%s6846_s9 + $0x88] sm:$0xff]  }
 0x235   : > { %4169 = vmatpush3.bf16.msra.mxu1 %v4765_v25  ;;  %4630 = vmatprep.subr.bf16.mxu0 %v4773_v7  ;;  %v1662_v24 = vsel %vm1627_vm9, %v1660_v2, %v1661_v44  ;;  %v1664_v9 = vsel %vm1627_vm9, %v1661_v44, %v1663_v3  ;;  %v1665_v59 = vrot.slane %v5810_v55, 2  ;;  %v1666_v0 = vrot.slane %v5806_v35, 2 }
 0x236   : > { %4170 = vmatprep.subr.bf16.mxu1 %v4766_v26  ;;  %v5827_v25 = vpack.c.bf16 %v1664_v9, %v1662_v24  ;;  %v1545_v8 = vsel %vm1518_vm8, %v1542_v52, %v1544_v53  ;;  %v1310_v3 = vmul.f32 %v5549_v51, %v5445_v38  ;;  %v1311_v2 = vmul.f32 %v5525_v31, %v5455_v13 }
 0x237   : > { %v5836_v26 = vpack.c.bf16 %v5646_v49, %v5619_v32  ;;  %v1667_v44 = vsel %vm1627_vm9, %v1665_v59, %v1666_v0  ;;  %v1669_v58 = vsel %vm1627_vm9, %v1666_v0, %v1668_v12  ;;  %v5840_v50 = vpack.c.bf16 %v1545_v8, %v1543_v61  ;;  %v4769_v32 = vld [vmem:[%s6846_s9 + $0x8] sm:$0xff]   ;;  %v4775_v49 = vld [vmem:[%s6846_s9 + $0x80] sm:$0xff]  }
 0x238   : > { %6896 = vst [vmem:[#allocation8_spill] sm:$0xff] %v5827_v25  ;;  %4631 = vmatpush3.bf16.msra.mxu0 %v4773_v7  ;;  %4600 = vmatprep.mubr.bf16.mxu1 %v5827_v25  ;;  %v5843_v52 = vpack.c.bf16 %v1669_v58, %v1667_v44  ;;  %v5845_v53 = vrot.slane %v1310_v3, 7  ;;  %v1384_v38 = vrot.slane %v1311_v2, 7  ;;  %v1312_v13 = vmul.f32 %v5549_v51, %v5477_v62  ;;  %v4770_v62 = vld [vmem:[%s6846_s9 + $0x40] sm:$0xff]  }
 0x239   : > { %4171 = vmatpush3.bf16.msra.mxu1 %v4767_v36  ;;  %v1313_v8 = vmul.f32 %v5525_v31, %v5483_v4  ;;  %v1546_v58 = vrot.slane %v5729_v41, 1  ;;  %v1547_v7 = vrot.slane %v5725_v56, 1  ;;  %v1549_v61 = vrot.slane %v5720_v29, 1  ;;  %4632 = vmatprep.subr.bf16.mxu0 %v4774_v21 }
 0x23a   : > { %6897 = vst [vmem:[#allocation9_spill] sm:$0xff] %v5843_v52  ;;  %4172 = vmatprep.subr.bf16.mxu1 %v4768_v46  ;;  %3681 = vmatmul.mubr.msk.bf16.gmra.mxu0 %vm5596_vm12, %v5836_v26  ;;  %v5869_v4 = vsel %vm1358_vm7, %v5845_v53, %v1384_v38  ;;  %v5873_v41 = vsel %vm1358_vm7, 0.0, %v5845_v53  ;;  %v5876_v29 = vsel %vm1358_vm7, %v1384_v38, 0.0  ;;  %v5878_v46 = vrot.slane %v1312_v13, 7 }
 0x23b   : > { %4601 = vmatmul.mubr.bf16.gmra.mxu1 %v5843_v52  ;;  %2108 = vmatprep.mubr.bf16.mxu0 %v5840_v50  ;;  %v1670_v12 = vrot.slane %v5873_v41, 2  ;;  %v1671_v36 = vrot.slane %v5869_v4, 2  ;;  %v1673_v24 = vrot.slane %v5876_v29, 2  ;;  %v1387_v9 = vrot.slane %v1313_v8, 7  ;;  %v4771_v8 = vld [vmem:[%s6846_s9] sm:$0xff]  }
 0x23c   : > { %4633 = vmatpush3.bf16.msra.mxu0 %v4774_v21  ;;  %v5886_v59 = vsel %vm1358_vm7, 0.0, %v5878_v46  ;;  %v1548_v0 = vsel %vm1518_vm8, %v1546_v58, %v1547_v7  ;;  %v1550_v3 = vsel %vm1518_vm8, %v1547_v7, %v1549_v61  ;;  %v1314_v2 = vmul.f32 %v5549_v51, %v5505_v37  ;;  %v4776_v37 = vld [vmem:[%s6846_s9 + $0x1f8] sm:$0xff]  }
 0x23d   : > { %4173 = vmatpush3.bf16.msra.mxu1 %v4769_v32  ;;  %4634 = vmatprep.subr.bf16.mxu0 %v4775_v49  ;;  %v1672_v44 = vsel %vm1627_vm9, %v1670_v12, %v1671_v36  ;;  %v1674_v38 = vsel %vm1627_vm9, %v1671_v36, %v1673_v24  ;;  %v5896_v21 = vsel %vm1358_vm7, %v5878_v46, %v1387_v9  ;;  %v5899_v13 = vsel %vm1358_vm7, %v1387_v9, 0.0 }
 0x23e   : > { %4174 = vmatprep.subr.bf16.mxu1 %v4770_v62  ;;  %v5907_v32 = vpack.c.bf16 %v1674_v38, %v1672_v44  ;;  %v1675_v58 = vrot.slane %v5886_v59, 2  ;;  %v1676_v7 = vrot.slane %v5896_v21, 2  ;;  %v1678_v61 = vrot.slane %v5899_v13, 2  ;;  %v5915_v62 = vld [vmem:[%s6846_s9 + $0x238] sm:$0xff]  }
 0x23f   : > { %v5919_v12 = vpack.c.bf16 %v5710_v18, %v5684_v22  ;;  %v5921_v36 = vpack.c.bf16 %v1550_v3, %v1548_v0  ;;  %v1315_v24 = vmul.f32 %v5525_v31, %v5508_v33  ;;  %v5925_v9 = vrot.slane %v1314_v2, 7 }
 0x240   : > { %6898 = vst [vmem:[#allocation10_spill] sm:$0xff] %v5907_v32  ;;  %4635 = vmatpush3.bf16.msra.mxu0 %v4775_v49  ;;  %4604 = vmatprep.mubr.bf16.mxu1 %v5907_v32  ;;  %v1677_v44 = vsel %vm1627_vm9, %v1675_v58, %v1676_v7  ;;  %v1679_v38 = vsel %vm1627_vm9, %v1676_v7, %v1678_v61  ;;  %v1551_v49 = vrot.slane %v5792_v5, 1  ;;  %v1552_v2 = vrot.slane %v5788_v47, 1 }
 0x241   : > { %6899 = vst [vmem:[#allocation11_spill] sm:$0xff] %v5921_v36  ;;  %v1316_v52 = vmul.f32 %v5549_v51, %v5514_v43  ;;  %v1317_v22 = vmul.f32 %v5525_v31, %v5517_v19  ;;  %v5934_v18 = vpack.c.bf16 %v1679_v38, %v1677_v44  ;;  %v1390_v0 = vrot.slane %v1315_v24, 7  ;;  %4175 = vmatpush3.bf16.msra.mxu1 %v4771_v8 }
 0x242   : > { %v5938_v33 = vsel %vm1358_vm7, 0.0, %v5925_v9  ;;  %4296 = vmatprep.subr.bf16.mxu0 %v4776_v37  ;;  %3685 = vmatmul.mubr.msk.bf16.gmra.mxu0 %vm5596_vm12, %v5919_v12  ;;  %v1554_v37 = vrot.slane %v5775_v11, 1 }
 0x243   : > { %6900 = vst [vmem:[#allocation12_spill] sm:$0xff] %v5934_v18  ;;  %v1680_v43 = vrot.slane %v5938_v33, 2  ;;  %v5945_v3 = vrot.slane %v1316_v52, 7  ;;  %v1393_v19 = vrot.slane %v1317_v22, 7  ;;  %4668 = vmatprep.subr.bf16.mxu1 %v5915_v62  ;;  %4605 = vmatmul.mubr.bf16.gmra.mxu1 %v5934_v18  ;;  %v5953_v5 = vsel %vm1358_vm7, %v5925_v9, %v1390_v0 }
 0x244   : > { %2116 = vmatprep.mubr.bf16.mxu0 %v5921_v36  ;;  %v5956_v8 = vsel %vm1358_vm7, %v1390_v0, 0.0  ;;  %v1318_v52 = vmul.f32 %v5549_v51, %v5511_v45  ;;  %v1681_v58 = vrot.slane %v5953_v5, 2  ;;  %v1553_v45 = vsel %vm1518_vm8, %v1551_v49, %v1552_v2 }
 0x245   : > { %v1683_v7 = vrot.slane %v5956_v8, 2  ;;  %v5965_v61 = vsel %vm1358_vm7, %v5945_v3, %v1393_v19  ;;  %v5969_v24 = vsel %vm1358_vm7, 0.0, %v5945_v3  ;;  %v5972_v44 = vsel %vm1358_vm7, %v1393_v19, 0.0 }
 0x246   : > { %v1685_v11 = vrot.slane %v5969_v24, 2  ;;  %v1686_v38 = vrot.slane %v5965_v61, 2  ;;  %v1682_v22 = vsel %vm1627_vm9, %v1680_v43, %v1681_v58  ;;  %v1688_v18 = vrot.slane %v5972_v44, 2 }
 0x247   : > { %v1684_v0 = vsel %vm1627_vm9, %v1681_v58, %v1683_v7  ;;  %v1555_v32 = vsel %vm1518_vm8, %v1552_v2, %v1554_v37  ;;  %v5985_v19 = vpack.c.bf16 %v5725_v56, %v5715_v57  ;;  %v1319_v36 = vmul.f32 %v5525_v31, %v5520_v48 }
 0x248   : > { %v5981_v25 = vpack.c.bf16 %v1684_v0, %v1682_v22  ;;  %v1687_v40 = vsel %vm1627_vm9, %v1685_v11, %v1686_v38  ;;  %v1689_v49 = vsel %vm1627_vm9, %v1686_v38, %v1688_v18  ;;  %v5991_v43 = vpack.c.bf16 %v1555_v32, %v1553_v45 }
 0x249   : > { %v5993_v58 = vrot.slane %v1318_v52, 7  ;;  %v1320_v2 = vmul.f32 %v5549_v51, %v5528_v10  ;;  %v5998_v37 = vpack.c.bf16 %v1689_v49, %v1687_v40  ;;  %v1396_v57 = vrot.slane %v1319_v36, 7 }
 0x24a   : > { %6901 = vst [vmem:[#allocation13_spill] sm:$0xff] %v5981_v25  ;;  %4608 = vmatprep.mubr.bf16.mxu1 %v5981_v25  ;;  %v1321_v56 = vmul.f32 %v5525_v31, %v5531_v6  ;;  %v1556_v7 = vrot.slane %v5810_v55, 1  ;;  %3689 = vmatmul.mubr.msk.bf16.gmra.mxu0 %vm5596_vm12, %v5985_v19  ;;  %v1557_v10 = vrot.slane %v5806_v35, 1  ;;  %v1559_v40 = vrot.slane %v5801_v42, 1 }
 0x24b   : > { %6902 = vst [vmem:[#allocation14_spill] sm:$0xff] %v5998_v37  ;;  %v6008_v48 = vsel %vm1358_vm7, 0.0, %v5993_v58  ;;  %v6010_v32 = vrot.slane %v1320_v2, 7  ;;  %4609 = vmatmul.mubr.bf16.gmra.mxu1 %v5998_v37  ;;  %2124 = vmatprep.mubr.bf16.mxu0 %v5991_v43  ;;  %v6018_v6 = vsel %vm1358_vm7, %v5993_v58, %v1396_v57  ;;  %v6021_v55 = vsel %vm1358_vm7, %v1396_v57, 0.0 }
 0x24c   : > { %v1690_v36 = vrot.slane %v6008_v48, 2  ;;  %v1399_v18 = vrot.slane %v1321_v56, 7  ;;  %v1691_v52 = vrot.slane %v6018_v6, 2  ;;  %v1693_v11 = vrot.slane %v6021_v55, 2 }
 0x24d   : > { %v6028_v42 = vsel %vm1358_vm7, 0.0, %v6010_v32  ;;  %v1558_v38 = vsel %vm1518_vm8, %v1556_v7, %v1557_v10  ;;  %v1560_v49 = vsel %vm1518_vm8, %v1557_v10, %v1559_v40  ;;  %v6048_v25 = vpack.c.bf16 %v5788_v47, %v5764_v20 }
 0x24e   : > { %v6033_v45 = vsel %vm1358_vm7, %v6010_v32, %v1399_v18  ;;  %v6036_v22 = vsel %vm1358_vm7, %v1399_v18, 0.0  ;;  %v1695_v0 = vrot.slane %v6028_v42, 2  ;;  %v1692_v2 = vsel %vm1627_vm9, %v1690_v36, %v1691_v52 }
 0x24f   : > { %v1694_v57 = vsel %vm1627_vm9, %v1691_v52, %v1693_v11  ;;  %v1696_v56 = vrot.slane %v6033_v45, 2  ;;  %v1698_v37 = vrot.slane %v6036_v22, 2  ;;  %6904 = vst [vmem:[#allocation16_spill] sm:$0xff] %v6048_v25  ;;  %v1322_v18 = vmul.f32 %v5549_v51, %v5523_v54 }
 0x250   : > { %v6044_v7 = vpack.c.bf16 %v1694_v57, %v1692_v2  ;;  %v1323_v10 = vmul.f32 %v5525_v31, %v5534_v14  ;;  %v6056_v52 = vpack.c.bf16 %v1560_v49, %v1558_v38  ;;  %v1324_v11 = vmul.f32 %v5549_v51, %v5537_v15 }
 0x251   : > { %v1697_v40 = vsel %vm1627_vm9, %v1695_v0, %v1696_v56  ;;  %v1699_v36 = vsel %vm1627_vm9, %v1696_v56, %v1698_v37  ;;  %v1401_v20 = vrot.slane %v1322_v18, 7  ;;  %v1325_v54 = vmul.f32 %v5525_v31, %v5561_v16 }
 0x252   : > { %6903 = vst [vmem:[#allocation15_spill] sm:$0xff] %v6044_v7  ;;  %6905 = vst [vmem:[#allocation17_spill] sm:$0xff] %v6056_v52  ;;  %4612 = vmatprep.mubr.bf16.mxu1 %v6044_v7  ;;  %v6061_v2 = vpack.c.bf16 %v1699_v36, %v1697_v40  ;;  %v1402_v47 = vrot.slane %v1323_v10, 7  ;;  %3693 = vmatmul.mubr.msk.bf16.gmra.mxu0 %vm5596_vm12, %v6048_v25  ;;  %v1404_v14 = vrot.slane %v1324_v11, 7  ;;  %v1561_v37 = vrot.slane %v5873_v41, 1 }
 0x253   : > { %v1562_v38 = vrot.slane %v5869_v4, 1  ;;  %v1564_v15 = vrot.slane %v5876_v29, 1  ;;  %2132 = vmatprep.mubr.bf16.mxu0 %v6056_v52  ;;  %v1469_v0 = vsel %vm1358_vm7, 0.0, %v1401_v20  ;;  %v1405_v16 = vrot.slane %v1325_v54, 7 }
 0x254   : > { %6906 = vst [vmem:[#allocation18_spill] sm:$0xff] %v6061_v2  ;;  %4613 = vmatmul.mubr.bf16.gmra.mxu1 %v6061_v2  ;;  %v1403_v51 = vsel %vm1358_vm7, %v1401_v20, %v1402_v47  ;;  %v1485_v31 = vsel %vm1358_vm7, %v1402_v47, 0.0  ;;  %v1700_v49 = vrot.slane %v1469_v0, 2  ;;  %v1470_v41 = vsel %vm1358_vm7, 0.0, %v1404_v14 }
 0x255   : > { %v1701_v57 = vrot.slane %v1403_v51, 2  ;;  %v1703_v56 = vrot.slane %v1485_v31, 2  ;;  %v1406_v18 = vsel %vm1358_vm7, %v1404_v14, %v1405_v16  ;;  %v1486_v29 = vsel %vm1358_vm7, %v1405_v16, 0.0 }
 0x256   : > { %v1841_v10 = vrot.slane %v1470_v41, 2  ;;  %v1563_v40 = vsel %vm1518_vm8, %v1561_v37, %v1562_v38  ;;  %v1842_v2 = vrot.slane %v1406_v18, 2  ;;  %v1844_v7 = vrot.slane %v1486_v29, 2 }
 0x257   : > { %v1702_v36 = vsel %vm1627_vm9, %v1700_v49, %v1701_v57  ;;  %v1704_v11 = vsel %vm1627_vm9, %v1701_v57, %v1703_v56  ;;  %v1565_v54 = vsel %vm1518_vm8, %v1562_v38, %v1564_v15  ;;  %v6087_v52 = vpack.c.bf16 %v5806_v35, %v5795_v23 }
 0x258   : > { %v6082_v47 = vpack.c.bf16 %v1704_v11, %v1702_v36  ;;  %v1843_v25 = vsel %vm1627_vm9, %v1841_v10, %v1842_v2  ;;  %v1845_v16 = vsel %vm1627_vm9, %v1842_v2, %v1844_v7  ;;  %v6093_v37 = vpack.c.bf16 %v5440_v63, %v5440_v63 }
 0x259   : > { %v6096_v49 = vpack.c.bf16 %v1845_v16, %v1843_v25  ;;  %v6098_v57 = vpack.c.bf16 %v1565_v54, %v1563_v40  ;;  %v1566_v23 = vrot.slane %v5886_v59, 1  ;;  %v1567_v35 = vrot.slane %v5896_v21, 1  ;;  %v4783_v40 = vld [vmem:[%s6846_s9 + $0x230] sm:$0xff]  }
 0x25a   : > { %4616 = vmatprep.mubr.bf16.mxu1 %v6082_v47  ;;  %3697 = vmatmul.mubr.msk.bf16.gmra.mxu0 %vm5596_vm12, %v6087_v52  ;;  %v1569_v63 = vrot.slane %v5899_v13, 1  ;;  %v6113_v2 = vpack.c.bf16 %v5869_v4, %v5845_v53  ;;  %v1591_v38 = vrot.slane %v1469_v0, 1  ;;  %v1592_v59 = vrot.slane %v1403_v51, 1 }
 0x25b   : > { %2140 = vmatprep.mubr.bf16.mxu0 %v6098_v57  ;;  %v1568_v25 = vsel %vm1518_vm8, %v1566_v23, %v1567_v35  ;;  %v1571_v56 = vrot.slane %v5938_v33, 1  ;;  %v1594_v10 = vrot.slane %v1485_v31, 1  ;;  %v1572_v13 = vrot.slane %v5953_v5, 1 }
 0x25c   : > { %4617 = vmatmul.mubr.bf16.gmra.mxu1 %v6096_v49  ;;  %v1570_v7 = vsel %vm1518_vm8, %v1567_v35, %v1569_v63  ;;  %v1593_v53 = vsel %vm1518_vm8, %v1591_v38, %v1592_v59  ;;  %v6126_v4 = vpack.c.bf16 %v1403_v51, %v1401_v20  ;;  %v1834_v0 = vrot.slane %v1470_v41, 1  ;;  %v4788_v41 = vld [vmem:[%s6846_s9 + $0x228] sm:$0xff]  }
 0x25d   : > { %2542 = vmatprep.mubr.bf16.mxu1 %v6093_v37  ;;  %v6115_v15 = vpack.c.bf16 %v1570_v7, %v1568_v25  ;;  %v4859_v36 = vmov 0.0|0.0   ;;  %v1595_v33 = vsel %vm1518_vm8, %v1592_v59, %v1594_v10  ;;  %v1835_v31 = vrot.slane %v1406_v18, 1 }
 0x25e   : > { %v1837_v11 = vrot.slane %v1486_v29, 1  ;;  %v6131_v54 = vpack.c.bf16 %v1406_v18, %v1404_v14  ;;  %v1574_v16 = vrot.slane %v5956_v8, 1  ;;  %v6135_v23 = vpack.c.bf16 %v1595_v33, %v1593_v53  ;;  %v4791_v29 = vld [vmem:[%s6846_s9 + $0x220] sm:$0xff]  }
 0x25f   : > { %v1836_v20 = vsel %vm1518_vm8, %v1834_v0, %v1835_v31  ;;  %v1573_v14 = vsel %vm1518_vm8, %v1571_v56, %v1572_v13  ;;  %v6149_v8 = vpack.c.bf16 %v5896_v21, %v5878_v46  ;;  %v1576_v35 = vrot.slane %v5969_v24, 1  ;;  %v4794_v21 = vld [vmem:[%s6846_s9 + $0x218] sm:$0xff]  }
 0x260   : > { %v1838_v51 = vsel %vm1518_vm8, %v1835_v31, %v1837_v11  ;;  %v1575_v18 = vsel %vm1518_vm8, %v1572_v13, %v1574_v16  ;;  %v1577_v63 = vrot.slane %v5965_v61, 1  ;;  %v1579_v46 = vrot.slane %v5972_v44, 1  ;;  %v4795_v44 = vld [vmem:[%s6846_s9 + $0x210] sm:$0xff]   ;;  %v6910_v11 = vld [vmem:[#allocation17_spill] sm:$0xff] }
 0x261   : > { %v6174_v7 = vpack.c.bf16 %v5953_v5, %v5925_v9  ;;  %v1581_v38 = vrot.slane %v6008_v48, 1  ;;  %v1582_v59 = vrot.slane %v6018_v6, 1  ;;  %v1584_v9 = vrot.slane %v6021_v55, 1  ;;  %v4798_v5 = vld [vmem:[%s6846_s9 + $0x208] sm:$0xff]   ;;  %v4799_v55 = vld [vmem:[%s6846_s9 + $0x200] sm:$0xff]   ;;  %v6909_v31 = vld [vmem:[#allocation16_spill] sm:$0xff] }
 0x262   : > { %3701 = vmatmul.mubr.msk.bf16.gmra.mxu0 %vm5596_vm12, %v6113_v2  ;;  %v1578_v24 = vsel %vm1518_vm8, %v1576_v35, %v1577_v63  ;;  %v1580_v25 = vsel %vm1518_vm8, %v1577_v63, %v1579_v46  ;;  %v6199_v10 = vpack.c.bf16 %v5965_v61, %v5945_v3  ;;  %v1586_v13 = vrot.slane %v6028_v42, 1  ;;  %v4777_v16 = vld [vmem:[%s6846_s9 + $0x1b8] sm:$0xff]   ;;  %v4784_v35 = vld [vmem:[%s6846_s9 + $0x1e0] sm:$0xff]   ;;  %v6913_v63 = vld [vmem:[#allocation4_spill] sm:$0xff] }
 0x263   : > { %2148 = vmatprep.mubr.bf16.mxu0 %v6115_v15  ;;  %v1583_v48 = vsel %vm1518_vm8, %v1581_v38, %v1582_v59  ;;  %v1585_v56 = vsel %vm1518_vm8, %v1582_v59, %v1584_v9  ;;  %v1587_v53 = vrot.slane %v6033_v45, 1  ;;  %v1589_v3 = vrot.slane %v6036_v22, 1  ;;  %v6914_v46 = vld [vmem:[#allocation5_spill] sm:$0xff]  ;;  %v6915_v38 = vld [vmem:[#allocation6_spill] sm:$0xff]  ;;  %v6916_v59 = vld [vmem:[#allocation7_spill] sm:$0xff] }
 0x264   : > { %2543 = vmatmul.mubr.bf16.vlgmr.msra.gmra.mxu1 %v4859_v36  ;;  %v6221_v42 = vpack.c.bf16 %v6018_v6, %v5993_v58  ;;  %v6235_v22 = vpack.c.bf16 %v6033_v45, %v6010_v32  ;;  %v6907_v58 = vld [vmem:[#allocation11_spill] sm:$0xff]  ;;  %v6908_v32 = vmov 0.0   ;;  %v4790_v9 = vld [vmem:[%s6846_s9 + $0x190] sm:$0xff]  }
 0x265   : > { %2550 = vmatprep.mubr.bf16.mxu1 %v5592_v17  ;;  %4669 = vmatpush3.bf16.msra.mxu1 %v5915_v62  ;;  %v6145_v17 = vpack.c.bf16 %v1838_v51, %v1836_v20  ;;  %v6151_v62 = vpack.c.bf16 %v1575_v18, %v1573_v14  ;;  %v1588_v61 = vsel %vm1518_vm8, %v1586_v13, %v1587_v53  ;;  %v1628_v6 = vrot.slane %v6908_v32, 2  ;;  %v4779_v20 = vld [vmem:[%s6846_s9 + $0x1f0] sm:$0xff]   ;;  %v6911_v51 = vld [vmem:[#allocation2_spill] sm:$0xff]  ;;  %v6912_v14 = vld [vmem:[#allocation3_spill] sm:$0xff] }
 0x266   : > { %4670 = vmatprep.subr.bf16.mxu1 %v4783_v40  ;;  %v1590_v0 = vsel %vm1518_vm8, %v1587_v53, %v1589_v3  ;;  %v4781_v18 = vld [vmem:[%s6846_s9 + $0x1e8] sm:$0xff]   ;;  %v6918_v13 = vld [vmem:[#allocation9_spill] sm:$0xff]  ;;  %v4797_v53 = vld [vmem:[%s6846_s9 + $0x180] sm:$0xff]  }
 0x267   : > { %v6223_v33 = vpack.c.bf16 %v1590_v0, %v1588_v61  ;;  %v6254_v45 = vpack.c.bf16 %v1628_v6, %v1628_v6  ;;  %v6919_v3 = vld [vmem:[#allocation10_spill] sm:$0xff]  ;;  %v6920_v61 = vld [vmem:[#allocation12_spill] sm:$0xff]  ;;  %v6921_v0 = vld [vmem:[#allocation13_spill] sm:$0xff] }
 0x268   : > { %v6922_v32 = vld [vmem:[#allocation14_spill] sm:$0xff]  ;;  %v6923_v6 = vld [vmem:[#allocation15_spill] sm:$0xff] }
 0x269   : > { %4671 = vmatpush3.bf16.msra.mxu1 %v4783_v40  ;;  %v6201_v40 = vpack.c.bf16 %v1585_v56, %v1583_v48  ;;  %v4793_v48 = vld [vmem:[%s6846_s9 + $0x188] sm:$0xff]   ;;  %v4796_v56 = vld [vmem:[%s6846_s9 + $0x1c0] sm:$0xff]  }
 0x26a   : > { %4672 = vmatprep.subr.bf16.mxu1 %v4788_v41  ;;  %3705 = vmatmul.mubr.msk.bf16.gmra.mxu0 %vm5596_vm12, %v6149_v8 }
 0x26b   : > { %2156 = vmatprep.mubr.bf16.mxu0 %v6151_v62 }
 0x26c   : > { %3757 = vmatmul.mubr.msk.bf16.gmra.mxu1 %vm5596_vm12, %v5585_v30  ;;  %v6176_v30 = vpack.c.bf16 %v1580_v25, %v1578_v24  ;;  %v4786_v24 = vld [vmem:[%s6846_s9 + $0x1d8] sm:$0xff]  }
 0x26d   : > { %2558 = vmatprep.mubr.bf16.mxu1 %v5641_v27  ;;  %4673 = vmatpush3.bf16.msra.mxu1 %v4788_v41  ;;  %v4780_v41 = vld [vmem:[%s6846_s9 + $0x1b0] sm:$0xff]   ;;  %v4787_v25 = vld [vmem:[%s6846_s9 + $0x198] sm:$0xff]  }
 0x26e   : > { %4674 = vmatprep.subr.bf16.mxu1 %v4791_v29 }
 0x271   : > { %4675 = vmatpush3.bf16.msra.mxu1 %v4791_v29  ;;  %v4782_v29 = vld [vmem:[%s6846_s9 + $0x1a8] sm:$0xff]  }
 0x272   : > { %4676 = vmatprep.subr.bf16.mxu1 %v4794_v21  ;;  %3709 = vmatmul.mubr.msk.bf16.gmra.mxu0 %vm5596_vm12, %v6174_v7 }
 0x273   : > { %2164 = vmatprep.mubr.bf16.mxu0 %v6176_v30 }
 0x274   : > { %3761 = vmatmul.mubr.msk.bf16.gmra.mxu1 %vm5596_vm12, %v5675_v34 }
 0x275   : > { %2566 = vmatprep.mubr.bf16.mxu1 %v5694_v1  ;;  %4677 = vmatpush3.bf16.msra.mxu1 %v4794_v21  ;;  %v4785_v21 = vld [vmem:[%s6846_s9 + $0x1a0] sm:$0xff]  }
 0x276   : > { %4678 = vmatprep.subr.bf16.mxu1 %v4795_v44 }
 0x279   : > { %4679 = vmatpush3.bf16.msra.mxu1 %v4795_v44  ;;  %v4789_v44 = vld [vmem:[%s6846_s9 + $0x1d0] sm:$0xff]  }
 0x27a   : > { %4680 = vmatprep.subr.bf16.mxu1 %v4798_v5  ;;  %3713 = vmatmul.mubr.msk.bf16.gmra.mxu0 %vm5596_vm12, %v6199_v10 }
 0x27b   : > { %2172 = vmatprep.mubr.bf16.mxu0 %v6201_v40 }
 0x27c   : > { %3765 = vmatmul.mubr.msk.bf16.gmra.mxu1 %vm5596_vm12, %v5754_v60 }
 0x27d   : > { %2574 = vmatprep.mubr.bf16.mxu1 %v5762_v39  ;;  %4681 = vmatpush3.bf16.msra.mxu1 %v4798_v5  ;;  %v4792_v5 = vld [vmem:[%s6846_s9 + $0x1c8] sm:$0xff]  }
 0x27e   : > { %4682 = vmatprep.subr.bf16.mxu1 %v4799_v55 }
 0x281   : > { %4683 = vmatpush3.bf16.msra.mxu1 %v4799_v55  ;;  %v6917_v55 = vld [vmem:[#allocation8_spill] sm:$0xff] }
 0x282   : > { %3717 = vmatmul.mubr.msk.bf16.gmra.mxu0 %vm5596_vm12, %v6221_v42 }
 0x283   : > { %2180 = vmatprep.mubr.bf16.mxu0 %v6223_v33 }
 0x284   : > { %3769 = vmatmul.mubr.msk.bf16.gmra.mxu1 %vm5596_vm12, %v5836_v26 }
 0x285   : > { %2582 = vmatprep.mubr.bf16.mxu1 %v5840_v50 }
 0x28a   : > { %3721 = vmatmul.mubr.msk.bf16.gmra.mxu0 %vm5596_vm12, %v6235_v22 }
 0x28b   : > { %2188 = vmatprep.mubr.bf16.mxu0 %v6135_v23 }
 0x28c   : > { %3773 = vmatmul.mubr.msk.bf16.gmra.mxu1 %vm5596_vm12, %v5919_v12 }
 0x28d   : > { %2590 = vmatprep.mubr.bf16.mxu1 %v6907_v58 }
 0x292   : > { %3725 = vmatmul.mubr.msk.bf16.gmra.mxu0 %vm5596_vm12, %v6126_v4 }
 0x293   : > { %2196 = vmatprep.mubr.bf16.mxu0 %v6145_v17 }
 0x294   : > { %3777 = vmatmul.mubr.msk.bf16.gmra.mxu1 %vm5596_vm12, %v5985_v19 }
 0x295   : > { %2598 = vmatprep.mubr.bf16.mxu1 %v5991_v43 }
 0x29a   : > { %3729 = vmatmul.mubr.msk.bf16.gmra.mxu0 %vm5596_vm12, %v6131_v54 }
 0x29b   : > { %4636 = vmatprep.mubr.bf16.mxu0 %v6254_v45 }
 0x29c   : > { %3781 = vmatmul.mubr.msk.bf16.gmra.mxu1 %vm5596_vm12, %v6909_v31 }
 0x29d   : > { %2606 = vmatprep.mubr.bf16.mxu1 %v6910_v11 }
 0x2a2   : > { %4637 = vmatmul.mubr.bf16.vlgmr.msra.gmra.mxu0 %v6911_v51 }
 0x2a3   : > { %4297 = vmatpush3.bf16.msra.mxu0 %v4777_v16  ;;  %4640 = vmatprep.mubr.bf16.mxu0 %v6912_v14  ;;  %v6924_v16 = vld [vmem:[#allocation18_spill] sm:$0xff] }
 0x2a4   : > { %3785 = vmatmul.mubr.msk.bf16.gmra.mxu1 %vm5596_vm12, %v6087_v52  ;;  %4298 = vmatprep.subr.bf16.mxu0 %v4779_v20 }
 0x2a5   : > { %2614 = vmatprep.mubr.bf16.mxu1 %v6098_v57 }
 0x2a7   : > { %4299 = vmatpush3.bf16.msra.mxu0 %v4780_v41 }
 0x2a8   : > { %4300 = vmatprep.subr.bf16.mxu0 %v4781_v18 }
 0x2aa   : > { %4641 = vmatmul.mubr.bf16.gmra.mxu0 %v6913_v63 }
 0x2ab   : > { %4644 = vmatprep.mubr.bf16.mxu0 %v6914_v46  ;;  %4301 = vmatpush3.bf16.msra.mxu0 %v4782_v29 }
 0x2ac   : > { %3789 = vmatmul.mubr.msk.bf16.gmra.mxu1 %vm5596_vm12, %v6113_v2  ;;  %4302 = vmatprep.subr.bf16.mxu0 %v4784_v35 }
 0x2ad   : > { %2622 = vmatprep.mubr.bf16.mxu1 %v6115_v15 }
 0x2af   : > { %4303 = vmatpush3.bf16.msra.mxu0 %v4785_v21 }
 0x2b0   : > { %4304 = vmatprep.subr.bf16.mxu0 %v4786_v24 }
 0x2b2   : > { %4645 = vmatmul.mubr.bf16.gmra.mxu0 %v6915_v38 }
 0x2b3   : > { %4648 = vmatprep.mubr.bf16.mxu0 %v6916_v59  ;;  %4305 = vmatpush3.bf16.msra.mxu0 %v4787_v25 }
 0x2b4   : > { %3793 = vmatmul.mubr.msk.bf16.gmra.mxu1 %vm5596_vm12, %v6149_v8  ;;  %4306 = vmatprep.subr.bf16.mxu0 %v4789_v44 }
 0x2b5   : > { %2630 = vmatprep.mubr.bf16.mxu1 %v6151_v62 }
 0x2b7   : > { %4307 = vmatpush3.bf16.msra.mxu0 %v4790_v9 }
 0x2b8   : > { %4308 = vmatprep.subr.bf16.mxu0 %v4792_v5 }
 0x2ba   : > { %4649 = vmatmul.mubr.bf16.gmra.mxu0 %v6917_v55 }
 0x2bb   : > { %4652 = vmatprep.mubr.bf16.mxu0 %v6918_v13  ;;  %4309 = vmatpush3.bf16.msra.mxu0 %v4793_v48 }
 0x2bc   : > { %3797 = vmatmul.mubr.msk.bf16.gmra.mxu1 %vm5596_vm12, %v6174_v7  ;;  %4310 = vmatprep.subr.bf16.mxu0 %v4796_v56 }
 0x2bd   : > { %2638 = vmatprep.mubr.bf16.mxu1 %v6176_v30 }
 0x2bf   : > { %4311 = vmatpush3.bf16.msra.mxu0 %v4797_v53 }
 0x2c2   : > { %4653 = vmatmul.mubr.bf16.gmra.mxu0 %v6919_v3 }
 0x2c3   : > { %4656 = vmatprep.mubr.bf16.mxu0 %v6920_v61 }
 0x2c4   : > { %3801 = vmatmul.mubr.msk.bf16.gmra.mxu1 %vm5596_vm12, %v6199_v10 }
 0x2c5   : > { %2646 = vmatprep.mubr.bf16.mxu1 %v6201_v40 }
 0x2ca   : > { %4657 = vmatmul.mubr.bf16.gmra.mxu0 %v6921_v0 }
 0x2cb   : > { %4660 = vmatprep.mubr.bf16.mxu0 %v6922_v32 }
 0x2cc   : > { %3805 = vmatmul.mubr.msk.bf16.gmra.mxu1 %vm5596_vm12, %v6221_v42 }
 0x2cd   : > { %2654 = vmatprep.mubr.bf16.mxu1 %v6223_v33 }
 0x2d2   : > { %4661 = vmatmul.mubr.bf16.gmra.mxu0 %v6923_v6 }
 0x2d3   : > { %4664 = vmatprep.mubr.bf16.mxu0 %v6924_v16 }
 0x2d4   : > { %3809 = vmatmul.mubr.msk.bf16.gmra.mxu1 %vm5596_vm12, %v6235_v22 }
 0x2d5   : > { %2662 = vmatprep.mubr.bf16.mxu1 %v6135_v23 }
 0x2da   : > { %4665 = vmatmul.mubr.bf16.gmra.mxu0 %v6082_v47 }
 0x2db   : > { %3057 = vmatprep.mubr.bf16.mxu0 %v5641_v27 }
 0x2dc   : > { %3813 = vmatmul.mubr.msk.bf16.gmra.mxu1 %vm5596_vm12, %v6126_v4 }
 0x2dd   : > { %4684 = vmatprep.mubr.bf16.mxu1 %v6912_v14 }
 0x2e2   : > { %v4040_v20 = vpop.f32.mrf.mxu0  ;;  %v4590_v51 = vpop.f32.mrf.mxu1  ;;  %3889 = vmatmul.mubr.msk.bf16.vlgmr.msra.gmra.mxu0 %vm5596_vm12, %v5675_v34 }
 0x2e3   : > { %3065 = vmatprep.mubr.bf16.mxu0 %v5694_v1 }
 0x2e4   : > { %4685 = vmatmul.mubr.bf16.vlgmr.msra.gmra.mxu1 %v6913_v63  ;;  %v4041_v41 = vpop.f32.mrf.mxu0  ;;  %v2239_v18 = vpop.f32.mrf.mxu1 }
 0x2e5   : > { %4688 = vmatprep.mubr.bf16.mxu1 %v6914_v46  ;;  %v4042_v29 = vadd.f32 %v4041_v41, %v4040_v20 }
 0x2e6   : > { %v4043_v35 = vpop.f32.mrf.mxu0  ;;  %v4591_v21 = vpop.f32.mrf.mxu1 }
 0x2e7   : > { %v6363_v27 = vadd.f32 %v4042_v29, %v2239_v18 }
 0x2e8   : > { %v4044_v14 = vpop.f32.mrf.mxu0  ;;  %v2242_v24 = vpop.f32.mrf.mxu1 }
 0x2e9   : > { %v4045_v25 = vadd.f32 %v4044_v14, %v4043_v35 }
 0x2ea   : > { %v4046_v44 = vpop.f32.mrf.mxu0  ;;  %v4594_v9 = vpop.f32.mrf.mxu1  ;;  %3893 = vmatmul.mubr.msk.bf16.gmra.mxu0 %vm5596_vm12, %v5754_v60 }
 0x2eb   : > { %v6368_v34 = vadd.f32 %v4045_v25, %v2242_v24  ;;  %3073 = vmatprep.mubr.bf16.mxu0 %v5762_v39 }
 0x2ec   : > { %4689 = vmatmul.mubr.bf16.gmra.mxu1 %v6915_v38  ;;  %v4047_v1 = vpop.f32.mrf.mxu0  ;;  %v2255_v63 = vpop.f32.mrf.mxu1 }
 0x2ed   : > { %4692 = vmatprep.mubr.bf16.mxu1 %v6916_v59  ;;  %v4048_v46 = vadd.f32 %v4047_v1, %v4046_v44 }
 0x2ee   : > { %v4049_v5 = vpop.f32.mrf.mxu0  ;;  %v4595_v48 = vpop.f32.mrf.mxu1 }
 0x2ef   : > { %v6373_v56 = vadd.f32 %v4590_v51, %v4048_v46 }
 0x2f0   : > { %v4050_v53 = vpop.f32.mrf.mxu0  ;;  %v2258_v20 = vpop.f32.mrf.mxu1 }
 0x2f1   : > { %v4051_v41 = vadd.f32 %v4050_v53, %v4049_v5 }
 0x2f2   : > { %v4052_v18 = vpop.f32.mrf.mxu0  ;;  %3897 = vmatmul.mubr.msk.bf16.gmra.mxu0 %vm5596_vm12, %v5836_v26 }
 0x2f3   : > { %v4598_v60 = vpop.f32.mrf.mxu1  ;;  %v6378_v38 = vadd.f32 %v4591_v21, %v4051_v41  ;;  %3081 = vmatprep.mubr.bf16.mxu0 %v5840_v50 }
 0x2f4   : > { %4693 = vmatmul.mubr.bf16.gmra.mxu1 %v6917_v55  ;;  %v4053_v39 = vpop.f32.mrf.mxu0 }
 0x2f5   : > { %4696 = vmatprep.mubr.bf16.mxu1 %v6918_v13  ;;  %v2271_v59 = vpop.f32.mrf.mxu1  ;;  %v4054_v51 = vadd.f32 %v4053_v39, %v4052_v18 }
 0x2f6   : > { %v4055_v29 = vpop.f32.mrf.mxu0 }
 0x2f7   : > { %v4599_v35 = vpop.f32.mrf.mxu1  ;;  %v6383_v14 = vadd.f32 %v4054_v51, %v2255_v63 }
 0x2f8   : > { %v4056_v24 = vpop.f32.mrf.mxu0 }
 0x2f9   : > { %v2274_v25 = vpop.f32.mrf.mxu1  ;;  %v4057_v44 = vadd.f32 %v4056_v24, %v4055_v29 }
 0x2fa   : > { %v4058_v1 = vpop.f32.mrf.mxu0  ;;  %3901 = vmatmul.mubr.msk.bf16.gmra.mxu0 %vm5596_vm12, %v5919_v12 }
 0x2fb   : > { %v6385_v26 = vpop.f32.mrf.mxu1  ;;  %v6390_v50 = vadd.f32 %v4057_v44, %v2258_v20  ;;  %3089 = vmatprep.mubr.bf16.mxu0 %v6907_v58 }
 0x2fc   : > { %4697 = vmatmul.mubr.bf16.gmra.mxu1 %v6919_v3  ;;  %v4059_v55 = vpop.f32.mrf.mxu0 }
 0x2fd   : > { %4700 = vmatprep.mubr.bf16.mxu1 %v6920_v61  ;;  %v2287_v13 = vpop.f32.mrf.mxu1  ;;  %v4060_v21 = vadd.f32 %v4059_v55, %v4058_v1 }
 0x2fe   : > { %v4061_v63 = vpop.f32.mrf.mxu0 }
 0x2ff   : > { %v6395_v46 = vpop.f32.mrf.mxu1  ;;  %v6397_v5 = vadd.f32 %v4594_v9, %v4060_v21 }
 0x300   : > { %v4062_v53 = vpop.f32.mrf.mxu0 }
 0x301   : > { %v2290_v41 = vpop.f32.mrf.mxu1  ;;  %v4063_v18 = vadd.f32 %v4062_v53, %v4061_v63 }
 0x302   : > { %v4064_v12 = vpop.f32.mrf.mxu0  ;;  %3905 = vmatmul.mubr.msk.bf16.gmra.mxu0 %vm5596_vm12, %v5985_v19 }
 0x303   : > { %v6402_v3 = vadd.f32 %v4595_v48, %v4063_v18  ;;  %v6404_v58 = vpop.f32.mrf.mxu1  ;;  %3097 = vmatprep.mubr.bf16.mxu0 %v5991_v43 }
 0x304   : > { %4701 = vmatmul.mubr.bf16.gmra.mxu1 %v6921_v0  ;;  %v4065_v61 = vpop.f32.mrf.mxu0 }
 0x305   : > { %4704 = vmatprep.mubr.bf16.mxu1 %v6922_v32  ;;  %v4066_v9 = vadd.f32 %v4065_v61, %v4064_v12  ;;  %v6409_v20 = vpop.f32.mrf.mxu1 }
 0x306   : > { %v4067_v39 = vpop.f32.mrf.mxu0 }
 0x307   : > { %v6411_v51 = vadd.f32 %v4066_v9, %v2271_v59  ;;  %v6413_v29 = vpop.f32.mrf.mxu1 }
 0x308   : > { %v4068_v19 = vpop.f32.mrf.mxu0 }
 0x309   : > { %v4069_v48 = vadd.f32 %v4068_v19, %v4067_v39  ;;  %v6415_v24 = vpop.f32.mrf.mxu1 }
 0x30a   : > { %v4070_v44 = vpop.f32.mrf.mxu0  ;;  %3909 = vmatmul.mubr.msk.bf16.gmra.mxu0 %vm5596_vm12, %v6909_v31 }
 0x30b   : > { %v6420_v43 = vadd.f32 %v4069_v48, %v2274_v25  ;;  %v6422_v0 = vpop.f32.mrf.mxu1  ;;  %3105 = vmatprep.mubr.bf16.mxu0 %v6910_v11 }
 0x30c   : > { %4705 = vmatmul.mubr.bf16.gmra.mxu1 %v6923_v6  ;;  %v4071_v32 = vpop.f32.mrf.mxu0 }
 0x30d   : > { %4708 = vmatprep.mubr.bf16.mxu1 %v6924_v16  ;;  %v4072_v59 = vadd.f32 %v4071_v32, %v4070_v44  ;;  %v6427_v1 = vpop.f32.mrf.mxu1 }
 0x30e   : > { %v4073_v55 = vpop.f32.mrf.mxu0 }
 0x30f   : > { %v6429_v21 = vadd.f32 %v4598_v60, %v4072_v59  ;;  %v6431_v63 = vpop.f32.mrf.mxu1 }
 0x310   : > { %v4074_v31 = vpop.f32.mrf.mxu0 }
 0x311   : > { %v4075_v25 = vadd.f32 %v4074_v31, %v4073_v55  ;;  %v6433_v53 = vpop.f32.mrf.mxu1 }
 0x312   : > { %v4076_v18 = vpop.f32.mrf.mxu0  ;;  %3913 = vmatmul.mubr.msk.bf16.gmra.mxu0 %vm5596_vm12, %v6087_v52 }
 0x313   : > { %v6438_v11 = vadd.f32 %v4599_v35, %v4075_v25  ;;  %3113 = vmatprep.mubr.bf16.mxu0 %v6098_v57 }
 0x314   : > { %v6440_v6 = vpop.f32.mrf.mxu1  ;;  %4709 = vmatmul.mubr.bf16.gmra.mxu1 %v6082_v47  ;;  %v4077_v16 = vpop.f32.mrf.mxu0 }
 0x315   : > { %4712 = vmatprep.mubr.bf16.mxu1 %v6096_v49  ;;  %v4078_v60 = vadd.f32 %v4077_v16, %v4076_v18 }
 0x316   : > { %v6445_v12 = vpop.f32.mrf.mxu1  ;;  %v4079_v61 = vpop.f32.mrf.mxu0 }
 0x317   : > { %v6447_v9 = vadd.f32 %v4078_v60, %v2287_v13 }
 0x318   : > { %v6449_v39 = vpop.f32.mrf.mxu1  ;;  %v4080_v52 = vpop.f32.mrf.mxu0 }
 0x319   : > { %v4081_v35 = vadd.f32 %v4080_v52, %v4079_v61 }
 0x31a   : > { %v6451_v19 = vpop.f32.mrf.mxu1  ;;  %v4082_v48 = vpop.f32.mrf.mxu0  ;;  %3917 = vmatmul.mubr.msk.bf16.gmra.mxu0 %vm5596_vm12, %v6113_v2 }
 0x31b   : > { %v6456_v47 = vadd.f32 %v4081_v35, %v2290_v41  ;;  %3121 = vmatprep.mubr.bf16.mxu0 %v6115_v15 }
 0x31c   : > { %v6458_v49 = vpop.f32.mrf.mxu1  ;;  %4713 = vmatmul.mubr.bf16.gmra.mxu1 %v6254_v45  ;;  %v4083_v57 = vpop.f32.mrf.mxu0 }
 0x31d   : > { %v4084_v13 = vadd.f32 %v4083_v57, %v4082_v48 }
 0x31e   : > { %v6462_v44 = vpop.f32.mrf.mxu1  ;;  %v4085_v32 = vpop.f32.mrf.mxu0 }
 0x31f   : > { %v6465_v59 = vadd.f32 %v6385_v26, %v4084_v13 }
 0x320   : > { %v6467_v55 = vpop.f32.mrf.mxu1  ;;  %v4086_v31 = vpop.f32.mrf.mxu0 }
 0x321   : > { %v4087_v2 = vadd.f32 %v4086_v31, %v4085_v32 }
 0x322   : > { %v6469_v41 = vpop.f32.mrf.mxu1  ;;  %v4088_v25 = vpop.f32.mrf.mxu0  ;;  %3921 = vmatmul.mubr.msk.bf16.gmra.mxu0 %vm5596_vm12, %v6149_v8 }
 0x323   : > { %v6475_v15 = vadd.f32 %v6395_v46, %v4087_v2  ;;  %3129 = vmatprep.mubr.bf16.mxu0 %v6151_v62 }
 0x324   : > { %v4176_v45 = vpop.f32.mrf.mxu1  ;;  %v4089_v18 = vpop.f32.mrf.mxu0 }
 0x325   : > { %v4090_v26 = vadd.f32 %v4089_v18, %v4088_v25 }
 0x326   : > { %v4177_v16 = vpop.f32.mrf.mxu1  ;;  %v4091_v61 = vpop.f32.mrf.mxu0 }
 0x327   : > { %v4178_v60 = vadd.f32 %v4177_v16, %v4176_v45  ;;  %v6479_v52 = vadd.f32 %v4090_v26, %v6409_v20 }
 0x328   : > { %v4179_v35 = vpop.f32.mrf.mxu1  ;;  %v4092_v48 = vpop.f32.mrf.mxu0 }
 0x329   : > { %v6482_v57 = vadd.f32 %v4178_v60, %v6363_v27  ;;  %v4093_v8 = vadd.f32 %v4092_v48, %v4091_v61 }
 0x32a   : > { %v4180_v13 = vpop.f32.mrf.mxu1  ;;  %v4094_v32 = vpop.f32.mrf.mxu0  ;;  %3925 = vmatmul.mubr.msk.bf16.gmra.mxu0 %vm5596_vm12, %v6174_v7 }
 0x32b   : > { %v4181_v46 = vadd.f32 %v4180_v13, %v4179_v35  ;;  %v6488_v62 = vadd.f32 %v4093_v8, %v6415_v24  ;;  %3137 = vmatprep.mubr.bf16.mxu0 %v6176_v30 }
 0x32c   : > { %v4182_v31 = vpop.f32.mrf.mxu1  ;;  %v4095_v20 = vpop.f32.mrf.mxu0 }
 0x32d   : > { %v6492_v2 = vadd.f32 %v4181_v46, %v6368_v34  ;;  %v4096_v27 = vadd.f32 %v4095_v20, %v4094_v32 }
 0x32e   : > { %v4183_v25 = vpop.f32.mrf.mxu1  ;;  %v4097_v18 = vpop.f32.mrf.mxu0 }
 0x32f   : > { %v4184_v45 = vadd.f32 %v4183_v25, %v4182_v31  ;;  %v6495_v26 = vadd.f32 %v6404_v58, %v4096_v27 }
 0x330   : > { %v4185_v16 = vpop.f32.mrf.mxu1  ;;  %v4098_v60 = vpop.f32.mrf.mxu0 }
 0x331   : > { %v6498_v7 = vadd.f32 %v4184_v45, %v6373_v56  ;;  %v4099_v24 = vadd.f32 %v4098_v60, %v4097_v18 }
 0x332   : > { %v4186_v61 = vpop.f32.mrf.mxu1  ;;  %v4100_v30 = vpop.f32.mrf.mxu0  ;;  %3929 = vmatmul.mubr.msk.bf16.gmra.mxu0 %vm5596_vm12, %v6199_v10 }
 0x333   : > { %v4187_v35 = vadd.f32 %v4186_v61, %v4185_v16  ;;  %v6504_v34 = vadd.f32 %v6413_v29, %v4099_v24  ;;  %3145 = vmatprep.mubr.bf16.mxu0 %v6201_v40 }
 0x334   : > { %v4188_v48 = vpop.f32.mrf.mxu1  ;;  %v4101_v58 = vpop.f32.mrf.mxu0 }
 0x335   : > { %v6508_v8 = vadd.f32 %v4187_v35, %v6378_v38  ;;  %v4102_v56 = vadd.f32 %v4101_v58, %v4100_v30 }
 0x336   : > { %v4189_v13 = vpop.f32.mrf.mxu1  ;;  %v4103_v32 = vpop.f32.mrf.mxu0 }
 0x337   : > { %v4190_v46 = vadd.f32 %v4189_v13, %v4188_v48  ;;  %v6511_v31 = vadd.f32 %v4102_v56, %v6427_v1 }
 0x338   : > { %v4191_v20 = vpop.f32.mrf.mxu1  ;;  %v4104_v27 = vpop.f32.mrf.mxu0 }
 0x339   : > { %v6514_v10 = vadd.f32 %v4190_v46, %v6383_v14  ;;  %v4105_v29 = vadd.f32 %v4104_v27, %v4103_v32 }
 0x33a   : > { %v4192_v25 = vpop.f32.mrf.mxu1  ;;  %v4106_v40 = vpop.f32.mrf.mxu0  ;;  %3933 = vmatmul.mubr.msk.bf16.gmra.mxu0 %vm5596_vm12, %v6221_v42 }
 0x33b   : > { %v4193_v45 = vadd.f32 %v4192_v25, %v4191_v20  ;;  %v6520_v38 = vadd.f32 %v4105_v29, %v6433_v53  ;;  %3153 = vmatprep.mubr.bf16.mxu0 %v6223_v33 }
 0x33c   : > { %v4194_v18 = vpop.f32.mrf.mxu1  ;;  %v4107_v1 = vpop.f32.mrf.mxu0 }
 0x33d   : > { %v6524_v16 = vadd.f32 %v4193_v45, %v6390_v50  ;;  %v4108_v14 = vadd.f32 %v4107_v1, %v4106_v40 }
 0x33e   : > { %v4195_v60 = vpop.f32.mrf.mxu1  ;;  %v4109_v61 = vpop.f32.mrf.mxu0 }
 0x33f   : > { %v4196_v24 = vadd.f32 %v4195_v60, %v4194_v18  ;;  %v6527_v35 = vadd.f32 %v6422_v0, %v4108_v14 }
 0x340   : > { %v4197_v30 = vpop.f32.mrf.mxu1  ;;  %v4110_v48 = vpop.f32.mrf.mxu0 }
 0x341   : > { %v6530_v42 = vadd.f32 %v4196_v24, %v6397_v5  ;;  %v4111_v53 = vadd.f32 %v4110_v48, %v4109_v61 }
 0x342   : > { %v4198_v58 = vpop.f32.mrf.mxu1  ;;  %v4112_v33 = vpop.f32.mrf.mxu0  ;;  %3937 = vmatmul.mubr.msk.bf16.gmra.mxu0 %vm5596_vm12, %v6235_v22 }
 0x343   : > { %v4199_v56 = vadd.f32 %v4198_v58, %v4197_v30  ;;  %v6536_v50 = vadd.f32 %v6431_v63, %v4111_v53  ;;  %3161 = vmatprep.mubr.bf16.mxu0 %v6135_v23 }
 0x344   : > { %v4200_v13 = vpop.f32.mrf.mxu1  ;;  %v4113_v0 = vpop.f32.mrf.mxu0 }
 0x345   : > { %v6540_v46 = vadd.f32 %v4199_v56, %v6402_v3  ;;  %v4114_v5 = vadd.f32 %v4113_v0, %v4112_v33 }
 0x346   : > { %v4201_v32 = vpop.f32.mrf.mxu1  ;;  %v4115_v27 = vpop.f32.mrf.mxu0 }
 0x347   : > { %v4202_v20 = vadd.f32 %v4201_v32, %v4200_v13  ;;  %v6543_v29 = vadd.f32 %v4114_v5, %v6445_v12 }
 0x348   : > { %v4203_v25 = vpop.f32.mrf.mxu1  ;;  %v4116_v45 = vpop.f32.mrf.mxu0 }
 0x349   : > { %v6546_v22 = vadd.f32 %v4202_v20, %v6411_v51  ;;  %v4117_v63 = vadd.f32 %v4116_v45, %v4115_v27 }
 0x34a   : > { %v4204_v40 = vpop.f32.mrf.mxu1  ;;  %v4118_v23 = vpop.f32.mrf.mxu0  ;;  %3941 = vmatmul.mubr.msk.bf16.gmra.mxu0 %vm5596_vm12, %v6126_v4 }
 0x34b   : > { %v4205_v18 = vadd.f32 %v4204_v40, %v4203_v25  ;;  %v6552_v3 = vadd.f32 %v4117_v63, %v6451_v19  ;;  %3169 = vmatprep.mubr.bf16.mxu0 %v6145_v17 }
 0x34c   : > { %v4206_v1 = vpop.f32.mrf.mxu1  ;;  %v4119_v12 = vpop.f32.mrf.mxu0 }
 0x34d   : > { %v6556_v14 = vadd.f32 %v4205_v18, %v6420_v43  ;;  %v4120_v51 = vadd.f32 %v4119_v12, %v4118_v23 }
 0x34e   : > { %v4207_v60 = vpop.f32.mrf.mxu1  ;;  %v4121_v61 = vpop.f32.mrf.mxu0 }
 0x34f   : > { %v4208_v24 = vadd.f32 %v4207_v60, %v4206_v1  ;;  %v6559_v30 = vadd.f32 %v6440_v6, %v4120_v51 }
 0x350   : > { %v4209_v48 = vpop.f32.mrf.mxu1  ;;  %v4122_v53 = vpop.f32.mrf.mxu0 }
 0x351   : > { %v6562_v4 = vadd.f32 %v4208_v24, %v6429_v21  ;;  %v4123_v19 = vadd.f32 %v4122_v53, %v4121_v61 }
 0x352   : > { %v4210_v58 = vpop.f32.mrf.mxu1  ;;  %v4124_v17 = vpop.f32.mrf.mxu0  ;;  %3945 = vmatmul.mubr.msk.bf16.gmra.mxu0 %vm5596_vm12, %v6131_v54 }
 0x353   : > { %v4211_v56 = vadd.f32 %v4210_v58, %v4209_v48  ;;  %v6568_v43 = vadd.f32 %v6449_v39, %v4123_v19  ;;  %3177 = vmatprep.mubr.bf16.mxu0 %v6093_v37 }
 0x354   : > { %v4212_v33 = vpop.f32.mrf.mxu1  ;;  %v4125_v6 = vpop.f32.mrf.mxu0 }
 0x355   : > { %v6572_v13 = vadd.f32 %v4211_v56, %v6438_v11  ;;  %v4126_v21 = vadd.f32 %v4125_v6, %v4124_v17 }
 0x356   : > { %v4213_v0 = vpop.f32.mrf.mxu1  ;;  %v4127_v32 = vpop.f32.mrf.mxu0 }
 0x357   : > { %v4214_v5 = vadd.f32 %v4213_v0, %v4212_v33  ;;  %v6575_v20 = vadd.f32 %v4126_v21, %v6462_v44 }
 0x358   : > { %v4215_v27 = vpop.f32.mrf.mxu1  ;;  %v4128_v28 = vpop.f32.mrf.mxu0 }
 0x359   : > { %v6578_v54 = vadd.f32 %v4214_v5, %v6447_v9  ;;  %v4129_v39 = vadd.f32 %v4128_v28, %v4127_v32 }
 0x35a   : > { %v4216_v25 = vpop.f32.mrf.mxu1  ;;  %v4130_v37 = vpop.f32.mrf.mxu0  ;;  %3178 = vmatmul.mubr.bf16.gmra.mxu0 %v4859_v36 }
 0x35b   : > { %v4217_v45 = vadd.f32 %v4216_v25, %v4215_v27  ;;  %v6582_v11 = vadd.f32 %v4129_v39, %v6469_v41 }
 0x35c   : > { %v4218_v63 = vpop.f32.mrf.mxu1  ;;  %v4131_v40 = vpop.f32.mrf.mxu0 }
 0x35d   : > { %v6585_v18 = vadd.f32 %v4217_v45, %v6456_v47  ;;  %v6587_v44 = vadd.f32 %v4131_v40, %v4130_v37 }
 0x35e   : > { %v4219_v23 = vpop.f32.mrf.mxu1  ;;  %v4133_v9 = vpop.f32.mrf.mxu0 }
 0x35f   : > { %v4220_v1 = vadd.f32 %v4219_v23, %v4218_v63 }
 0x360   : > { %v4221_v12 = vpop.f32.mrf.mxu1  ;;  %v4134_v51 = vpop.f32.mrf.mxu0 }
 0x361   : > { %v2601_v60 = vadd.f32 %v4220_v1, %v6465_v59  ;;  %v6590_v24 = vadd.f32 %v4134_v51, %v4133_v9 }
 0x362   : > { %v4222_v36 = vpop.f32.mrf.mxu1  ;;  %v4638_v41 = vpop.f32.mrf.mxu0 }
 0x363   : > { %v4223_v61 = vadd.f32 %v4222_v36, %v4221_v12  ;;  %v6593_v53 = vadd.f32 %v4638_v41, %v6498_v7 }
 0x364   : > { %v4224_v48 = vpop.f32.mrf.mxu1  ;;  %v2705_v47 = vpop.f32.mrf.mxu0 }
 0x365   : > { %v2604_v19 = vadd.f32 %v4223_v61, %v6475_v15  ;;  %v6597_v56 = vadd.f32 %v2705_v47, %v6482_v57 }
 0x366   : > { %v4225_v58 = vpop.f32.mrf.mxu1  ;;  %v4639_v33 = vpop.f32.mrf.mxu0 }
 0x367   : > { %v4226_v17 = vadd.f32 %v4225_v58, %v4224_v48  ;;  %v6600_v59 = vadd.f32 %v4639_v33, %v6508_v8 }
 0x368   : > { %v4227_v6 = vpop.f32.mrf.mxu1  ;;  %v2708_v21 = vpop.f32.mrf.mxu0 }
 0x369   : > { %v2609_v0 = vadd.f32 %v4226_v17, %v6479_v52  ;;  %v6604_v7 = vadd.f32 %v2708_v21, %v6492_v2 }
 0x36a   : > { %v4228_v5 = vpop.f32.mrf.mxu1  ;;  %v4642_v27 = vpop.f32.mrf.mxu0 }
 0x36b   : > { %v4229_v32 = vadd.f32 %v4228_v5, %v4227_v6  ;;  %v6607_v28 = vadd.f32 %v4642_v27, %v6530_v42 }
 0x36c   : > { %v4230_v15 = vpop.f32.mrf.mxu1  ;;  %v2721_v57 = vpop.f32.mrf.mxu0 }
 0x36d   : > { %v2612_v39 = vadd.f32 %v4229_v32, %v6488_v62  ;;  %v6611_v8 = vadd.f32 %v2721_v57, %v6514_v10 }
 0x36e   : > { %v4231_v25 = vpop.f32.mrf.mxu1  ;;  %v4643_v37 = vpop.f32.mrf.mxu0 }
 0x36f   : > { %v4232_v45 = vadd.f32 %v4231_v25, %v4230_v15  ;;  %v6614_v63 = vadd.f32 %v4643_v37, %v6540_v46 }
 0x370   : > { %v4233_v52 = vpop.f32.mrf.mxu1  ;;  %v2724_v2 = vpop.f32.mrf.mxu0 }
 0x371   : > { %v2617_v40 = vadd.f32 %v4232_v45, %v6495_v26  ;;  %v6618_v42 = vadd.f32 %v2724_v2, %v6524_v16 }
 0x372   : > { %v4234_v23 = vpop.f32.mrf.mxu1  ;;  %v4646_v9 = vpop.f32.mrf.mxu0 }
 0x373   : > { %v4235_v1 = vadd.f32 %v4234_v23, %v4233_v52  ;;  %v6621_v12 = vadd.f32 %v4646_v9, %v6562_v4 }
 0x374   : > { %v4236_v62 = vpop.f32.mrf.mxu1  ;;  %v2737_v10 = vpop.f32.mrf.mxu0 }
 0x375   : > { %v2620_v51 = vadd.f32 %v4235_v1, %v6504_v34  ;;  %v6625_v46 = vadd.f32 %v2737_v10, %v6546_v22 }
 0x376   : > { %v4237_v36 = vpop.f32.mrf.mxu1  ;;  %v4647_v41 = vpop.f32.mrf.mxu0 }
 0x377   : > { %v4238_v61 = vadd.f32 %v4237_v36, %v4236_v62  ;;  %v6628_v48 = vadd.f32 %v4647_v41, %v6572_v13 }
 0x378   : > { %v4239_v26 = vpop.f32.mrf.mxu1  ;;  %v2740_v16 = vpop.f32.mrf.mxu0 }
 0x379   : > { %v2625_v47 = vadd.f32 %v4238_v61, %v6511_v31  ;;  %v6632_v4 = vadd.f32 %v2740_v16, %v6556_v14 }
 0x37a   : > { %v4240_v58 = vpop.f32.mrf.mxu1  ;;  %v4650_v33 = vpop.f32.mrf.mxu0 }
 0x37b   : > { %v4241_v17 = vadd.f32 %v4240_v58, %v4239_v26  ;;  %v6634_v6 = vadd.f32 %v4650_v33, %v2601_v60 }
 0x37c   : > { %v4242_v34 = vpop.f32.mrf.mxu1  ;;  %v2753_v22 = vpop.f32.mrf.mxu0 }
 0x37d   : > { %v2628_v21 = vadd.f32 %v4241_v17, %v6520_v38  ;;  %v6638_v32 = vadd.f32 %v2753_v22, %v6578_v54 }
 0x37e   : > { %v4243_v5 = vpop.f32.mrf.mxu1  ;;  %v4651_v27 = vpop.f32.mrf.mxu0 }
 0x37f   : > { %v4244_v13 = vadd.f32 %v4243_v5, %v4242_v34  ;;  %v6640_v31 = vadd.f32 %v4651_v27, %v2604_v19 }
 0x380   : > { %v4245_v15 = vpop.f32.mrf.mxu1  ;;  %v2756_v57 = vpop.f32.mrf.mxu0 }
 0x381   : > { %v2633_v14 = vadd.f32 %v4244_v13, %v6527_v35  ;;  %v6644_v45 = vadd.f32 %v2756_v57, %v6585_v18 }
 0x382   : > { %v4246_v25 = vpop.f32.mrf.mxu1  ;;  %v4654_v37 = vpop.f32.mrf.mxu0 }
 0x383   : > { %v4247_v60 = vadd.f32 %v4246_v25, %v4245_v15  ;;  %v6646_v38 = vadd.f32 %v4654_v37, %v2617_v40 }
 0x384   : > { %v4248_v52 = vpop.f32.mrf.mxu1  ;;  %v2769_v2 = vpop.f32.mrf.mxu0 }
 0x385   : > { %v2636_v54 = vadd.f32 %v4247_v60, %v6536_v50  ;;  %v6649_v1 = vadd.f32 %v2769_v2, %v2609_v0 }
 0x386   : > { %v4249_v23 = vpop.f32.mrf.mxu1  ;;  %v4655_v9 = vpop.f32.mrf.mxu0 }
 0x387   : > { %v4250_v19 = vadd.f32 %v4249_v23, %v4248_v52  ;;  %v6651_v10 = vadd.f32 %v4655_v9, %v2620_v51 }
 0x388   : > { %v4251_v62 = vpop.f32.mrf.mxu1  ;;  %v2772_v35 = vpop.f32.mrf.mxu0 }
 0x389   : > { %v2641_v18 = vadd.f32 %v4250_v19, %v6543_v29  ;;  %v6654_v61 = vadd.f32 %v2772_v35, %v2612_v39 }
 0x38a   : > { %v4252_v36 = vpop.f32.mrf.mxu1  ;;  %v4658_v40 = vpop.f32.mrf.mxu0 }
 0x38b   : > { %v4253_v41 = vadd.f32 %v4252_v36, %v4251_v62  ;;  %v6656_v16 = vadd.f32 %v4658_v40, %v2633_v14  ;;  %v2360_v40 = vadd.f32 %v6458_v49, %v6587_v44 }
 0x38c   : > { %v4254_v26 = vpop.f32.mrf.mxu1  ;;  %v2785_v50 = vpop.f32.mrf.mxu0 }
 0x38d   : > { %v2644_v0 = vadd.f32 %v4253_v41, %v6552_v3  ;;  %v6659_v17 = vadd.f32 %v2785_v50, %v2625_v47 }
 0x38e   : > { %v4255_v58 = vpop.f32.mrf.mxu1  ;;  %v4659_v51 = vpop.f32.mrf.mxu0 }
 0x38f   : > { %v4256_v33 = vadd.f32 %v4255_v58, %v4254_v26  ;;  %v6661_v22 = vadd.f32 %v4659_v51, %v2636_v54 }
 0x390   : > { %v4257_v34 = vpop.f32.mrf.mxu1  ;;  %v2788_v29 = vpop.f32.mrf.mxu0 }
 0x391   : > { %v2649_v39 = vadd.f32 %v4256_v33, %v6559_v30  ;;  %v6664_v13 = vadd.f32 %v2788_v29, %v2628_v21 }
 0x392   : > { %v4258_v5 = vpop.f32.mrf.mxu1  ;;  %v4662_v15 = vpop.f32.mrf.mxu0 }
 0x393   : > { %v4259_v27 = vadd.f32 %v4258_v5, %v4257_v34  ;;  %v6666_v14 = vadd.f32 %v4662_v15, %v2649_v39  ;;  %v2363_v34 = vadd.f32 %v6467_v55, %v6590_v24 }
 0x394   : > { %v4260_v57 = vpop.f32.mrf.mxu1  ;;  %v2801_v3 = vpop.f32.mrf.mxu0 }
 0x395   : > { %v2652_v47 = vadd.f32 %v4259_v27, %v6568_v43  ;;  %v6669_v60 = vadd.f32 %v2801_v3, %v2641_v18 }
 0x396   : > { %v4261_v25 = vpop.f32.mrf.mxu1  ;;  %v4663_v52 = vpop.f32.mrf.mxu0 }
 0x397   : > { %v4262_v37 = vadd.f32 %v4261_v25, %v4260_v57  ;;  %v6671_v54 = vadd.f32 %v4663_v52, %v2652_v47 }
 0x398   : > { %v4263_v2 = vpop.f32.mrf.mxu1  ;;  %v2804_v30 = vpop.f32.mrf.mxu0 }
 0x399   : > { %v2657_v21 = vadd.f32 %v4262_v37, %v6575_v20  ;;  %v6674_v19 = vadd.f32 %v2804_v30, %v2644_v0  ;;  %v6692_v37 = vld [vmem:[%s6847_s10] ss:$0 sm:$0xff] }
 0x39a   : > { %v4264_v23 = vpop.f32.mrf.mxu1  ;;  %v4666_v62 = vpop.f32.mrf.mxu0 }
 0x39b   : > { %v4265_v9 = vadd.f32 %v4264_v23, %v4263_v2  ;;  %v6698_v2 = vld [vmem:[%s6848_s11] ss:$0 sm:$0xff] }
 0x39c   : > { %v4266_v35 = vpop.f32.mrf.mxu1  ;;  %v2817_v36 = vpop.f32.mrf.mxu0 }
 0x39d   : > { %v2660_v43 = vadd.f32 %v4265_v9, %v6582_v11  ;;  %v6677_v18 = vadd.f32 %v2817_v36, %v2657_v21 }
 0x39e   : > { %v4267_v41 = vpop.f32.mrf.mxu1  ;;  %v4667_v50 = vpop.f32.mrf.mxu0 }
 0x39f   : > { %v4268_v26 = vadd.f32 %v4267_v41, %v4266_v35 }
 0x3a0   : > { %v4269_v58 = vpop.f32.mrf.mxu1  ;;  %v2820_v20 = vpop.f32.mrf.mxu0 }
 0x3a1   : > { %v2665_v33 = vadd.f32 %v4268_v26, %v2360_v40  ;;  %v6681_v0 = vadd.f32 %v2820_v20, %v2660_v43 }
 0x3a2   : > { %v4270_v51 = vpop.f32.mrf.mxu1  ;;  %v4312_v39 = vpop.f32.mrf.mxu0 }
 0x3a3   : > { %v6685_v29 = vadd.f32 %v4666_v62, %v2665_v33  ;;  %v4271_v11 = vadd.f32 %v4270_v51, %v4269_v58 }
 0x3a4   : > { %v4686_v5 = vpop.f32.mrf.mxu1  ;;  %v4313_v15 = vpop.f32.mrf.mxu0 }
 0x3a5   : > { %v2668_v27 = vadd.f32 %v4271_v11, %v2363_v34  ;;  %v4314_v57 = vadd.f32 %v4313_v15, %v4312_v39 }
 0x3a6   : > { %v3220_v49 = vpop.f32.mrf.mxu1  ;;  %v4315_v3 = vpop.f32.mrf.mxu0 }
 0x3a7   : > { %v6687_v44 = vadd.f32 %v4667_v50, %v2668_v27  ;;  %v3221_v47 = vadd.f32 %v4314_v57, %v3220_v49 }
 0x3a8   : > { %v4687_v25 = vpop.f32.mrf.mxu1  ;;  %v4316_v55 = vpop.f32.mrf.mxu0 }
 0x3a9   : > { %v3347_v24 = vadd.f32 %v3221_v47, %v6597_v56  ;;  %v4317_v52 = vadd.f32 %v4316_v55, %v4315_v3 }
 0x3aa   : > { %v3223_v30 = vpop.f32.mrf.mxu1  ;;  %v4318_v21 = vpop.f32.mrf.mxu0 }
 0x3ab   : > { %v3386_v23 = vmul.f32 %v6692_v37, %v3347_v24  ;;  %v3224_v9 = vadd.f32 %v4317_v52, %v3223_v30 }
 0x3ac   : > { %v4319_v62 = vpop.f32.mrf.mxu0  ;;  %v4690_v56 = vpop.f32.mrf.mxu1 }
 0x3ad   : > { %v3425_v35 = vadd.f32 %v6698_v2, %v3386_v23  ;;  %v3348_v36 = vadd.f32 %v3224_v9, %v6604_v7  ;;  %v4320_v43 = vadd.f32 %v4319_v62, %v4318_v21 }
 0x3ae   : > { %v4321_v41 = vpop.f32.mrf.mxu0  ;;  %v3236_v51 = vpop.f32.mrf.mxu1 }
 0x3af   : > { %v3457_v40 = vmax.f32 %v3425_v35, 0.0  ;;  %v3387_v26 = vmul.f32 %v6692_v37, %v3348_v36  ;;  %v3229_v50 = vadd.f32 %v4686_v5, %v4320_v43 }
 0x3b0   : > { %v4322_v58 = vpop.f32.mrf.mxu0  ;;  %v4691_v3 = vpop.f32.mrf.mxu1 }
 0x3b1   : > { %3489 = vst [vmem:[%s6708_s20] sm:$0xff] %v3457_v40  ;;  %v3426_v33 = vadd.f32 %v6698_v2, %v3387_v26  ;;  %v3349_v7 = vadd.f32 %v3229_v50, %v6593_v53  ;;  %v4323_v20 = vadd.f32 %v4322_v58, %v4321_v41 }
 0x3b2   : > { %v4324_v34 = vpop.f32.mrf.mxu0  ;;  %v3239_v23 = vpop.f32.mrf.mxu1 }
 0x3b3   : > { %v3458_v11 = vmax.f32 %v3426_v33, 0.0  ;;  %v3388_v39 = vmul.f32 %v6692_v37, %v3349_v7  ;;  %v3232_v27 = vadd.f32 %v4687_v25, %v4323_v20 }
 0x3b4   : > { %v4325_v15 = vpop.f32.mrf.mxu0  ;;  %v4694_v26 = vpop.f32.mrf.mxu1 }
 0x3b5   : > { %3490 = vst [vmem:[%s6708_s20 + $0x8] sm:$0xff] %v3458_v11  ;;  %v3427_v57 = vadd.f32 %v6698_v2, %v3388_v39  ;;  %v3350_v5 = vadd.f32 %v3232_v27, %v6600_v59  ;;  %v4326_v49 = vadd.f32 %v4325_v15, %v4324_v34 }
 0x3b6   : > { %v4327_v47 = vpop.f32.mrf.mxu0  ;;  %v3252_v11 = vpop.f32.mrf.mxu1 }
 0x3b7   : > { %v3459_v55 = vmax.f32 %v3427_v57, 0.0  ;;  %v3389_v53 = vmul.f32 %v6692_v37, %v3350_v5  ;;  %v3237_v24 = vadd.f32 %v4326_v49, %v3236_v51 }
 0x3b8   : > { %v4328_v52 = vpop.f32.mrf.mxu0 }
 0x3b9   : > { %3491 = vst [vmem:[%s6708_s20 + $0x10] sm:$0xff] %v3459_v55  ;;  %v3428_v30 = vadd.f32 %v6698_v2, %v3389_v53  ;;  %v3351_v25 = vadd.f32 %v3237_v24, %v6611_v8  ;;  %v4329_v21 = vadd.f32 %v4328_v52, %v4327_v47  ;;  %v4695_v47 = vpop.f32.mrf.mxu1 }
 0x3ba   : > { %v4330_v9 = vpop.f32.mrf.mxu0 }
 0x3bb   : > { %v3460_v62 = vmax.f32 %v3428_v30, 0.0  ;;  %v3390_v59 = vmul.f32 %v6692_v37, %v3351_v25  ;;  %v3240_v35 = vadd.f32 %v4329_v21, %v3239_v23  ;;  %v3255_v21 = vpop.f32.mrf.mxu1 }
 0x3bc   : > { %v4331_v36 = vpop.f32.mrf.mxu0 }
 0x3bd   : > { %3492 = vst [vmem:[%s6708_s20 + $0x18] sm:$0xff] %v3460_v62  ;;  %v3429_v43 = vadd.f32 %v6698_v2, %v3390_v59  ;;  %v3352_v41 = vadd.f32 %v3240_v35, %v6618_v42  ;;  %v4332_v40 = vadd.f32 %v4331_v36, %v4330_v9 }
 0x3be   : > { %v4333_v50 = vpop.f32.mrf.mxu0 }
 0x3bf   : > { %v3461_v58 = vmax.f32 %v3429_v43, 0.0  ;;  %v3391_v8 = vmul.f32 %v6692_v37, %v3352_v41  ;;  %v3245_v33 = vadd.f32 %v4690_v56, %v4332_v40  ;;  %v4698_v41 = vpop.f32.mrf.mxu1 }
 0x3c0   : > { %v4334_v7 = vpop.f32.mrf.mxu0 }
 0x3c1   : > { %3493 = vst [vmem:[%s6708_s20 + $0x20] sm:$0xff] %v3461_v58  ;;  %v3430_v20 = vadd.f32 %v6698_v2, %v3391_v8  ;;  %v3353_v51 = vadd.f32 %v3245_v33, %v6607_v28  ;;  %v4335_v34 = vadd.f32 %v4334_v7, %v4333_v50 }
 0x3c2   : > { %v4336_v39 = vpop.f32.mrf.mxu0 }
 0x3c3   : > { %v3462_v27 = vmax.f32 %v3430_v20, 0.0  ;;  %v3392_v42 = vmul.f32 %v6692_v37, %v3353_v51  ;;  %v3248_v15 = vadd.f32 %v4691_v3, %v4335_v34  ;;  %v3268_v51 = vpop.f32.mrf.mxu1 }
 0x3c4   : > { %v4337_v57 = vpop.f32.mrf.mxu0 }
 0x3c5   : > { %3494 = vst [vmem:[%s6708_s20 + $0x28] sm:$0xff] %v3462_v27  ;;  %v3431_v5 = vadd.f32 %v6698_v2, %v3392_v42  ;;  %v3354_v56 = vadd.f32 %v3248_v15, %v6614_v63  ;;  %v4338_v49 = vadd.f32 %v4337_v57, %v4336_v39  ;;  %v4699_v57 = vpop.f32.mrf.mxu1 }
 0x3c6   : > { %v4339_v55 = vpop.f32.mrf.mxu0 }
 0x3c7   : > { %v3463_v53 = vmax.f32 %v3431_v5, 0.0  ;;  %v3393_v28 = vmul.f32 %v6692_v37, %v3354_v56  ;;  %v3253_v24 = vadd.f32 %v4338_v49, %v3252_v11 }
 0x3c8   : > { %v4340_v52 = vpop.f32.mrf.mxu0 }
 0x3c9   : > { %3495 = vst [vmem:[%s6708_s20 + $0x30] sm:$0xff] %v3463_v53  ;;  %v3432_v30 = vadd.f32 %v6698_v2, %v3393_v28  ;;  %v3355_v3 = vadd.f32 %v3253_v24, %v6625_v46  ;;  %v4341_v25 = vadd.f32 %v4340_v52, %v4339_v55  ;;  %v3271_v24 = vpop.f32.mrf.mxu1 }
 0x3ca   : > { %v4342_v23 = vpop.f32.mrf.mxu0 }
 0x3cb   : > { %v3464_v9 = vmax.f32 %v3432_v30, 0.0  ;;  %v3394_v63 = vmul.f32 %v6692_v37, %v3355_v3  ;;  %v3256_v62 = vadd.f32 %v4341_v25, %v3255_v21 }
 0x3cc   : > { %v4343_v59 = vpop.f32.mrf.mxu0 }
 0x3cd   : > { %3496 = vst [vmem:[%s6708_s20 + $0x38] sm:$0xff] %v3464_v9  ;;  %v3433_v35 = vadd.f32 %v6698_v2, %v3394_v63  ;;  %v3356_v36 = vadd.f32 %v3256_v62, %v6632_v4  ;;  %v4344_v43 = vadd.f32 %v4343_v59, %v4342_v23  ;;  %v4702_v63 = vpop.f32.mrf.mxu1 }
 0x3ce   : > { %v4345_v40 = vpop.f32.mrf.mxu0 }
 0x3cf   : > { %v3465_v50 = vmax.f32 %v3433_v35, 0.0  ;;  %v3395_v46 = vmul.f32 %v6692_v37, %v3356_v36  ;;  %v3261_v58 = vadd.f32 %v4694_v26, %v4344_v43 }
 0x3d0   : > { %v4346_v8 = vpop.f32.mrf.mxu0 }
 0x3d1   : > { %3497 = vst [vmem:[%s6708_s20 + $0x40] sm:$0xff] %v3465_v50  ;;  %v3434_v33 = vadd.f32 %v6698_v2, %v3395_v46  ;;  %v3357_v7 = vadd.f32 %v3261_v58, %v6621_v12  ;;  %v4347_v20 = vadd.f32 %v4346_v8, %v4345_v40  ;;  %v3284_v46 = vpop.f32.mrf.mxu1 }
 0x3d2   : > { %v4348_v34 = vpop.f32.mrf.mxu0 }
 0x3d3   : > { %v3466_v11 = vmax.f32 %v3434_v33, 0.0  ;;  %v3396_v4 = vmul.f32 %v6692_v37, %v3357_v7  ;;  %v3264_v39 = vadd.f32 %v4695_v47, %v4347_v20 }
 0x3d4   : > { %v4349_v27 = vpop.f32.mrf.mxu0 }
 0x3d5   : > { %3498 = vst [vmem:[%s6708_s20 + $0x48] sm:$0xff] %v3466_v11  ;;  %v3435_v42 = vadd.f32 %v6698_v2, %v3396_v4  ;;  %v3358_v26 = vadd.f32 %v3264_v39, %v6628_v48  ;;  %v4350_v15 = vadd.f32 %v4349_v27, %v4348_v34  ;;  %v4703_v34 = vpop.f32.mrf.mxu1 }
 0x3d6   : > { %v4351_v5 = vpop.f32.mrf.mxu0 }
 0x3d7   : > { %v3467_v56 = vmax.f32 %v3435_v42, 0.0  ;;  %v3397_v12 = vmul.f32 %v6692_v37, %v3358_v26  ;;  %v3269_v49 = vadd.f32 %v4350_v15, %v3268_v51 }
 0x3d8   : > { %v4352_v55 = vpop.f32.mrf.mxu0 }
 0x3d9   : > { %3499 = vst [vmem:[%s6708_s20 + $0x50] sm:$0xff] %v3467_v56  ;;  %v3436_v53 = vadd.f32 %v6698_v2, %v3397_v12  ;;  %v3359_v47 = vadd.f32 %v3269_v49, %v6638_v32  ;;  %v4353_v28 = vadd.f32 %v4352_v55, %v4351_v5 }
 0x3da   : > { %v4354_v52 = vpop.f32.mrf.mxu0 }
 0x3db   : > { %v3468_v30 = vmax.f32 %v3436_v53, 0.0  ;;  %v3398_v48 = vmul.f32 %v6692_v37, %v3359_v47  ;;  %v3272_v3 = vadd.f32 %v4353_v28, %v3271_v24 }
 0x3dc   : > { %v4355_v25 = vpop.f32.mrf.mxu0 }
 0x3dd   : > { %3500 = vst [vmem:[%s6708_s20 + $0x58] sm:$0xff] %v3468_v30  ;;  %v3437_v21 = vadd.f32 %v6698_v2, %v3398_v48  ;;  %v3360_v23 = vadd.f32 %v3272_v3, %v6644_v45  ;;  %v4356_v9 = vadd.f32 %v4355_v25, %v4354_v52 }
 0x3de   : > { %v4357_v62 = vpop.f32.mrf.mxu0 }
 0x3df   : > { %v3469_v59 = vmax.f32 %v3437_v21, 0.0  ;;  %v3399_v32 = vmul.f32 %v6692_v37, %v3360_v23  ;;  %v3277_v35 = vadd.f32 %v4698_v41, %v4356_v9 }
 0x3e0   : > { %v4358_v36 = vpop.f32.mrf.mxu0 }
 0x3e1   : > { %3501 = vst [vmem:[%s6708_s20 + $0x60] sm:$0xff] %v3469_v59  ;;  %v3438_v43 = vadd.f32 %v6698_v2, %v3399_v32  ;;  %v3361_v40 = vadd.f32 %v3277_v35, %v6634_v6  ;;  %v4359_v50 = vadd.f32 %v4358_v36, %v4357_v62 }
 0x3e2   : > { %v4360_v58 = vpop.f32.mrf.mxu0 }
 0x3e3   : > { %v3470_v8 = vmax.f32 %v3438_v43, 0.0  ;;  %v3400_v45 = vmul.f32 %v6692_v37, %v3361_v40  ;;  %v3280_v33 = vadd.f32 %v4699_v57, %v4359_v50  ;;  %v3287_v57 = vpop.f32.mrf.mxu1 }
 0x3e4   : > { %v4361_v7 = vpop.f32.mrf.mxu0 }
 0x3e5   : > { %3502 = vst [vmem:[%s6708_s20 + $0x68] sm:$0xff] %v3470_v8  ;;  %v3439_v20 = vadd.f32 %v6698_v2, %v3400_v45  ;;  %v3362_v41 = vadd.f32 %v3280_v33, %v6640_v31  ;;  %v4362_v51 = vadd.f32 %v4361_v7, %v4360_v58  ;;  %v4706_v28 = vpop.f32.mrf.mxu1 }
 0x3e6   : > { %v4363_v11 = vpop.f32.mrf.mxu0 }
 0x3e7   : > { %v3471_v4 = vmax.f32 %v3439_v20, 0.0  ;;  %v3401_v6 = vmul.f32 %v6692_v37, %v3362_v41  ;;  %v3285_v39 = vadd.f32 %v4362_v51, %v3284_v46  ;;  %v3300_v23 = vpop.f32.mrf.mxu1 }
 0x3e8   : > { %v4364_v27 = vpop.f32.mrf.mxu0 }
 0x3e9   : > { %3503 = vst [vmem:[%s6708_s20 + $0x70] sm:$0xff] %v3471_v4  ;;  %v3440_v42 = vadd.f32 %v6698_v2, %v3401_v6  ;;  %v3363_v26 = vadd.f32 %v3285_v39, %v6649_v1  ;;  %v4365_v15 = vadd.f32 %v4364_v27, %v4363_v11  ;;  %v4707_v43 = vpop.f32.mrf.mxu1 }
 0x3ea   : > { %v4366_v5 = vpop.f32.mrf.mxu0 }
 0x3eb   : > { %v3472_v56 = vmax.f32 %v3440_v42, 0.0  ;;  %v3402_v31 = vmul.f32 %v6692_v37, %v3363_v26  ;;  %v3288_v12 = vadd.f32 %v4365_v15, %v3287_v57  ;;  %v3303_v7 = vpop.f32.mrf.mxu1 }
 0x3ec   : > { %v4367_v49 = vpop.f32.mrf.mxu0 }
 0x3ed   : > { %3504 = vst [vmem:[%s6708_s20 + $0x78] sm:$0xff] %v3472_v56  ;;  %v3441_v55 = vadd.f32 %v6698_v2, %v3402_v31  ;;  %v3364_v53 = vadd.f32 %v3288_v12, %v6654_v61  ;;  %v4368_v47 = vadd.f32 %v4367_v49, %v4366_v5  ;;  %v4710_v39 = vpop.f32.mrf.mxu1 }
 0x3ee   : > { %v4369_v24 = vpop.f32.mrf.mxu0 }
 0x3ef   : > { %v3473_v52 = vmax.f32 %v3441_v55, 0.0  ;;  %v3403_v1 = vmul.f32 %v6692_v37, %v3364_v53  ;;  %v3293_v30 = vadd.f32 %v4702_v63, %v4368_v47  ;;  %v3316_v31 = vpop.f32.mrf.mxu1 }
 0x3f0   : > { %v4370_v48 = vpop.f32.mrf.mxu0 }
 0x3f1   : > { %3505 = vst [vmem:[%s6708_s20 + $0x80] sm:$0xff] %v3473_v52  ;;  %v3442_v3 = vadd.f32 %v6698_v2, %v3403_v1  ;;  %v3365_v25 = vadd.f32 %v3293_v30, %v6646_v38  ;;  %v4371_v21 = vadd.f32 %v4370_v48, %v4369_v24  ;;  %v4711_v52 = vpop.f32.mrf.mxu1 }
 0x3f2   : > { %v4372_v9 = vpop.f32.mrf.mxu0 }
 0x3f3   : > { %v3474_v62 = vmax.f32 %v3442_v3, 0.0  ;;  %v3404_v61 = vmul.f32 %v6692_v37, %v3365_v25  ;;  %v3296_v59 = vadd.f32 %v4703_v34, %v4371_v21 }
 0x3f4   : > { %v4373_v32 = vpop.f32.mrf.mxu0 }
 0x3f5   : > { %3506 = vst [vmem:[%s6708_s20 + $0x88] sm:$0xff] %v3474_v62  ;;  %v3443_v35 = vadd.f32 %v6698_v2, %v3404_v61  ;;  %v3366_v63 = vadd.f32 %v3296_v59, %v6651_v10  ;;  %v4374_v36 = vadd.f32 %v4373_v32, %v4372_v9  ;;  %v3319_v9 = vpop.f32.mrf.mxu1 }
 0x3f6   : > { %v4375_v40 = vpop.f32.mrf.mxu0 }
 0x3f7   : > { %v3475_v50 = vmax.f32 %v3443_v35, 0.0  ;;  %v3405_v38 = vmul.f32 %v6692_v37, %v3366_v63  ;;  %v3301_v46 = vadd.f32 %v4374_v36, %v3300_v23  ;;  %v4714_v35 = vpop.f32.mrf.mxu1 }
 0x3f8   : > { %v4376_v58 = vpop.f32.mrf.mxu0 }
 0x3f9   : > { %3507 = vst [vmem:[%s6708_s20 + $0x90] sm:$0xff] %v3475_v50  ;;  %v3444_v8 = vadd.f32 %v6698_v2, %v3405_v38  ;;  %v3367_v45 = vadd.f32 %v3301_v46, %v6659_v17  ;;  %v4377_v33 = vadd.f32 %v4376_v58, %v4375_v40  ;;  %v3332_v58 = vpop.f32.mrf.mxu1 }
 0x3fa   : > { %v4378_v20 = vpop.f32.mrf.mxu0 }
 0x3fb   : > { %v3476_v41 = vmax.f32 %v3444_v8, 0.0  ;;  %v3406_v10 = vmul.f32 %v6692_v37, %v3367_v45  ;;  %v3304_v51 = vadd.f32 %v4377_v33, %v3303_v7 }
 0x3fc   : > { %v4379_v34 = vpop.f32.mrf.mxu0 }
 0x3fd   : > { %3508 = vst [vmem:[%s6708_s20 + $0x98] sm:$0xff] %v3476_v41  ;;  %v3445_v11 = vadd.f32 %v6698_v2, %v3406_v10  ;;  %v3368_v4 = vadd.f32 %v3304_v51, %v6664_v13  ;;  %v4380_v6 = vadd.f32 %v4379_v34, %v4378_v20  ;;  %v4715_v51 = vpop.f32.mrf.mxu1 }
 0x3fe   : > { %v4381_v27 = vpop.f32.mrf.mxu0 }
 0x3ff   : > { %v3477_v42 = vmax.f32 %v3445_v11, 0.0  ;;  %v3407_v17 = vmul.f32 %v6692_v37, %v3368_v4  ;;  %v3309_v26 = vadd.f32 %v4706_v28, %v4380_v6 }
 0x400   : > { %v4382_v15 = vpop.f32.mrf.mxu0 }
 0x401   : > { %3509 = vst [vmem:[%s6708_s20 + $0xa0] sm:$0xff] %v3477_v42  ;;  %v3446_v57 = vadd.f32 %v6698_v2, %v3407_v17  ;;  %v3369_v5 = vadd.f32 %v3309_v26, %v6656_v16  ;;  %v4383_v56 = vadd.f32 %v4382_v15, %v4381_v27  ;;  %v3335_v17 = vpop.f32.mrf.mxu1 }
 0x402   : > { %v4384_v12 = vpop.f32.mrf.mxu0 }
 0x403   : > { %v3478_v49 = vmax.f32 %v3446_v57, 0.0  ;;  %v3408_v13 = vmul.f32 %v6692_v37, %v3369_v5  ;;  %v3312_v55 = vadd.f32 %v4707_v43, %v4383_v56 }
 0x404   : > { %v4385_v53 = vpop.f32.mrf.mxu0 }
 0x405   : > { %3510 = vst [vmem:[%s6708_s20 + $0xa8] sm:$0xff] %v3478_v49  ;;  %v3447_v47 = vadd.f32 %v6698_v2, %v3408_v13  ;;  %v3370_v28 = vadd.f32 %v3312_v55, %v6661_v22  ;;  %v4386_v24 = vadd.f32 %v4385_v53, %v4384_v12 }
 0x406   : > { %v4387_v1 = vpop.f32.mrf.mxu0 }
 0x407   : > { %v3479_v30 = vmax.f32 %v3447_v47, 0.0  ;;  %v3409_v16 = vmul.f32 %v6692_v37, %v3370_v28  ;;  %v3317_v48 = vadd.f32 %v4386_v24, %v3316_v31 }
 0x408   : > { %v4388_v3 = vpop.f32.mrf.mxu0 }
 0x409   : > { %3511 = vst [vmem:[%s6708_s20 + $0xb0] sm:$0xff] %v3479_v30  ;;  %v3448_v25 = vadd.f32 %v6698_v2, %v3409_v16  ;;  %v3371_v21 = vadd.f32 %v3317_v48, %v6669_v60  ;;  %v4389_v23 = vadd.f32 %v4388_v3, %v4387_v1 }
 0x40a   : > { %v4390_v62 = vpop.f32.mrf.mxu0 }
 0x40b   : > { %v3480_v61 = vmax.f32 %v3448_v25, 0.0  ;;  %v3410_v22 = vmul.f32 %v6692_v37, %v3371_v21  ;;  %v3320_v59 = vadd.f32 %v4389_v23, %v3319_v9 }
 0x40c   : > { %v4391_v32 = vpop.f32.mrf.mxu0 }
 0x40d   : > { %3512 = vst [vmem:[%s6708_s20 + $0xb8] sm:$0xff] %v3480_v61  ;;  %v3449_v63 = vadd.f32 %v6698_v2, %v3410_v22  ;;  %v3372_v36 = vadd.f32 %v3320_v59, %v6674_v19  ;;  %v4392_v43 = vadd.f32 %v4391_v32, %v4390_v62 }
 0x40e   : > { %v4393_v40 = vpop.f32.mrf.mxu0 }
 0x40f   : > { %v3481_v50 = vmax.f32 %v3449_v63, 0.0  ;;  %v3411_v60 = vmul.f32 %v6692_v37, %v3372_v36  ;;  %v3325_v38 = vadd.f32 %v4710_v39, %v4392_v43 }
 0x410   : > { %v4394_v46 = vpop.f32.mrf.mxu0 }
 0x411   : > { %3513 = vst [vmem:[%s6708_s20 + $0xc0] sm:$0xff] %v3481_v50  ;;  %v3450_v8 = vadd.f32 %v6698_v2, %v3411_v60  ;;  %v3373_v45 = vadd.f32 %v3325_v38, %v6666_v14  ;;  %v4395_v33 = vadd.f32 %v4394_v46, %v4393_v40 }
 0x412   : > { %v4396_v7 = vpop.f32.mrf.mxu0 }
 0x413   : > { %v3482_v20 = vmax.f32 %v3450_v8, 0.0  ;;  %v3412_v19 = vmul.f32 %v6692_v37, %v3373_v45  ;;  %v3328_v41 = vadd.f32 %v4711_v52, %v4395_v33 }
 0x414   : > { %v4397_v10 = vpop.f32.mrf.mxu0 }
 0x415   : > { %3514 = vst [vmem:[%s6708_s20 + $0xc8] sm:$0xff] %v3482_v20  ;;  %v3451_v34 = vadd.f32 %v6698_v2, %v3412_v19  ;;  %v3374_v11 = vadd.f32 %v3328_v41, %v6671_v54  ;;  %v4398_v4 = vadd.f32 %v4397_v10, %v4396_v7 }
 0x416   : > { %v4399_v6 = vpop.f32.mrf.mxu0 }
 0x417   : > { %v3483_v39 = vmax.f32 %v3451_v34, 0.0  ;;  %v3413_v14 = vmul.f32 %v6692_v37, %v3374_v11  ;;  %v3333_v27 = vadd.f32 %v4398_v4, %v3332_v58 }
 0x418   : > { %v4400_v42 = vpop.f32.mrf.mxu0 }
 0x419   : > { %3515 = vst [vmem:[%s6708_s20 + $0xd0] sm:$0xff] %v3483_v39  ;;  %v3452_v26 = vadd.f32 %v6698_v2, %v3413_v14  ;;  %v3375_v15 = vadd.f32 %v3333_v27, %v6677_v18  ;;  %v4401_v57 = vadd.f32 %v4400_v42, %v4399_v6 }
 0x41a   : > { %v4402_v5 = vpop.f32.mrf.mxu0 }
 0x41b   : > { %v3484_v56 = vmax.f32 %v3452_v26, 0.0  ;;  %v3414_v54 = vmul.f32 %v6692_v37, %v3375_v15  ;;  %v3336_v31 = vadd.f32 %v4401_v57, %v3335_v17 }
 0x41c   : > { %v4403_v12 = vpop.f32.mrf.mxu0 }
 0x41d   : > { %3516 = vst [vmem:[%s6708_s20 + $0xd8] sm:$0xff] %v3484_v56  ;;  %v3453_v49 = vadd.f32 %v6698_v2, %v3414_v54  ;;  %v3376_v13 = vadd.f32 %v3336_v31, %v6681_v0  ;;  %v4404_v55 = vadd.f32 %v4403_v12, %v4402_v5 }
 0x41e   : > { %v4405_v53 = vpop.f32.mrf.mxu0 }
 0x41f   : > { %v3485_v47 = vmax.f32 %v3453_v49, 0.0  ;;  %v3415_v18 = vmul.f32 %v6692_v37, %v3376_v13  ;;  %v3341_v28 = vadd.f32 %v4714_v35, %v4404_v55 }
 0x420   : > { %v4406_v24 = vpop.f32.mrf.mxu0 }
 0x421   : > { %3517 = vst [vmem:[%s6708_s20 + $0xe0] sm:$0xff] %v3485_v47  ;;  %v3454_v52 = vadd.f32 %v6698_v2, %v3415_v18  ;;  %v3377_v1 = vadd.f32 %v3341_v28, %v6685_v29  ;;  %v4407_v30 = vadd.f32 %v4406_v24, %v4405_v53 }
 0x423   : > { %v3486_v16 = vmax.f32 %v3454_v52, 0.0  ;;  %v3416_v48 = vmul.f32 %v6692_v37, %v3377_v1  ;;  %v3344_v3 = vadd.f32 %v4715_v51, %v4407_v30 }
 0x425   : > { %3518 = vst [vmem:[%s6708_s20 + $0xe8] sm:$0xff] %v3486_v16  ;;  %v3455_v0 = vadd.f32 %v6698_v2, %v3416_v48  ;;  %v3378_v25 = vadd.f32 %v3344_v3, %v6687_v44 }
 0x427   : > { %v3487_v21 = vmax.f32 %v3455_v0, 0.0  ;;  %v3417_v23 = vmul.f32 %v6692_v37, %v3378_v25 }
 0x429   : > { %3519 = vst [vmem:[%s6708_s20 + $0xf0] sm:$0xff] %v3487_v21  ;;  %v3456_v9 = vadd.f32 %v6698_v2, %v3417_v23 }
 0x42b   : > { %v3488_v62 = vmax.f32 %v3456_v9, 0.0 }
 0x42d   : > { %3520 = vst [vmem:[%s6708_s20 + $0xf8] sm:$0xff] %v3488_v62 }
 0x42e PF: > { %s22_s21 = sadd.s32 1, %s4854_s21  }
 0x42f   : > { %p19_p4 = scmp.ge.s32.totalorder %s22_s21, 4  }
 0x431   :  { %21 = sbr.rel (!%p19_p4) target bundleno = 1 (0x1), region = 100 }

</bundles_post_ra>
